<compile_context>
chip_gen: v5e
topology: v5e:2x2
jax: 0.10.0
libtpu: 0.0.40
codegen_flags: <defaults>
</compile_context>

<pallas_src>
import functools

import jax
import jax.numpy as jnp
from jax import lax
from jax.experimental import pallas as pl
from jax.experimental.pallas import tpu as pltpu

_PAD_OFF = 8  # 8-aligned sublane offset where un-padded rows live inside conv scratch


def _cparams():
    return pltpu.CompilerParams(
        dimension_semantics=("parallel",),
        vmem_limit_bytes=48 * 1024 * 1024,
    )


def _resident(arr):
    """BlockSpec that keeps a (small) weight fully VMEM-resident across grid steps."""
    zeros = (0,) * arr.ndim
    return pl.BlockSpec(arr.shape, lambda b: zeros)


# ----------------------------------------------------------------------------
# In-kernel helpers (operate on values / refs inside a Pallas kernel)
# ----------------------------------------------------------------------------

def _layernorm(y, g_row, b_row, eps):
    mu = jnp.mean(y, axis=-1, keepdims=True)
    var = jnp.mean((y - mu) ** 2, axis=-1, keepdims=True)
    return (y - mu) * lax.rsqrt(var + eps) * g_row + b_row


def _same_conv(x, w_ref, b_row, k, pad, pbuf):
    """'same' 1-D conv along rows.  x: (T, Cin) f32; w_ref: (k, Cin, Cout) bf16.

    Padding is done inside the kernel: x is dropped at an 8-aligned offset of a
    zeroed VMEM scratch, and each tap reads a (possibly unaligned) shifted
    window -- stores stay aligned, only reads are offset.
    """
    T = x.shape[0]
    if k == 1:
        acc = jnp.dot(x.astype(jnp.bfloat16), w_ref[0],
                      preferred_element_type=jnp.float32)
    else:
        pbuf[...] = jnp.zeros_like(pbuf)              # aligned full store
        pbuf[_PAD_OFF:_PAD_OFF + T, :] = x            # aligned offset store
        acc = None
        for t in range(k):                            # static unroll over taps
            start = _PAD_OFF - pad + t
            xt = pbuf[start:start + T, :].astype(jnp.bfloat16)
            c = jnp.dot(xt, w_ref[t], preferred_element_type=jnp.float32)
            acc = c if acc is None else acc + c
    return acc + b_row


# ----------------------------------------------------------------------------
# Fused Pallas kernels (one grid step == one batch element)
# ----------------------------------------------------------------------------

def _attn_block_kernel(x_ref, wqkv_ref, bqkv_ref, wo_ref, bo_ref, g_ref, be_ref,
                       km_ref, npm_ref, o_ref, *, n_head, d_k, d_v, eps):
    x = x_ref[0]                                        # (T, D) f32
    xb = x.astype(jnp.bfloat16)
    qkv = (jnp.dot(xb, wqkv_ref[...], preferred_element_type=jnp.float32)
           + bqkv_ref[...])                             # (T, H*(2*dk+dv))
    wo = wo_ref[...]                                    # (H*dv, D) bf16
    km = km_ref[0]                                      # (1, T): 1.0 at padded keys
    inv_temp = 1.0 / (float(d_k) ** 0.5)
    H = n_head
    acc = None
    for h in range(H):                                  # static unroll over heads
        q = qkv[:, h * d_k:(h + 1) * d_k]
        k = qkv[:, H * d_k + h * d_k:H * d_k + (h + 1) * d_k]
        v = qkv[:, 2 * H * d_k + h * d_v:2 * H * d_k + (h + 1) * d_v]
        s = lax.dot_general(
            q.astype(jnp.bfloat16), k.astype(jnp.bfloat16),
            (((1,), (1,)), ((), ())),
            preferred_element_type=jnp.float32) * inv_temp    # (T, T)
        s = jnp.where(km > 0.5, -1e9, s)                # key-pad mask, in-kernel
        s = s - jnp.max(s, axis=-1, keepdims=True)
        p = jnp.exp(s)
        p = p * pl.reciprocal(jnp.sum(p, axis=-1, keepdims=True), approx=True)
        ctx = jnp.dot(p.astype(jnp.bfloat16), v.astype(jnp.bfloat16),
                      preferred_element_type=jnp.float32)     # (T, dv)
        contrib = jnp.dot(ctx.astype(jnp.bfloat16), wo[h * d_v:(h + 1) * d_v, :],
                          preferred_element_type=jnp.float32)  # (T, D)
        acc = contrib if acc is None else acc + contrib
    y = _layernorm(acc + bo_ref[...] + x, g_ref[...], be_ref[...], eps)
    o_ref[0] = y * npm_ref[0]                           # query non-pad mask


def _ffn_block_kernel(x_ref, w1_ref, b1_ref, w2_ref, b2_ref, g_ref, be_ref,
                      npm_ref, o_ref, *scratch, k1, p1, k2, p2, eps):
    x = x_ref[0]                                        # (T, D) f32
    idx = 0
    pb1 = pb2 = None
    if k1 > 1:
        pb1 = scratch[idx]
        idx += 1
    if k2 > 1:
        pb2 = scratch[idx]
        idx += 1
    h = _same_conv(x, w1_ref, b1_ref[...], k1, p1, pb1)
    h = jnp.maximum(h, 0.0)
    h = _same_conv(h, w2_ref, b2_ref[...], k2, p2, pb2)
    y = _layernorm(h + x, g_ref[...], be_ref[...], eps)
    o_ref[0] = y * npm_ref[0]


def _var_pred_kernel(x_ref, w1_ref, b1_ref, g1_ref, be1_ref,
                     w2_ref, b2_ref, g2_ref, be2_ref, wl_ref, bl_ref,
                     o_ref, *scratch, k, pad, eps):
    x = x_ref[0]                                        # (T, Din)
    pb1 = scratch[0] if k > 1 else None
    pb2 = scratch[1] if k > 1 else None
    h = _same_conv(x, w1_ref, b1_ref[...], k, pad, pb1)
    h = jnp.maximum(h, 0.0)
    h = _layernorm(h, g1_ref[...], be1_ref[...], eps)
    h = _same_conv(h, w2_ref, b2_ref[...], k, pad, pb2)
    h = jnp.maximum(h, 0.0)
    h = _layernorm(h, g2_ref[...], be2_ref[...], eps)
    # final Linear(filt -> 1) as a lane reduction (fused, no extra kernel)
    pred = jnp.sum(h * wl_ref[...], axis=-1, keepdims=True) + bl_ref[...]
    o_ref[0] = pred


def _mel_mask_kernel(x_ref, w_ref, b_ref, keep_ref, o_ref):
    x = x_ref[0]
    y = (jnp.dot(x.astype(jnp.bfloat16), w_ref[...],
                 preferred_element_type=jnp.float32) + b_ref[...])
    o_ref[0] = y * keep_ref[0]                          # mask_tensor fused


# ----------------------------------------------------------------------------
# pallas_call wrappers
# ----------------------------------------------------------------------------

def attention_block(x, lp, km, npm, n_head, d_k, d_v):
    B, T, D = x.shape
    kern = functools.partial(_attn_block_kernel, n_head=n_head, d_k=d_k,
                             d_v=d_v, eps=1e-5)
    return pl.pallas_call(
        kern,
        grid=(B,),
        in_specs=[
            pl.BlockSpec((1, T, D), lambda b: (b, 0, 0)),
            _resident(lp["wqkv"]), _resident(lp["bqkv"]),
            _resident(lp["wo"]), _resident(lp["bo"]),
            _resident(lp["ln1_g"]), _resident(lp["ln1_b"]),
            pl.BlockSpec((1, 1, T), lambda b: (b, 0, 0)),
            pl.BlockSpec((1, T, 1), lambda b: (b, 0, 0)),
        ],
        out_specs=pl.BlockSpec((1, T, D), lambda b: (b, 0, 0)),
        out_shape=jax.ShapeDtypeStruct((B, T, D), jnp.float32),
        compiler_params=_cparams(),
    )(x, lp["wqkv"], lp["bqkv"], lp["wo"], lp["bo"],
      lp["ln1_g"], lp["ln1_b"], km, npm)


def ffn_block(x, lp, npm, kernels, paddings):
    B, T, D = x.shape
    k1, k2 = kernels
    p1, p2 = paddings
    assert 2 * p1 == k1 - 1 and 2 * p2 == k2 - 1, "fused FFN assumes 'same' convs"
    assert p1 <= _PAD_OFF and p2 <= _PAD_OFF
    d_inner = lp["w1"].shape[2]
    scratch = []
    if k1 > 1:
        scratch.append(pltpu.VMEM((T + 2 * _PAD_OFF, D), jnp.float32))
    if k2 > 1:
        scratch.append(pltpu.VMEM((T + 2 * _PAD_OFF, d_inner), jnp.float32))
    kern = functools.partial(_ffn_block_kernel, k1=k1, p1=p1, k2=k2, p2=p2,
                             eps=1e-5)
    return pl.pallas_call(
        kern,
        grid=(B,),
        in_specs=[
            pl.BlockSpec((1, T, D), lambda b: (b, 0, 0)),
            _resident(lp["w1"]), _resident(lp["b1"]),
            _resident(lp["w2"]), _resident(lp["b2"]),
            _resident(lp["ln2_g"]), _resident(lp["ln2_b"]),
            pl.BlockSpec((1, T, 1), lambda b: (b, 0, 0)),
        ],
        out_specs=pl.BlockSpec((1, T, D), lambda b: (b, 0, 0)),
        out_shape=jax.ShapeDtypeStruct((B, T, D), jnp.float32),
        scratch_shapes=scratch,
        compiler_params=_cparams(),
    )(x, lp["w1"], lp["b1"], lp["w2"], lp["b2"], lp["ln2_g"], lp["ln2_b"], npm)


def variance_predictor(x, vp, kernel_size):
    B, T, Din = x.shape
    filt = vp["w1"].shape[2]
    pad = (kernel_size - 1) // 2
    assert 2 * pad == kernel_size - 1 and pad <= _PAD_OFF
    scratch = []
    if kernel_size > 1:
        scratch = [pltpu.VMEM((T + 2 * _PAD_OFF, Din), jnp.float32),
                   pltpu.VMEM((T + 2 * _PAD_OFF, filt), jnp.float32)]
    kern = functools.partial(_var_pred_kernel, k=kernel_size, pad=pad, eps=1e-5)
    out = pl.pallas_call(
        kern,
        grid=(B,),
        in_specs=[
            pl.BlockSpec((1, T, Din), lambda b: (b, 0, 0)),
            _resident(vp["w1"]), _resident(vp["b1"]),
            _resident(vp["g1"]), _resident(vp["be1"]),
            _resident(vp["w2"]), _resident(vp["b2"]),
            _resident(vp["g2"]), _resident(vp["be2"]),
            _resident(vp["wl"]), _resident(vp["bl"]),
        ],
        out_specs=pl.BlockSpec((1, T, 1), lambda b: (b, 0, 0)),
        out_shape=jax.ShapeDtypeStruct((B, T, 1), jnp.float32),
        scratch_shapes=scratch,
        compiler_params=_cparams(),
    )(x, vp["w1"], vp["b1"], vp["g1"], vp["be1"],
      vp["w2"], vp["b2"], vp["g2"], vp["be2"], vp["wl"], vp["bl"])
    return out[..., 0]


def mel_linear_masked(x, w, b, keep):
    B, M, D = x.shape
    Nm = w.shape[1]
    return pl.pallas_call(
        _mel_mask_kernel,
        grid=(B,),
        in_specs=[
            pl.BlockSpec((1, M, D), lambda b: (b, 0, 0)),
            _resident(w), _resident(b),
            pl.BlockSpec((1, M, 1), lambda b: (b, 0, 0)),
        ],
        out_specs=pl.BlockSpec((1, M, Nm), lambda b: (b, 0, 0)),
        out_shape=jax.ShapeDtypeStruct((B, M, Nm), jnp.float32),
        compiler_params=_cparams(),
    )(x, w, b, keep)


# ----------------------------------------------------------------------------
# Model components (JAX glue + fused kernel calls)
# ----------------------------------------------------------------------------

def fft_block(x, lp, km, npm, n_head, d_k, d_v, kernels, paddings):
    x = attention_block(x, lp, km, npm, n_head, d_k, d_v)
    x = ffn_block(x, lp, npm, kernels, paddings)
    return x


def encoder_fwd(params, cfg, src_seq, src_pos):
    pad = cfg["PAD"]
    km = (src_seq == pad).astype(jnp.float32)[:, None, :]   # (B,1,T) key-pad
    npm = (src_seq != pad).astype(jnp.float32)[..., None]   # (B,T,1) non-pad
    x = params["src_word_emb"][src_seq] + params["enc_pos_emb"][src_pos]
    d, h = cfg["encoder_dim"], cfg["encoder_head"]
    for lp in params["enc_layers"]:
        x = fft_block(x, lp, km, npm, h, d // h, d // h,
                      cfg["fft_conv1d_kernel"], cfg["fft_conv1d_padding"])
    return x, npm


def decoder_fwd(params, cfg, enc_seq, enc_pos):
    pad = cfg["PAD"]
    km = (enc_pos == pad).astype(jnp.float32)[:, None, :]
    npm = (enc_pos != pad).astype(jnp.float32)[..., None]
    x = enc_seq + params["dec_pos_emb"][enc_pos]
    d, h = cfg["decoder_dim"], cfg["decoder_head"]
    for lp in params["dec_layers"]:
        x = fft_block(x, lp, km, npm, h, d // h, d // h,
                      cfg["fft_conv1d_kernel"], cfg["fft_conv1d_padding"])
    return x


def length_regulate(x, durations, mel_max_length):
    """Expand token features by integer durations; zero-pad to mel_max_length."""
    B, T, D = x.shape
    cum = jnp.cumsum(durations, axis=-1)                        # (B, T)
    total = cum[:, -1]
    frames = jnp.arange(mel_max_length)
    idx = jnp.sum(frames[None, :, None] >= cum[:, None, :], axis=-1)  # (B, M)
    idx = jnp.clip(idx, 0, T - 1)
    out = jnp.take_along_axis(
        x, jnp.broadcast_to(idx[:, :, None], (B, mel_max_length, D)), axis=1)
    valid = (frames[None, :] < total[:, None]).astype(x.dtype)
    return out * valid[..., None]


def variance_adaptor_fwd(params, cfg, enc_output, length_target, pitch_target,
                         energy_target, mel_max_length):
    # TODO(synk): exact VarianceAdaptor source not provided; standard FastSpeech2
    # training-mode semantics implemented (predict on features, embed the targets).
    dur_pred = variance_predictor(
        enc_output, params["dur_pred"], cfg["dur_predictor_kernel_size"])
    lr_out = length_regulate(enc_output, length_target, mel_max_length)

    pitch_pred = variance_predictor(
        lr_out, params["pitch_pred"], cfg["pitch_predictor_kernel_size"])
    pitch_idx = jnp.sum(pitch_target[..., None] > params["pitch_bins"], axis=-1)
    lr_out = lr_out + params["pitch_emb"][pitch_idx]

    energy_pred = variance_predictor(
        lr_out, params["energy_pred"], cfg["energy_predictor_kernel_size"])
    energy_idx = jnp.sum(energy_target[..., None] > params["energy_bins"], axis=-1)
    lr_out = lr_out + params["energy_emb"][energy_idx]

    return lr_out, dur_pred, pitch_pred, energy_pred


def fastspeech2_fwd(params, cfg, src_seq, src_pos, mel_pos, mel_max_length,
                    length_target, pitch_target, energy_target):
    enc_output, _ = encoder_fwd(params, cfg, src_seq, src_pos)
    lr_output, dur_p, pitch_p, energy_p = variance_adaptor_fwd(
        params, cfg, enc_output, length_target, pitch_target, energy_target,
        mel_max_length)
    dec_output = decoder_fwd(params, cfg, lr_output, mel_pos)
    # mask_tensor, fused into the mel-linear kernel
    lengths = jnp.max(mel_pos, axis=-1)
    ids = jnp.arange(mel_max_length)
    keep = (ids[None, :] < lengths[:, None]).astype(jnp.float32)[..., None]
    mel = mel_linear_masked(dec_output, params["mel_lin_w"],
                            params["mel_lin_b"], keep)
    return mel, dur_p, pitch_p, energy_p


# ----------------------------------------------------------------------------
# Deterministic parameter init (kernel-ready: fused QKV, bf16 matmul weights)
# ----------------------------------------------------------------------------

def _dense(key, din, dout, scale=0.02):
    return jax.random.normal(key, (din, dout), jnp.float32) * scale


def init_fft_block(key, d_model, d_inner, n_head, d_k, d_v, k1, k2):
    ks = jax.random.split(key, 6)
    wq = _dense(ks[0], d_model, n_head * d_k)
    wk = _dense(ks[1], d_model, n_head * d_k)
    wv = _dense(ks[2], d_model, n_head * d_v)
    return {
        "wqkv": jnp.concatenate([wq, wk, wv], axis=1).astype(jnp.bfloat16),
        "bqkv": jnp.zeros((1, n_head * (2 * d_k + d_v)), jnp.float32),
        "wo": _dense(ks[3], n_head * d_v, d_model).astype(jnp.bfloat16),
        "bo": jnp.zeros((1, d_model), jnp.float32),
        "ln1_g": jnp.ones((1, d_model), jnp.float32),
        "ln1_b": jnp.zeros((1, d_model), jnp.float32),
        "w1": (jax.random.normal(ks[4], (k1, d_model, d_inner), jnp.float32)
               * 0.02).astype(jnp.bfloat16),
        "b1": jnp.zeros((1, d_inner), jnp.float32),
        "w2": (jax.random.normal(ks[5], (k2, d_inner, d_model), jnp.float32)
               * 0.02).astype(jnp.bfloat16),
        "b2": jnp.zeros((1, d_model), jnp.float32),
        "ln2_g": jnp.ones((1, d_model), jnp.float32),
        "ln2_b": jnp.zeros((1, d_model), jnp.float32),
    }


def init_var_predictor(key, d_in, filt, k):
    ks = jax.random.split(key, 3)
    return {
        "w1": (jax.random.normal(ks[0], (k, d_in, filt), jnp.float32)
               * 0.02).astype(jnp.bfloat16),
        "b1": jnp.zeros((1, filt), jnp.float32),
        "g1": jnp.ones((1, filt), jnp.float32),
        "be1": jnp.zeros((1, filt), jnp.float32),
        "w2": (jax.random.normal(ks[1], (k, filt, filt), jnp.float32)
               * 0.02).astype(jnp.bfloat16),
        "b2": jnp.zeros((1, filt), jnp.float32),
        "g2": jnp.ones((1, filt), jnp.float32),
        "be2": jnp.zeros((1, filt), jnp.float32),
        "wl": _dense(ks[2], filt, 1).reshape(1, filt),  # (1, filt) row, f32
        "bl": jnp.zeros((1, 1), jnp.float32),
    }


def init_params(key, cfg):
    ks = jax.random.split(key, 12)
    d_e, d_d = cfg["encoder_dim"], cfg["decoder_dim"]
    k1, k2 = cfg["fft_conv1d_kernel"]

    src_word_emb = jax.random.normal(ks[0], (cfg["vocab_size"], d_e), jnp.float32) * 0.02
    src_word_emb = src_word_emb.at[cfg["PAD"]].set(0.0)  # padding_idx
    enc_pos_emb = jax.random.normal(ks[1], (cfg["max_seq_len"] + 1, d_e), jnp.float32) * 0.02
    enc_pos_emb = enc_pos_emb.at[cfg["PAD"]].set(0.0)
    dec_pos_emb = jax.random.normal(ks[2], (cfg["max_seq_len"] + 1, d_d), jnp.float32) * 0.02
    dec_pos_emb = dec_pos_emb.at[cfg["PAD"]].set(0.0)

    enc_layers = [
        init_fft_block(k, d_e, cfg["encoder_conv1d_filter_size"], cfg["encoder_head"],
                       d_e // cfg["encoder_head"], d_e // cfg["encoder_head"], k1, k2)
        for k in jax.random.split(ks[3], cfg["encoder_n_layer"])
    ]
    dec_layers = [
        init_fft_block(k, d_d, cfg["decoder_conv1d_filter_size"], cfg["decoder_head"],
                       d_d // cfg["decoder_head"], d_d // cfg["decoder_head"], k1, k2)
        for k in jax.random.split(ks[4], cfg["decoder_n_layer"])
    ]

    return {
        "src_word_emb": src_word_emb,
        "enc_pos_emb": enc_pos_emb,
        "dec_pos_emb": dec_pos_emb,
        "enc_layers": enc_layers,
        "dec_layers": dec_layers,
        "dur_pred": init_var_predictor(ks[5], d_e, cfg["dur_predictor_filter_size"],
                                       cfg["dur_predictor_kernel_size"]),
        "pitch_pred": init_var_predictor(ks[6], d_e, cfg["pitch_predictor_filter_size"],
                                         cfg["pitch_predictor_kernel_size"]),
        "energy_pred": init_var_predictor(ks[7], d_e, cfg["energy_predictor_filter_size"],
                                          cfg["energy_predictor_kernel_size"]),
        "pitch_bins": jnp.linspace(cfg["min_pitch"], cfg["max_pitch"], cfg["num_embed"] - 1),
        "pitch_emb": jax.random.normal(ks[8], (cfg["num_embed"], d_e), jnp.float32) * 0.02,
        "energy_bins": jnp.linspace(cfg["min_energy"], cfg["max_energy"], cfg["num_embed"] - 1),
        "energy_emb": jax.random.normal(ks[9], (cfg["num_embed"], d_e), jnp.float32) * 0.02,
        "mel_lin_w": _dense(ks[10], d_d, cfg["num_mels"]).astype(jnp.bfloat16),
        "mel_lin_b": jnp.zeros((1, cfg["num_mels"]), jnp.float32),
    }


# ----------------------------------------------------------------------------
# Main
# ----------------------------------------------------------------------------

if __name__ == "__main__":
    cfg = dict(
        max_seq_len=32,
        encoder_n_layer=2, vocab_size=20, encoder_dim=32, PAD=0,
        encoder_conv1d_filter_size=64, encoder_head=2,
        decoder_n_layer=2, decoder_dim=32, decoder_conv1d_filter_size=64, decoder_head=2,
        fft_conv1d_kernel=(9, 1), fft_conv1d_padding=(4, 0),
        pitch_predictor_filter_size=64, pitch_predictor_kernel_size=3,
        energy_predictor_filter_size=64, energy_predictor_kernel_size=3,
        dur_predictor_filter_size=64, dur_predictor_kernel_size=3,
        num_embed=16, min_pitch=0.0, max_pitch=1.0, min_energy=0.0, max_energy=1.0,
        num_mels=16, dropout=0.0,
    )

    key = jax.random.PRNGKey(0)
    params = init_params(key, cfg)

    B, T, mel_max = 2, 8, 16
    kin = jax.random.split(jax.random.PRNGKey(0), 4)

    src_lens = jnp.array([8, 6], dtype=jnp.int32)
    tok_ids = jnp.arange(T, dtype=jnp.int32)
    src_valid = tok_ids[None, :] < src_lens[:, None]
    base = jax.random.randint(kin[0], (B, T), 1, cfg["vocab_size"])
    src_seq = jnp.where(src_valid, base, cfg["PAD"]).astype(jnp.int32)
    src_pos = jnp.where(src_valid, tok_ids[None, :] + 1, cfg["PAD"]).astype(jnp.int32)

    length_target = jnp.where(src_valid, 2, 0).astype(jnp.int32)    # durations
    mel_lens = jnp.sum(length_target, axis=-1)                      # [16, 12]
    mel_ids = jnp.arange(mel_max, dtype=jnp.int32)
    mel_valid = mel_ids[None, :] < mel_lens[:, None]
    mel_pos = jnp.where(mel_valid, mel_ids[None, :] + 1, cfg["PAD"]).astype(jnp.int32)

    pitch_target = jax.random.uniform(kin[1], (B, mel_max),
                                      minval=cfg["min_pitch"], maxval=cfg["max_pitch"])
    energy_target = jax.random.uniform(kin[2], (B, mel_max),
                                       minval=cfg["min_energy"], maxval=cfg["max_energy"])

    @jax.jit
    def run(params, src_seq, src_pos, mel_pos, length_target, pitch_target,
            energy_target):
        return fastspeech2_fwd(params, cfg, src_seq, src_pos, mel_pos, mel_max,
                               length_target, pitch_target, energy_target)

    outs = run(params, src_seq, src_pos, mel_pos, length_target, pitch_target,
               energy_target)
    outs = jax.block_until_ready(outs)

    mel, dur_p, pitch_p, energy_p = outs
    assert mel.shape == (B, mel_max, cfg["num_mels"])
    assert dur_p.shape == (B, T)
    assert pitch_p.shape == (B, mel_max)
    assert energy_p.shape == (B, mel_max)
    assert bool(jnp.all(jnp.isfinite(mel)))
    print("KERNEL_OK")
</pallas_src>

<mosaic_0001>
module attributes {stable_mosaic.version = 11 : i64} {
  func.func @_ffn_block_kernel(%arg0: i32, %arg1: memref<1x8x32xf32, #tpu.memory_space<vmem>>, %arg2: memref<9x32x64xbf16, #tpu.memory_space<vmem>>, %arg3: memref<1x64xf32, #tpu.memory_space<vmem>>, %arg4: memref<1x64x32xbf16, #tpu.memory_space<vmem>>, %arg5: memref<1x32xf32, #tpu.memory_space<vmem>>, %arg6: memref<1x32xf32, #tpu.memory_space<vmem>>, %arg7: memref<1x32xf32, #tpu.memory_space<vmem>>, %arg8: memref<1x8x1xf32, #tpu.memory_space<vmem>>, %arg9: memref<1x8x32xf32, #tpu.memory_space<vmem>>, %arg10: memref<24x32xf32, #tpu.memory_space<vmem>>) attributes {dimension_semantics = [#tpu.dimension_semantics<parallel>], iteration_bounds = array<i64: 2>, scalar_prefetch = 0 : i64, scratch_operands = 1 : i64, tpu.core_type = #tpu.core_type<tc>, window_params = [{transform_indices = @transform_0, window_bounds = array<i64: 1, 8, 32>}, {pipeline_mode = #tpu.pipeline_mode<synchronous>, transform_indices = @transform_1, window_bounds = array<i64: 9, 32, 64>}, {pipeline_mode = #tpu.pipeline_mode<synchronous>, transform_indices = @transform_2, window_bounds = array<i64: 1, 64>}, {pipeline_mode = #tpu.pipeline_mode<synchronous>, transform_indices = @transform_3, window_bounds = array<i64: 1, 64, 32>}, {pipeline_mode = #tpu.pipeline_mode<synchronous>, transform_indices = @transform_4, window_bounds = array<i64: 1, 32>}, {pipeline_mode = #tpu.pipeline_mode<synchronous>, transform_indices = @transform_5, window_bounds = array<i64: 1, 32>}, {pipeline_mode = #tpu.pipeline_mode<synchronous>, transform_indices = @transform_6, window_bounds = array<i64: 1, 32>}, {transform_indices = @transform_7, window_bounds = array<i64: 1, 8, 1>}, {transform_indices = @transform_8, window_bounds = array<i64: 1, 8, 32>}]} {
    %c0 = arith.constant 0 : index
    %c0_0 = arith.constant 0 : index
    %c0_1 = arith.constant 0 : index
    %0 = vector.load %arg1[%c0, %c0_0, %c0_1] : memref<1x8x32xf32, #tpu.memory_space<vmem>>, vector<1x8x32xf32>
    %1 = vector.shape_cast %0 : vector<1x8x32xf32> to vector<8x32xf32>
    %c0_2 = arith.constant 0 : index
    %c0_3 = arith.constant 0 : index
    %2 = vector.load %arg3[%c0_2, %c0_3] : memref<1x64xf32, #tpu.memory_space<vmem>>, vector<1x64xf32>
    %cst = arith.constant 0.000000e+00 : f32
    %3 = vector.broadcast %cst : f32 to vector<24x32xf32>
    %c0_4 = arith.constant 0 : index
    %c0_5 = arith.constant 0 : index
    %4 = vector.load %arg10[%c0_4, %c0_5] : memref<24x32xf32, #tpu.memory_space<vmem>>, vector<24x32xf32>
    tpu.vector_store %arg10[%c0_4, %c0_5], %3 {strides = array<i32>} : memref<24x32xf32, #tpu.memory_space<vmem>>, vector<24x32xf32>,
    %c8 = arith.constant 8 : index
    %c0_6 = arith.constant 0 : index
    %5 = vector.load %arg10[%c8, %c0_6] : memref<24x32xf32, #tpu.memory_space<vmem>>, vector<8x32xf32>
    tpu.vector_store %arg10[%c8, %c0_6], %1 {strides = array<i32>} : memref<24x32xf32, #tpu.memory_space<vmem>>, vector<8x32xf32>,
    %c4 = arith.constant 4 : index
    %c0_7 = arith.constant 0 : index
    %6 = vector.load %arg10[%c4, %c0_7] : memref<24x32xf32, #tpu.memory_space<vmem>>, vector<8x32xf32>
    %7 = arith.truncf %6 : vector<8x32xf32> to vector<8x32xbf16>
    %c0_8 = arith.constant 0 : index
    %c0_9 = arith.constant 0 : index
    %c0_10 = arith.constant 0 : index
    %8 = vector.load %arg2[%c0_8, %c0_9, %c0_10] : memref<9x32x64xbf16, #tpu.memory_space<vmem>>, vector<1x32x64xbf16>
    %9 = vector.shape_cast %8 : vector<1x32x64xbf16> to vector<32x64xbf16>
    %cst_11 = arith.constant dense<0.000000e+00> : vector<8x64xf32>
    %10 = tpu.matmul %7, %9, %cst_11 {dimension_numbers = #tpu.dot_dimension_numbers<[1], [0], [0], [1], [0, 0, 1, 1], [], []>} : vector<8x32xbf16>, vector<32x64xbf16>, vector<8x64xf32> -> vector<8x64xf32>
    %c5 = arith.constant 5 : index
    %c0_12 = arith.constant 0 : index
    %11 = vector.load %arg10[%c5, %c0_12] : memref<24x32xf32, #tpu.memory_space<vmem>>, vector<8x32xf32>
    %12 = arith.truncf %11 : vector<8x32xf32> to vector<8x32xbf16>
    %c1 = arith.constant 1 : index
    %c0_13 = arith.constant 0 : index
    %c0_14 = arith.constant 0 : index
    %13 = vector.load %arg2[%c1, %c0_13, %c0_14] : memref<9x32x64xbf16, #tpu.memory_space<vmem>>, vector<1x32x64xbf16>
    %14 = vector.shape_cast %13 : vector<1x32x64xbf16> to vector<32x64xbf16>
    %cst_15 = arith.constant dense<0.000000e+00> : vector<8x64xf32>
    %15 = tpu.matmul %12, %14, %cst_15 {dimension_numbers = #tpu.dot_dimension_numbers<[1], [0], [0], [1], [0, 0, 1, 1], [], []>} : vector<8x32xbf16>, vector<32x64xbf16>, vector<8x64xf32> -> vector<8x64xf32>
    %16 = arith.addf %10, %15 : vector<8x64xf32>
    %c6 = arith.constant 6 : index
    %c0_16 = arith.constant 0 : index
    %17 = vector.load %arg10[%c6, %c0_16] : memref<24x32xf32, #tpu.memory_space<vmem>>, vector<8x32xf32>
    %18 = arith.truncf %17 : vector<8x32xf32> to vector<8x32xbf16>
    %c2 = arith.constant 2 : index
    %c0_17 = arith.constant 0 : index
    %c0_18 = arith.constant 0 : index
    %19 = vector.load %arg2[%c2, %c0_17, %c0_18] : memref<9x32x64xbf16, #tpu.memory_space<vmem>>, vector<1x32x64xbf16>
    %20 = vector.shape_cast %19 : vector<1x32x64xbf16> to vector<32x64xbf16>
    %cst_19 = arith.constant dense<0.000000e+00> : vector<8x64xf32>
    %21 = tpu.matmul %18, %20, %cst_19 {dimension_numbers = #tpu.dot_dimension_numbers<[1], [0], [0], [1], [0, 0, 1, 1], [], []>} : vector<8x32xbf16>, vector<32x64xbf16>, vector<8x64xf32> -> vector<8x64xf32>
    %22 = arith.addf %16, %21 : vector<8x64xf32>
    %c7 = arith.constant 7 : index
    %c0_20 = arith.constant 0 : index
    %23 = vector.load %arg10[%c7, %c0_20] : memref<24x32xf32, #tpu.memory_space<vmem>>, vector<8x32xf32>
    %24 = arith.truncf %23 : vector<8x32xf32> to vector<8x32xbf16>
    %c3 = arith.constant 3 : index
    %c0_21 = arith.constant 0 : index
    %c0_22 = arith.constant 0 : index
    %25 = vector.load %arg2[%c3, %c0_21, %c0_22] : memref<9x32x64xbf16, #tpu.memory_space<vmem>>, vector<1x32x64xbf16>
    %26 = vector.shape_cast %25 : vector<1x32x64xbf16> to vector<32x64xbf16>
    %cst_23 = arith.constant dense<0.000000e+00> : vector<8x64xf32>
    %27 = tpu.matmul %24, %26, %cst_23 {dimension_numbers = #tpu.dot_dimension_numbers<[1], [0], [0], [1], [0, 0, 1, 1], [], []>} : vector<8x32xbf16>, vector<32x64xbf16>, vector<8x64xf32> -> vector<8x64xf32>
    %28 = arith.addf %22, %27 : vector<8x64xf32>
    %c8_24 = arith.constant 8 : index
    %c0_25 = arith.constant 0 : index
    %29 = vector.load %arg10[%c8_24, %c0_25] : memref<24x32xf32, #tpu.memory_space<vmem>>, vector<8x32xf32>
    %30 = arith.truncf %29 : vector<8x32xf32> to vector<8x32xbf16>
    %c4_26 = arith.constant 4 : index
    %c0_27 = arith.constant 0 : index
    %c0_28 = arith.constant 0 : index
    %31 = vector.load %arg2[%c4_26, %c0_27, %c0_28] : memref<9x32x64xbf16, #tpu.memory_space<vmem>>, vector<1x32x64xbf16>
    %32 = vector.shape_cast %31 : vector<1x32x64xbf16> to vector<32x64xbf16>
    %cst_29 = arith.constant dense<0.000000e+00> : vector<8x64xf32>
    %33 = tpu.matmul %30, %32, %cst_29 {dimension_numbers = #tpu.dot_dimension_numbers<[1], [0], [0], [1], [0, 0, 1, 1], [], []>} : vector<8x32xbf16>, vector<32x64xbf16>, vector<8x64xf32> -> vector<8x64xf32>
    %34 = arith.addf %28, %33 : vector<8x64xf32>
    %c9 = arith.constant 9 : index
    %c0_30 = arith.constant 0 : index
    %35 = vector.load %arg10[%c9, %c0_30] : memref<24x32xf32, #tpu.memory_space<vmem>>, vector<8x32xf32>
    %36 = arith.truncf %35 : vector<8x32xf32> to vector<8x32xbf16>
    %c5_31 = arith.constant 5 : index
    %c0_32 = arith.constant 0 : index
    %c0_33 = arith.constant 0 : index
    %37 = vector.load %arg2[%c5_31, %c0_32, %c0_33] : memref<9x32x64xbf16, #tpu.memory_space<vmem>>, vector<1x32x64xbf16>
    %38 = vector.shape_cast %37 : vector<1x32x64xbf16> to vector<32x64xbf16>
    %cst_34 = arith.constant dense<0.000000e+00> : vector<8x64xf32>
    %39 = tpu.matmul %36, %38, %cst_34 {dimension_numbers = #tpu.dot_dimension_numbers<[1], [0], [0], [1], [0, 0, 1, 1], [], []>} : vector<8x32xbf16>, vector<32x64xbf16>, vector<8x64xf32> -> vector<8x64xf32>
    %40 = arith.addf %34, %39 : vector<8x64xf32>
    %c10 = arith.constant 10 : index
    %c0_35 = arith.constant 0 : index
    %41 = vector.load %arg10[%c10, %c0_35] : memref<24x32xf32, #tpu.memory_space<vmem>>, vector<8x32xf32>
    %42 = arith.truncf %41 : vector<8x32xf32> to vector<8x32xbf16>
    %c6_36 = arith.constant 6 : index
    %c0_37 = arith.constant 0 : index
    %c0_38 = arith.constant 0 : index
    %43 = vector.load %arg2[%c6_36, %c0_37, %c0_38] : memref<9x32x64xbf16, #tpu.memory_space<vmem>>, vector<1x32x64xbf16>
    %44 = vector.shape_cast %43 : vector<1x32x64xbf16> to vector<32x64xbf16>
    %cst_39 = arith.constant dense<0.000000e+00> : vector<8x64xf32>
    %45 = tpu.matmul %42, %44, %cst_39 {dimension_numbers = #tpu.dot_dimension_numbers<[1], [0], [0], [1], [0, 0, 1, 1], [], []>} : vector<8x32xbf16>, vector<32x64xbf16>, vector<8x64xf32> -> vector<8x64xf32>
    %46 = arith.addf %40, %45 : vector<8x64xf32>
    %c11 = arith.constant 11 : index
    %c0_40 = arith.constant 0 : index
    %47 = vector.load %arg10[%c11, %c0_40] : memref<24x32xf32, #tpu.memory_space<vmem>>, vector<8x32xf32>
    %48 = arith.truncf %47 : vector<8x32xf32> to vector<8x32xbf16>
    %c7_41 = arith.constant 7 : index
    %c0_42 = arith.constant 0 : index
    %c0_43 = arith.constant 0 : index
    %49 = vector.load %arg2[%c7_41, %c0_42, %c0_43] : memref<9x32x64xbf16, #tpu.memory_space<vmem>>, vector<1x32x64xbf16>
    %50 = vector.shape_cast %49 : vector<1x32x64xbf16> to vector<32x64xbf16>
    %cst_44 = arith.constant dense<0.000000e+00> : vector<8x64xf32>
    %51 = tpu.matmul %48, %50, %cst_44 {dimension_numbers = #tpu.dot_dimension_numbers<[1], [0], [0], [1], [0, 0, 1, 1], [], []>} : vector<8x32xbf16>, vector<32x64xbf16>, vector<8x64xf32> -> vector<8x64xf32>
    %52 = arith.addf %46, %51 : vector<8x64xf32>
    %c12 = arith.constant 12 : index
    %c0_45 = arith.constant 0 : index
    %53 = vector.load %arg10[%c12, %c0_45] : memref<24x32xf32, #tpu.memory_space<vmem>>, vector<8x32xf32>
    %54 = arith.truncf %53 : vector<8x32xf32> to vector<8x32xbf16>
    %c8_46 = arith.constant 8 : index
    %c0_47 = arith.constant 0 : index
    %c0_48 = arith.constant 0 : index
    %55 = vector.load %arg2[%c8_46, %c0_47, %c0_48] : memref<9x32x64xbf16, #tpu.memory_space<vmem>>, vector<1x32x64xbf16>
    %56 = vector.shape_cast %55 : vector<1x32x64xbf16> to vector<32x64xbf16>
    %cst_49 = arith.constant dense<0.000000e+00> : vector<8x64xf32>
    %57 = tpu.matmul %54, %56, %cst_49 {dimension_numbers = #tpu.dot_dimension_numbers<[1], [0], [0], [1], [0, 0, 1, 1], [], []>} : vector<8x32xbf16>, vector<32x64xbf16>, vector<8x64xf32> -> vector<8x64xf32>
    %58 = arith.addf %52, %57 : vector<8x64xf32>
    %59 = vector.broadcast %2 : vector<1x64xf32> to vector<8x64xf32>
    %60 = arith.addf %58, %59 : vector<8x64xf32>
    %cst_50 = arith.constant 0.000000e+00 : f32
    %61 = vector.broadcast %cst_50 : f32 to vector<8x64xf32>
    %62 = arith.maximumf %60, %61 : vector<8x64xf32>
    %c0_51 = arith.constant 0 : index
    %c0_52 = arith.constant 0 : index
    %63 = vector.load %arg5[%c0_51, %c0_52] : memref<1x32xf32, #tpu.memory_space<vmem>>, vector<1x32xf32>
    %64 = arith.truncf %62 : vector<8x64xf32> to vector<8x64xbf16>
    %c0_53 = arith.constant 0 : index
    %c0_54 = arith.constant 0 : index
    %c0_55 = arith.constant 0 : index
    %65 = vector.load %arg4[%c0_53, %c0_54, %c0_55] : memref<1x64x32xbf16, #tpu.memory_space<vmem>>, vector<1x64x32xbf16>
    %66 = vector.shape_cast %65 : vector<1x64x32xbf16> to vector<64x32xbf16>
    %cst_56 = arith.constant dense<0.000000e+00> : vector<8x32xf32>
    %67 = tpu.matmul %64, %66, %cst_56 {dimension_numbers = #tpu.dot_dimension_numbers<[1], [0], [0], [1], [0, 0, 1, 1], [], []>} : vector<8x64xbf16>, vector<64x32xbf16>, vector<8x32xf32> -> vector<8x32xf32>
    %68 = vector.broadcast %63 : vector<1x32xf32> to vector<8x32xf32>
    %69 = arith.addf %67, %68 : vector<8x32xf32>
    %70 = arith.addf %69, %1 : vector<8x32xf32>
    %c0_57 = arith.constant 0 : index
    %c0_58 = arith.constant 0 : index
    %71 = vector.load %arg6[%c0_57, %c0_58] : memref<1x32xf32, #tpu.memory_space<vmem>>, vector<1x32xf32>
    %c0_59 = arith.constant 0 : index
    %c0_60 = arith.constant 0 : index
    %72 = vector.load %arg7[%c0_59, %c0_60] : memref<1x32xf32, #tpu.memory_space<vmem>>, vector<1x32xf32>
    %cst_61 = arith.constant dense<0.000000e+00> : vector<8xf32>
    %73 = vector.multi_reduction <add>, %70, %cst_61 [1] : vector<8x32xf32> to vector<8xf32>
    %74 = vector.shape_cast %73 : vector<8xf32> to vector<8x1xf32>
    %cst_62 = arith.constant 3.200000e+01 : f32
    %75 = vector.broadcast %cst_62 : f32 to vector<8x1xf32>
    %76 = arith.divf %74, %75 : vector<8x1xf32>
    %77 = vector.broadcast %76 : vector<8x1xf32> to vector<8x32xf32>
    %78 = arith.subf %70, %77 : vector<8x32xf32>
    %79 = arith.mulf %78, %78 : vector<8x32xf32>
    %cst_63 = arith.constant dense<0.000000e+00> : vector<8xf32>
    %80 = vector.multi_reduction <add>, %79, %cst_63 [1] : vector<8x32xf32> to vector<8xf32>
    %81 = vector.shape_cast %80 : vector<8xf32> to vector<8x1xf32>
    %cst_64 = arith.constant 3.200000e+01 : f32
    %82 = vector.broadcast %cst_64 : f32 to vector<8x1xf32>
    %83 = arith.divf %81, %82 : vector<8x1xf32>
    %84 = vector.broadcast %76 : vector<8x1xf32> to vector<8x32xf32>
    %85 = arith.subf %70, %84 : vector<8x32xf32>
    %cst_65 = arith.constant 9.99999974E-6 : f32
    %86 = vector.broadcast %cst_65 : f32 to vector<8x1xf32>
    %87 = arith.addf %83, %86 : vector<8x1xf32>
    %88 = math.rsqrt %87 : vector<8x1xf32>
    %89 = vector.broadcast %88 : vector<8x1xf32> to vector<8x32xf32>
    %90 = arith.mulf %85, %89 : vector<8x32xf32>
    %91 = vector.broadcast %71 : vector<1x32xf32> to vector<8x32xf32>
    %92 = arith.mulf %90, %91 : vector<8x32xf32>
    %93 = vector.broadcast %72 : vector<1x32xf32> to vector<8x32xf32>
    %94 = arith.addf %92, %93 : vector<8x32xf32>
    %c0_66 = arith.constant 0 : index
    %c0_67 = arith.constant 0 : index
    %c0_68 = arith.constant 0 : index
    %95 = vector.load %arg8[%c0_66, %c0_67, %c0_68] : memref<1x8x1xf32, #tpu.memory_space<vmem>>, vector<1x8x1xf32>
    %96 = vector.shape_cast %95 : vector<1x8x1xf32> to vector<8x1xf32>
    %97 = vector.broadcast %96 : vector<8x1xf32> to vector<8x32xf32>
    %98 = arith.mulf %94, %97 : vector<8x32xf32>
    %c0_69 = arith.constant 0 : index
    %c0_70 = arith.constant 0 : index
    %c0_71 = arith.constant 0 : index
    %99 = vector.load %arg9[%c0_69, %c0_70, %c0_71] : memref<1x8x32xf32, #tpu.memory_space<vmem>>, vector<1x8x32xf32>
    %100 = vector.shape_cast %99 : vector<1x8x32xf32> to vector<8x32xf32>
    %101 = vector.shape_cast %98 : vector<8x32xf32> to vector<1x8x32xf32>
    tpu.vector_store %arg9[%c0_69, %c0_70, %c0_71], %101 {strides = array<i32>} : memref<1x8x32xf32, #tpu.memory_space<vmem>>, vector<1x8x32xf32>,
    return
  }
  func.func @transform_0(%arg0: i32) -> (i32, i32, i32) {
    %c0_i32 = arith.constant 0 : i32
    %c0_i32_0 = arith.constant 0 : i32
    %c0_i32_1 = arith.constant 0 : i32
    return %arg0, %c0_i32, %c0_i32_0 : i32, i32, i32
  }
  func.func @transform_1(%arg0: i32) -> (i32, i32, i32) {
    %c0_i32 = arith.constant 0 : i32
    %c0_i32_0 = arith.constant 0 : i32
    %c0_i32_1 = arith.constant 0 : i32
    %c0_i32_2 = arith.constant 0 : i32
    return %c0_i32, %c0_i32_0, %c0_i32_1 : i32, i32, i32
  }
  func.func @transform_2(%arg0: i32) -> (i32, i32) {
    %c0_i32 = arith.constant 0 : i32
    %c0_i32_0 = arith.constant 0 : i32
    %c0_i32_1 = arith.constant 0 : i32
    return %c0_i32, %c0_i32_0 : i32, i32
  }
  func.func @transform_3(%arg0: i32) -> (i32, i32, i32) {
    %c0_i32 = arith.constant 0 : i32
    %c0_i32_0 = arith.constant 0 : i32
    %c0_i32_1 = arith.constant 0 : i32
    %c0_i32_2 = arith.constant 0 : i32
    return %c0_i32, %c0_i32_0, %c0_i32_1 : i32, i32, i32
  }
  func.func @transform_4(%arg0: i32) -> (i32, i32) {
    %c0_i32 = arith.constant 0 : i32
    %c0_i32_0 = arith.constant 0 : i32
    %c0_i32_1 = arith.constant 0 : i32
    return %c0_i32, %c0_i32_0 : i32, i32
  }
  func.func @transform_5(%arg0: i32) -> (i32, i32) {
    %c0_i32 = arith.constant 0 : i32
    %c0_i32_0 = arith.constant 0 : i32
    %c0_i32_1 = arith.constant 0 : i32
    return %c0_i32, %c0_i32_0 : i32, i32
  }
  func.func @transform_6(%arg0: i32) -> (i32, i32) {
    %c0_i32 = arith.constant 0 : i32
    %c0_i32_0 = arith.constant 0 : i32
    %c0_i32_1 = arith.constant 0 : i32
    return %c0_i32, %c0_i32_0 : i32, i32
  }
  func.func @transform_7(%arg0: i32) -> (i32, i32, i32) {
    %c0_i32 = arith.constant 0 : i32
    %c0_i32_0 = arith.constant 0 : i32
    %c0_i32_1 = arith.constant 0 : i32
    return %arg0, %c0_i32, %c0_i32_0 : i32, i32, i32
  }
  func.func @transform_8(%arg0: i32) -> (i32, i32, i32) {
    %c0_i32 = arith.constant 0 : i32
    %c0_i32_0 = arith.constant 0 : i32
    %c0_i32_1 = arith.constant 0 : i32
    return %arg0, %c0_i32, %c0_i32_0 : i32, i32, i32
  }
}

module attributes {stable_mosaic.version = 11 : i64} {
  func.func @_attn_block_kernel(%arg0: i32, %arg1: memref<1x8x32xf32, #tpu.memory_space<vmem>>, %arg2: memref<32x96xbf16, #tpu.memory_space<vmem>>, %arg3: memref<1x96xf32, #tpu.memory_space<vmem>>, %arg4: memref<32x32xbf16, #tpu.memory_space<vmem>>, %arg5: memref<1x32xf32, #tpu.memory_space<vmem>>, %arg6: memref<1x32xf32, #tpu.memory_space<vmem>>, %arg7: memref<1x32xf32, #tpu.memory_space<vmem>>, %arg8: memref<1x1x8xf32, #tpu.memory_space<vmem>>, %arg9: memref<1x8x1xf32, #tpu.memory_space<vmem>>, %arg10: memref<1x8x32xf32, #tpu.memory_space<vmem>>) attributes {dimension_semantics = [#tpu.dimension_semantics<parallel>], iteration_bounds = array<i64: 2>, scalar_prefetch = 0 : i64, scratch_operands = 0 : i64, tpu.core_type = #tpu.core_type<tc>, window_params = [{transform_indices = @transform_0, window_bounds = array<i64: 1, 8, 32>}, {pipeline_mode = #tpu.pipeline_mode<synchronous>, transform_indices = @transform_1, window_bounds = array<i64: 32, 96>}, {pipeline_mode = #tpu.pipeline_mode<synchronous>, transform_indices = @transform_2, window_bounds = array<i64: 1, 96>}, {pipeline_mode = #tpu.pipeline_mode<synchronous>, transform_indices = @transform_3, window_bounds = array<i64: 32, 32>}, {pipeline_mode = #tpu.pipeline_mode<synchronous>, transform_indices = @transform_4, window_bounds = array<i64: 1, 32>}, {pipeline_mode = #tpu.pipeline_mode<synchronous>, transform_indices = @transform_5, window_bounds = array<i64: 1, 32>}, {pipeline_mode = #tpu.pipeline_mode<synchronous>, transform_indices = @transform_6, window_bounds = array<i64: 1, 32>}, {transform_indices = @transform_7, window_bounds = array<i64: 1, 1, 8>}, {transform_indices = @transform_8, window_bounds = array<i64: 1, 8, 1>}, {transform_indices = @transform_9, window_bounds = array<i64: 1, 8, 32>}]} {
    %c0 = arith.constant 0 : index
    %c0_0 = arith.constant 0 : index
    %c0_1 = arith.constant 0 : index
    %0 = vector.load %arg1[%c0, %c0_0, %c0_1] : memref<1x8x32xf32, #tpu.memory_space<vmem>>, vector<1x8x32xf32>
    %1 = vector.shape_cast %0 : vector<1x8x32xf32> to vector<8x32xf32>
    %2 = arith.truncf %1 : vector<8x32xf32> to vector<8x32xbf16>
    %c0_2 = arith.constant 0 : index
    %c0_3 = arith.constant 0 : index
    %3 = vector.load %arg2[%c0_2, %c0_3] : memref<32x96xbf16, #tpu.memory_space<vmem>>, vector<32x96xbf16>
    %cst = arith.constant dense<0.000000e+00> : vector<8x96xf32>
    %4 = tpu.matmul %2, %3, %cst {dimension_numbers = #tpu.dot_dimension_numbers<[1], [0], [0], [1], [0, 0, 1, 1], [], []>} : vector<8x32xbf16>, vector<32x96xbf16>, vector<8x96xf32> -> vector<8x96xf32>
    %c0_4 = arith.constant 0 : index
    %c0_5 = arith.constant 0 : index
    %5 = vector.load %arg3[%c0_4, %c0_5] : memref<1x96xf32, #tpu.memory_space<vmem>>, vector<1x96xf32>
    %6 = vector.broadcast %5 : vector<1x96xf32> to vector<8x96xf32>
    %7 = arith.addf %4, %6 : vector<8x96xf32>
    %c0_6 = arith.constant 0 : index
    %c0_7 = arith.constant 0 : index
    %8 = vector.load %arg4[%c0_6, %c0_7] : memref<32x32xbf16, #tpu.memory_space<vmem>>, vector<32x32xbf16>
    %c0_8 = arith.constant 0 : index
    %c0_9 = arith.constant 0 : index
    %c0_10 = arith.constant 0 : index
    %9 = vector.load %arg8[%c0_8, %c0_9, %c0_10] : memref<1x1x8xf32, #tpu.memory_space<vmem>>, vector<1x1x8xf32>
    %10 = vector.shape_cast %9 : vector<1x1x8xf32> to vector<1x8xf32>
    %11 = vector.extract_strided_slice %7 {offsets = [0, 0], sizes = [8, 16], strides = [1, 1]} : vector<8x96xf32> to vector<8x16xf32>
    %12 = vector.extract_strided_slice %7 {offsets = [0, 32], sizes = [8, 16], strides = [1, 1]} : vector<8x96xf32> to vector<8x16xf32>
    %13 = vector.extract_strided_slice %7 {offsets = [0, 64], sizes = [8, 16], strides = [1, 1]} : vector<8x96xf32> to vector<8x16xf32>
    %14 = arith.truncf %11 : vector<8x16xf32> to vector<8x16xbf16>
    %15 = arith.truncf %12 : vector<8x16xf32> to vector<8x16xbf16>
    %cst_11 = arith.constant dense<0.000000e+00> : vector<8x8xf32>
    %16 = tpu.matmul %14, %15, %cst_11 {dimension_numbers = #tpu.dot_dimension_numbers<[1], [1], [0], [0], [0, 0, 1, 0], [], []>} : vector<8x16xbf16>, vector<8x16xbf16>, vector<8x8xf32> -> vector<8x8xf32>
    %cst_12 = arith.constant 2.500000e-01 : f32
    %17 = vector.broadcast %cst_12 : f32 to vector<8x8xf32>
    %18 = arith.mulf %16, %17 : vector<8x8xf32>
    %cst_13 = arith.constant 5.000000e-01 : f32
    %19 = vector.broadcast %cst_13 : f32 to vector<1x8xf32>
    %20 = arith.cmpf ogt, %10, %19 : vector<1x8xf32>
    %cst_14 = arith.constant -1.000000e+09 : f32
    %21 = vector.shape_cast %20 : vector<1x8xi1> to vector<1x8xi1>
    %22 = vector.broadcast %21 : vector<1x8xi1> to vector<8x8xi1>
    %23 = vector.broadcast %cst_14 : f32 to vector<8x8xf32>
    %24 = arith.select %22, %23, %18 : vector<8x8xi1>, vector<8x8xf32>
    %cst_15 = arith.constant dense<0xFF800000> : vector<8xf32>
    %25 = vector.multi_reduction <maximumf>, %24, %cst_15 [1] : vector<8x8xf32> to vector<8xf32>
    %26 = vector.shape_cast %25 : vector<8xf32> to vector<8x1xf32>
    %27 = vector.broadcast %26 : vector<8x1xf32> to vector<8x8xf32>
    %28 = arith.subf %24, %27 : vector<8x8xf32>
    %29 = math.exp %28 : vector<8x8xf32>
    %cst_16 = arith.constant dense<0.000000e+00> : vector<8xf32>
    %30 = vector.multi_reduction <add>, %29, %cst_16 [1] : vector<8x8xf32> to vector<8xf32>
    %31 = vector.shape_cast %30 : vector<8xf32> to vector<8x1xf32>
    %32 = tpu.reciprocal %31 {approx = true} : vector<8x1xf32> -> vector<8x1xf32>
    %33 = vector.broadcast %32 : vector<8x1xf32> to vector<8x8xf32>
    %34 = arith.mulf %29, %33 : vector<8x8xf32>
    %35 = arith.truncf %34 : vector<8x8xf32> to vector<8x8xbf16>
    %36 = arith.truncf %13 : vector<8x16xf32> to vector<8x16xbf16>
    %cst_17 = arith.constant dense<0.000000e+00> : vector<8x16xf32>
    %37 = tpu.matmul %35, %36, %cst_17 {dimension_numbers = #tpu.dot_dimension_numbers<[1], [0], [0], [1], [0, 0, 1, 1], [], []>} : vector<8x8xbf16>, vector<8x16xbf16>, vector<8x16xf32> -> vector<8x16xf32>
    %38 = arith.truncf %37 : vector<8x16xf32> to vector<8x16xbf16>
    %39 = vector.extract_strided_slice %8 {offsets = [0, 0], sizes = [16, 32], strides = [1, 1]} : vector<32x32xbf16> to vector<16x32xbf16>
    %cst_18 = arith.constant dense<0.000000e+00> : vector<8x32xf32>
    %40 = tpu.matmul %38, %39, %cst_18 {dimension_numbers = #tpu.dot_dimension_numbers<[1], [0], [0], [1], [0, 0, 1, 1], [], []>} : vector<8x16xbf16>, vector<16x32xbf16>, vector<8x32xf32> -> vector<8x32xf32>
    %41 = vector.extract_strided_slice %7 {offsets = [0, 16], sizes = [8, 16], strides = [1, 1]} : vector<8x96xf32> to vector<8x16xf32>
    %42 = vector.extract_strided_slice %7 {offsets = [0, 48], sizes = [8, 16], strides = [1, 1]} : vector<8x96xf32> to vector<8x16xf32>
    %43 = vector.extract_strided_slice %7 {offsets = [0, 80], sizes = [8, 16], strides = [1, 1]} : vector<8x96xf32> to vector<8x16xf32>
    %44 = arith.truncf %41 : vector<8x16xf32> to vector<8x16xbf16>
    %45 = arith.truncf %42 : vector<8x16xf32> to vector<8x16xbf16>
    %cst_19 = arith.constant dense<0.000000e+00> : vector<8x8xf32>
    %46 = tpu.matmul %44, %45, %cst_19 {dimension_numbers = #tpu.dot_dimension_numbers<[1], [1], [0], [0], [0, 0, 1, 0], [], []>} : vector<8x16xbf16>, vector<8x16xbf16>, vector<8x8xf32> -> vector<8x8xf32>
    %cst_20 = arith.constant 2.500000e-01 : f32
    %47 = vector.broadcast %cst_20 : f32 to vector<8x8xf32>
    %48 = arith.mulf %46, %47 : vector<8x8xf32>
    %cst_21 = arith.constant 5.000000e-01 : f32
    %49 = vector.broadcast %cst_21 : f32 to vector<1x8xf32>
    %50 = arith.cmpf ogt, %10, %49 : vector<1x8xf32>
    %cst_22 = arith.constant -1.000000e+09 : f32
    %51 = vector.shape_cast %50 : vector<1x8xi1> to vector<1x8xi1>
    %52 = vector.broadcast %51 : vector<1x8xi1> to vector<8x8xi1>
    %53 = vector.broadcast %cst_22 : f32 to vector<8x8xf32>
    %54 = arith.select %52, %53, %48 : vector<8x8xi1>, vector<8x8xf32>
    %cst_23 = arith.constant dense<0xFF800000> : vector<8xf32>
    %55 = vector.multi_reduction <maximumf>, %54, %cst_23 [1] : vector<8x8xf32> to vector<8xf32>
    %56 = vector.shape_cast %55 : vector<8xf32> to vector<8x1xf32>
    %57 = vector.broadcast %56 : vector<8x1xf32> to vector<8x8xf32>
    %58 = arith.subf %54, %57 : vector<8x8xf32>
    %59 = math.exp %58 : vector<8x8xf32>
    %cst_24 = arith.constant dense<0.000000e+00> : vector<8xf32>
    %60 = vector.multi_reduction <add>, %59, %cst_24 [1] : vector<8x8xf32> to vector<8xf32>
    %61 = vector.shape_cast %60 : vector<8xf32> to vector<8x1xf32>
    %62 = tpu.reciprocal %61 {approx = true} : vector<8x1xf32> -> vector<8x1xf32>
    %63 = vector.broadcast %62 : vector<8x1xf32> to vector<8x8xf32>
    %64 = arith.mulf %59, %63 : vector<8x8xf32>
    %65 = arith.truncf %64 : vector<8x8xf32> to vector<8x8xbf16>
    %66 = arith.truncf %43 : vector<8x16xf32> to vector<8x16xbf16>
    %cst_25 = arith.constant dense<0.000000e+00> : vector<8x16xf32>
    %67 = tpu.matmul %65, %66, %cst_25 {dimension_numbers = #tpu.dot_dimension_numbers<[1], [0], [0], [1], [0, 0, 1, 1], [], []>} : vector<8x8xbf16>, vector<8x16xbf16>, vector<8x16xf32> -> vector<8x16xf32>
    %68 = arith.truncf %67 : vector<8x16xf32> to vector<8x16xbf16>
    %69 = vector.extract_strided_slice %8 {offsets = [16, 0], sizes = [16, 32], strides = [1, 1]} : vector<32x32xbf16> to vector<16x32xbf16>
    %cst_26 = arith.constant dense<0.000000e+00> : vector<8x32xf32>
    %70 = tpu.matmul %68, %69, %cst_26 {dimension_numbers = #tpu.dot_dimension_numbers<[1], [0], [0], [1], [0, 0, 1, 1], [], []>} : vector<8x16xbf16>, vector<16x32xbf16>, vector<8x32xf32> -> vector<8x32xf32>
    %71 = arith.addf %40, %70 : vector<8x32xf32>
    %c0_27 = arith.constant 0 : index
    %c0_28 = arith.constant 0 : index
    %72 = vector.load %arg5[%c0_27, %c0_28] : memref<1x32xf32, #tpu.memory_space<vmem>>, vector<1x32xf32>
    %73 = vector.broadcast %72 : vector<1x32xf32> to vector<8x32xf32>
    %74 = arith.addf %71, %73 : vector<8x32xf32>
    %75 = arith.addf %74, %1 : vector<8x32xf32>
    %c0_29 = arith.constant 0 : index
    %c0_30 = arith.constant 0 : index
    %76 = vector.load %arg6[%c0_29, %c0_30] : memref<1x32xf32, #tpu.memory_space<vmem>>, vector<1x32xf32>
    %c0_31 = arith.constant 0 : index
    %c0_32 = arith.constant 0 : index
    %77 = vector.load %arg7[%c0_31, %c0_32] : memref<1x32xf32, #tpu.memory_space<vmem>>, vector<1x32xf32>
    %cst_33 = arith.constant dense<0.000000e+00> : vector<8xf32>
    %78 = vector.multi_reduction <add>, %75, %cst_33 [1] : vector<8x32xf32> to vector<8xf32>
    %79 = vector.shape_cast %78 : vector<8xf32> to vector<8x1xf32>
    %cst_34 = arith.constant 3.200000e+01 : f32
    %80 = vector.broadcast %cst_34 : f32 to vector<8x1xf32>
    %81 = arith.divf %79, %80 : vector<8x1xf32>
    %82 = vector.broadcast %81 : vector<8x1xf32> to vector<8x32xf32>
    %83 = arith.subf %75, %82 : vector<8x32xf32>
    %84 = arith.mulf %83, %83 : vector<8x32xf32>
    %cst_35 = arith.constant dense<0.000000e+00> : vector<8xf32>
    %85 = vector.multi_reduction <add>, %84, %cst_35 [1] : vector<8x32xf32> to vector<8xf32>
    %86 = vector.shape_cast %85 : vector<8xf32> to vector<8x1xf32>
    %cst_36 = arith.constant 3.200000e+01 : f32
    %87 = vector.broadcast %cst_36 : f32 to vector<8x1xf32>
    %88 = arith.divf %86, %87 : vector<8x1xf32>
    %89 = vector.broadcast %81 : vector<8x1xf32> to vector<8x32xf32>
    %90 = arith.subf %75, %89 : vector<8x32xf32>
    %cst_37 = arith.constant 9.99999974E-6 : f32
    %91 = vector.broadcast %cst_37 : f32 to vector<8x1xf32>
    %92 = arith.addf %88, %91 : vector<8x1xf32>
    %93 = math.rsqrt %92 : vector<8x1xf32>
    %94 = vector.broadcast %93 : vector<8x1xf32> to vector<8x32xf32>
    %95 = arith.mulf %90, %94 : vector<8x32xf32>
    %96 = vector.broadcast %76 : vector<1x32xf32> to vector<8x32xf32>
    %97 = arith.mulf %95, %96 : vector<8x32xf32>
    %98 = vector.broadcast %77 : vector<1x32xf32> to vector<8x32xf32>
    %99 = arith.addf %97, %98 : vector<8x32xf32>
    %c0_38 = arith.constant 0 : index
    %c0_39 = arith.constant 0 : index
    %c0_40 = arith.constant 0 : index
    %100 = vector.load %arg9[%c0_38, %c0_39, %c0_40] : memref<1x8x1xf32, #tpu.memory_space<vmem>>, vector<1x8x1xf32>
    %101 = vector.shape_cast %100 : vector<1x8x1xf32> to vector<8x1xf32>
    %102 = vector.broadcast %101 : vector<8x1xf32> to vector<8x32xf32>
    %103 = arith.mulf %99, %102 : vector<8x32xf32>
    %c0_41 = arith.constant 0 : index
    %c0_42 = arith.constant 0 : index
    %c0_43 = arith.constant 0 : index
    %104 = vector.load %arg10[%c0_41, %c0_42, %c0_43] : memref<1x8x32xf32, #tpu.memory_space<vmem>>, vector<1x8x32xf32>
    %105 = vector.shape_cast %104 : vector<1x8x32xf32> to vector<8x32xf32>
    %106 = vector.shape_cast %103 : vector<8x32xf32> to vector<1x8x32xf32>
    tpu.vector_store %arg10[%c0_41, %c0_42, %c0_43], %106 {strides = array<i32>} : memref<1x8x32xf32, #tpu.memory_space<vmem>>, vector<1x8x32xf32>,
    return
  }
  func.func @transform_0(%arg0: i32) -> (i32, i32, i32) {
    %c0_i32 = arith.constant 0 : i32
    %c0_i32_0 = arith.constant 0 : i32
    %c0_i32_1 = arith.constant 0 : i32
    return %arg0, %c0_i32, %c0_i32_0 : i32, i32, i32
  }
  func.func @transform_1(%arg0: i32) -> (i32, i32) {
    %c0_i32 = arith.constant 0 : i32
    %c0_i32_0 = arith.constant 0 : i32
    %c0_i32_1 = arith.constant 0 : i32
    return %c0_i32, %c0_i32_0 : i32, i32
  }
  func.func @transform_2(%arg0: i32) -> (i32, i32) {
    %c0_i32 = arith.constant 0 : i32
    %c0_i32_0 = arith.constant 0 : i32
    %c0_i32_1 = arith.constant 0 : i32
    return %c0_i32, %c0_i32_0 : i32, i32
  }
  func.func @transform_3(%arg0: i32) -> (i32, i32) {
    %c0_i32 = arith.constant 0 : i32
    %c0_i32_0 = arith.constant 0 : i32
    %c0_i32_1 = arith.constant 0 : i32
    return %c0_i32, %c0_i32_0 : i32, i32
  }
  func.func @transform_4(%arg0: i32) -> (i32, i32) {
    %c0_i32 = arith.constant 0 : i32
    %c0_i32_0 = arith.constant 0 : i32
    %c0_i32_1 = arith.constant 0 : i32
    return %c0_i32, %c0_i32_0 : i32, i32
  }
  func.func @transform_5(%arg0: i32) -> (i32, i32) {
    %c0_i32 = arith.constant 0 : i32
    %c0_i32_0 = arith.constant 0 : i32
    %c0_i32_1 = arith.constant 0 : i32
    return %c0_i32, %c0_i32_0 : i32, i32
  }
  func.func @transform_6(%arg0: i32) -> (i32, i32) {
    %c0_i32 = arith.constant 0 : i32
    %c0_i32_0 = arith.constant 0 : i32
    %c0_i32_1 = arith.constant 0 : i32
    return %c0_i32, %c0_i32_0 : i32, i32
  }
  func.func @transform_7(%arg0: i32) -> (i32, i32, i32) {
    %c0_i32 = arith.constant 0 : i32
    %c0_i32_0 = arith.constant 0 : i32
    %c0_i32_1 = arith.constant 0 : i32
    return %arg0, %c0_i32, %c0_i32_0 : i32, i32, i32
  }
  func.func @transform_8(%arg0: i32) -> (i32, i32, i32) {
    %c0_i32 = arith.constant 0 : i32
    %c0_i32_0 = arith.constant 0 : i32
    %c0_i32_1 = arith.constant 0 : i32
    return %arg0, %c0_i32, %c0_i32_0 : i32, i32, i32
  }
  func.func @transform_9(%arg0: i32) -> (i32, i32, i32) {
    %c0_i32 = arith.constant 0 : i32
    %c0_i32_0 = arith.constant 0 : i32
    %c0_i32_1 = arith.constant 0 : i32
    return %arg0, %c0_i32, %c0_i32_0 : i32, i32, i32
  }
}

module attributes {stable_mosaic.version = 11 : i64} {
  func.func @_ffn_block_kernel(%arg0: i32, %arg1: memref<1x16x32xf32, #tpu.memory_space<vmem>>, %arg2: memref<9x32x64xbf16, #tpu.memory_space<vmem>>, %arg3: memref<1x64xf32, #tpu.memory_space<vmem>>, %arg4: memref<1x64x32xbf16, #tpu.memory_space<vmem>>, %arg5: memref<1x32xf32, #tpu.memory_space<vmem>>, %arg6: memref<1x32xf32, #tpu.memory_space<vmem>>, %arg7: memref<1x32xf32, #tpu.memory_space<vmem>>, %arg8: memref<1x16x1xf32, #tpu.memory_space<vmem>>, %arg9: memref<1x16x32xf32, #tpu.memory_space<vmem>>, %arg10: memref<32x32xf32, #tpu.memory_space<vmem>>) attributes {dimension_semantics = [#tpu.dimension_semantics<parallel>], iteration_bounds = array<i64: 2>, scalar_prefetch = 0 : i64, scratch_operands = 1 : i64, tpu.core_type = #tpu.core_type<tc>, window_params = [{transform_indices = @transform_0, window_bounds = array<i64: 1, 16, 32>}, {pipeline_mode = #tpu.pipeline_mode<synchronous>, transform_indices = @transform_1, window_bounds = array<i64: 9, 32, 64>}, {pipeline_mode = #tpu.pipeline_mode<synchronous>, transform_indices = @transform_2, window_bounds = array<i64: 1, 64>}, {pipeline_mode = #tpu.pipeline_mode<synchronous>, transform_indices = @transform_3, window_bounds = array<i64: 1, 64, 32>}, {pipeline_mode = #tpu.pipeline_mode<synchronous>, transform_indices = @transform_4, window_bounds = array<i64: 1, 32>}, {pipeline_mode = #tpu.pipeline_mode<synchronous>, transform_indices = @transform_5, window_bounds = array<i64: 1, 32>}, {pipeline_mode = #tpu.pipeline_mode<synchronous>, transform_indices = @transform_6, window_bounds = array<i64: 1, 32>}, {transform_indices = @transform_7, window_bounds = array<i64: 1, 16, 1>}, {transform_indices = @transform_8, window_bounds = array<i64: 1, 16, 32>}]} {
    %c0 = arith.constant 0 : index
    %c0_0 = arith.constant 0 : index
    %c0_1 = arith.constant 0 : index
    %0 = vector.load %arg1[%c0, %c0_0, %c0_1] : memref<1x16x32xf32, #tpu.memory_space<vmem>>, vector<1x16x32xf32>
    %1 = vector.shape_cast %0 : vector<1x16x32xf32> to vector<16x32xf32>
    %c0_2 = arith.constant 0 : index
    %c0_3 = arith.constant 0 : index
    %2 = vector.load %arg3[%c0_2, %c0_3] : memref<1x64xf32, #tpu.memory_space<vmem>>, vector<1x64xf32>
    %cst = arith.constant 0.000000e+00 : f32
    %3 = vector.broadcast %cst : f32 to vector<32x32xf32>
    %c0_4 = arith.constant 0 : index
    %c0_5 = arith.constant 0 : index
    %4 = vector.load %arg10[%c0_4, %c0_5] : memref<32x32xf32, #tpu.memory_space<vmem>>, vector<32x32xf32>
    tpu.vector_store %arg10[%c0_4, %c0_5], %3 {strides = array<i32>} : memref<32x32xf32, #tpu.memory_space<vmem>>, vector<32x32xf32>,
    %c8 = arith.constant 8 : index
    %c0_6 = arith.constant 0 : index
    %5 = vector.load %arg10[%c8, %c0_6] : memref<32x32xf32, #tpu.memory_space<vmem>>, vector<16x32xf32>
    tpu.vector_store %arg10[%c8, %c0_6], %1 {strides = array<i32>} : memref<32x32xf32, #tpu.memory_space<vmem>>, vector<16x32xf32>,
    %c4 = arith.constant 4 : index
    %c0_7 = arith.constant 0 : index
    %6 = vector.load %arg10[%c4, %c0_7] : memref<32x32xf32, #tpu.memory_space<vmem>>, vector<16x32xf32>
    %7 = arith.truncf %6 : vector<16x32xf32> to vector<16x32xbf16>
    %c0_8 = arith.constant 0 : index
    %c0_9 = arith.constant 0 : index
    %c0_10 = arith.constant 0 : index
    %8 = vector.load %arg2[%c0_8, %c0_9, %c0_10] : memref<9x32x64xbf16, #tpu.memory_space<vmem>>, vector<1x32x64xbf16>
    %9 = vector.shape_cast %8 : vector<1x32x64xbf16> to vector<32x64xbf16>
    %cst_11 = arith.constant dense<0.000000e+00> : vector<16x64xf32>
    %10 = tpu.matmul %7, %9, %cst_11 {dimension_numbers = #tpu.dot_dimension_numbers<[1], [0], [0], [1], [0, 0, 1, 1], [], []>} : vector<16x32xbf16>, vector<32x64xbf16>, vector<16x64xf32> -> vector<16x64xf32>
    %c5 = arith.constant 5 : index
    %c0_12 = arith.constant 0 : index
    %11 = vector.load %arg10[%c5, %c0_12] : memref<32x32xf32, #tpu.memory_space<vmem>>, vector<16x32xf32>
    %12 = arith.truncf %11 : vector<16x32xf32> to vector<16x32xbf16>
    %c1 = arith.constant 1 : index
    %c0_13 = arith.constant 0 : index
    %c0_14 = arith.constant 0 : index
    %13 = vector.load %arg2[%c1, %c0_13, %c0_14] : memref<9x32x64xbf16, #tpu.memory_space<vmem>>, vector<1x32x64xbf16>
    %14 = vector.shape_cast %13 : vector<1x32x64xbf16> to vector<32x64xbf16>
    %cst_15 = arith.constant dense<0.000000e+00> : vector<16x64xf32>
    %15 = tpu.matmul %12, %14, %cst_15 {dimension_numbers = #tpu.dot_dimension_numbers<[1], [0], [0], [1], [0, 0, 1, 1], [], []>} : vector<16x32xbf16>, vector<32x64xbf16>, vector<16x64xf32> -> vector<16x64xf32>
    %16 = arith.addf %10, %15 : vector<16x64xf32>
    %c6 = arith.constant 6 : index
    %c0_16 = arith.constant 0 : index
    %17 = vector.load %arg10[%c6, %c0_16] : memref<32x32xf32, #tpu.memory_space<vmem>>, vector<16x32xf32>
    %18 = arith.truncf %17 : vector<16x32xf32> to vector<16x32xbf16>
    %c2 = arith.constant 2 : index
    %c0_17 = arith.constant 0 : index
    %c0_18 = arith.constant 0 : index
    %19 = vector.load %arg2[%c2, %c0_17, %c0_18] : memref<9x32x64xbf16, #tpu.memory_space<vmem>>, vector<1x32x64xbf16>
    %20 = vector.shape_cast %19 : vector<1x32x64xbf16> to vector<32x64xbf16>
    %cst_19 = arith.constant dense<0.000000e+00> : vector<16x64xf32>
    %21 = tpu.matmul %18, %20, %cst_19 {dimension_numbers = #tpu.dot_dimension_numbers<[1], [0], [0], [1], [0, 0, 1, 1], [], []>} : vector<16x32xbf16>, vector<32x64xbf16>, vector<16x64xf32> -> vector<16x64xf32>
    %22 = arith.addf %16, %21 : vector<16x64xf32>
    %c7 = arith.constant 7 : index
    %c0_20 = arith.constant 0 : index
    %23 = vector.load %arg10[%c7, %c0_20] : memref<32x32xf32, #tpu.memory_space<vmem>>, vector<16x32xf32>
    %24 = arith.truncf %23 : vector<16x32xf32> to vector<16x32xbf16>
    %c3 = arith.constant 3 : index
    %c0_21 = arith.constant 0 : index
    %c0_22 = arith.constant 0 : index
    %25 = vector.load %arg2[%c3, %c0_21, %c0_22] : memref<9x32x64xbf16, #tpu.memory_space<vmem>>, vector<1x32x64xbf16>
    %26 = vector.shape_cast %25 : vector<1x32x64xbf16> to vector<32x64xbf16>
    %cst_23 = arith.constant dense<0.000000e+00> : vector<16x64xf32>
    %27 = tpu.matmul %24, %26, %cst_23 {dimension_numbers = #tpu.dot_dimension_numbers<[1], [0], [0], [1], [0, 0, 1, 1], [], []>} : vector<16x32xbf16>, vector<32x64xbf16>, vector<16x64xf32> -> vector<16x64xf32>
    %28 = arith.addf %22, %27 : vector<16x64xf32>
    %c8_24 = arith.constant 8 : index
    %c0_25 = arith.constant 0 : index
    %29 = vector.load %arg10[%c8_24, %c0_25] : memref<32x32xf32, #tpu.memory_space<vmem>>, vector<16x32xf32>
    %30 = arith.truncf %29 : vector<16x32xf32> to vector<16x32xbf16>
    %c4_26 = arith.constant 4 : index
    %c0_27 = arith.constant 0 : index
    %c0_28 = arith.constant 0 : index
    %31 = vector.load %arg2[%c4_26, %c0_27, %c0_28] : memref<9x32x64xbf16, #tpu.memory_space<vmem>>, vector<1x32x64xbf16>
    %32 = vector.shape_cast %31 : vector<1x32x64xbf16> to vector<32x64xbf16>
    %cst_29 = arith.constant dense<0.000000e+00> : vector<16x64xf32>
    %33 = tpu.matmul %30, %32, %cst_29 {dimension_numbers = #tpu.dot_dimension_numbers<[1], [0], [0], [1], [0, 0, 1, 1], [], []>} : vector<16x32xbf16>, vector<32x64xbf16>, vector<16x64xf32> -> vector<16x64xf32>
    %34 = arith.addf %28, %33 : vector<16x64xf32>
    %c9 = arith.constant 9 : index
    %c0_30 = arith.constant 0 : index
    %35 = vector.load %arg10[%c9, %c0_30] : memref<32x32xf32, #tpu.memory_space<vmem>>, vector<16x32xf32>
    %36 = arith.truncf %35 : vector<16x32xf32> to vector<16x32xbf16>
    %c5_31 = arith.constant 5 : index
    %c0_32 = arith.constant 0 : index
    %c0_33 = arith.constant 0 : index
    %37 = vector.load %arg2[%c5_31, %c0_32, %c0_33] : memref<9x32x64xbf16, #tpu.memory_space<vmem>>, vector<1x32x64xbf16>
    %38 = vector.shape_cast %37 : vector<1x32x64xbf16> to vector<32x64xbf16>
    %cst_34 = arith.constant dense<0.000000e+00> : vector<16x64xf32>
    %39 = tpu.matmul %36, %38, %cst_34 {dimension_numbers = #tpu.dot_dimension_numbers<[1], [0], [0], [1], [0, 0, 1, 1], [], []>} : vector<16x32xbf16>, vector<32x64xbf16>, vector<16x64xf32> -> vector<16x64xf32>
    %40 = arith.addf %34, %39 : vector<16x64xf32>
    %c10 = arith.constant 10 : index
    %c0_35 = arith.constant 0 : index
    %41 = vector.load %arg10[%c10, %c0_35] : memref<32x32xf32, #tpu.memory_space<vmem>>, vector<16x32xf32>
    %42 = arith.truncf %41 : vector<16x32xf32> to vector<16x32xbf16>
    %c6_36 = arith.constant 6 : index
    %c0_37 = arith.constant 0 : index
    %c0_38 = arith.constant 0 : index
    %43 = vector.load %arg2[%c6_36, %c0_37, %c0_38] : memref<9x32x64xbf16, #tpu.memory_space<vmem>>, vector<1x32x64xbf16>
    %44 = vector.shape_cast %43 : vector<1x32x64xbf16> to vector<32x64xbf16>
    %cst_39 = arith.constant dense<0.000000e+00> : vector<16x64xf32>
    %45 = tpu.matmul %42, %44, %cst_39 {dimension_numbers = #tpu.dot_dimension_numbers<[1], [0], [0], [1], [0, 0, 1, 1], [], []>} : vector<16x32xbf16>, vector<32x64xbf16>, vector<16x64xf32> -> vector<16x64xf32>
    %46 = arith.addf %40, %45 : vector<16x64xf32>
    %c11 = arith.constant 11 : index
    %c0_40 = arith.constant 0 : index
    %47 = vector.load %arg10[%c11, %c0_40] : memref<32x32xf32, #tpu.memory_space<vmem>>, vector<16x32xf32>
    %48 = arith.truncf %47 : vector<16x32xf32> to vector<16x32xbf16>
    %c7_41 = arith.constant 7 : index
    %c0_42 = arith.constant 0 : index
    %c0_43 = arith.constant 0 : index
    %49 = vector.load %arg2[%c7_41, %c0_42, %c0_43] : memref<9x32x64xbf16, #tpu.memory_space<vmem>>, vector<1x32x64xbf16>
    %50 = vector.shape_cast %49 : vector<1x32x64xbf16> to vector<32x64xbf16>
    %cst_44 = arith.constant dense<0.000000e+00> : vector<16x64xf32>
    %51 = tpu.matmul %48, %50, %cst_44 {dimension_numbers = #tpu.dot_dimension_numbers<[1], [0], [0], [1], [0, 0, 1, 1], [], []>} : vector<16x32xbf16>, vector<32x64xbf16>, vector<16x64xf32> -> vector<16x64xf32>
    %52 = arith.addf %46, %51 : vector<16x64xf32>
    %c12 = arith.constant 12 : index
    %c0_45 = arith.constant 0 : index
    %53 = vector.load %arg10[%c12, %c0_45] : memref<32x32xf32, #tpu.memory_space<vmem>>, vector<16x32xf32>
    %54 = arith.truncf %53 : vector<16x32xf32> to vector<16x32xbf16>
    %c8_46 = arith.constant 8 : index
    %c0_47 = arith.constant 0 : index
    %c0_48 = arith.constant 0 : index
    %55 = vector.load %arg2[%c8_46, %c0_47, %c0_48] : memref<9x32x64xbf16, #tpu.memory_space<vmem>>, vector<1x32x64xbf16>
    %56 = vector.shape_cast %55 : vector<1x32x64xbf16> to vector<32x64xbf16>
    %cst_49 = arith.constant dense<0.000000e+00> : vector<16x64xf32>
    %57 = tpu.matmul %54, %56, %cst_49 {dimension_numbers = #tpu.dot_dimension_numbers<[1], [0], [0], [1], [0, 0, 1, 1], [], []>} : vector<16x32xbf16>, vector<32x64xbf16>, vector<16x64xf32> -> vector<16x64xf32>
    %58 = arith.addf %52, %57 : vector<16x64xf32>
    %59 = vector.broadcast %2 : vector<1x64xf32> to vector<16x64xf32>
    %60 = arith.addf %58, %59 : vector<16x64xf32>
    %cst_50 = arith.constant 0.000000e+00 : f32
    %61 = vector.broadcast %cst_50 : f32 to vector<16x64xf32>
    %62 = arith.maximumf %60, %61 : vector<16x64xf32>
    %c0_51 = arith.constant 0 : index
    %c0_52 = arith.constant 0 : index
    %63 = vector.load %arg5[%c0_51, %c0_52] : memref<1x32xf32, #tpu.memory_space<vmem>>, vector<1x32xf32>
    %64 = arith.truncf %62 : vector<16x64xf32> to vector<16x64xbf16>
    %c0_53 = arith.constant 0 : index
    %c0_54 = arith.constant 0 : index
    %c0_55 = arith.constant 0 : index
    %65 = vector.load %arg4[%c0_53, %c0_54, %c0_55] : memref<1x64x32xbf16, #tpu.memory_space<vmem>>, vector<1x64x32xbf16>
    %66 = vector.shape_cast %65 : vector<1x64x32xbf16> to vector<64x32xbf16>
    %cst_56 = arith.constant dense<0.000000e+00> : vector<16x32xf32>
    %67 = tpu.matmul %64, %66, %cst_56 {dimension_numbers = #tpu.dot_dimension_numbers<[1], [0], [0], [1], [0, 0, 1, 1], [], []>} : vector<16x64xbf16>, vector<64x32xbf16>, vector<16x32xf32> -> vector<16x32xf32>
    %68 = vector.broadcast %63 : vector<1x32xf32> to vector<16x32xf32>
    %69 = arith.addf %67, %68 : vector<16x32xf32>
    %70 = arith.addf %69, %1 : vector<16x32xf32>
    %c0_57 = arith.constant 0 : index
    %c0_58 = arith.constant 0 : index
    %71 = vector.load %arg6[%c0_57, %c0_58] : memref<1x32xf32, #tpu.memory_space<vmem>>, vector<1x32xf32>
    %c0_59 = arith.constant 0 : index
    %c0_60 = arith.constant 0 : index
    %72 = vector.load %arg7[%c0_59, %c0_60] : memref<1x32xf32, #tpu.memory_space<vmem>>, vector<1x32xf32>
    %cst_61 = arith.constant dense<0.000000e+00> : vector<16xf32>
    %73 = vector.multi_reduction <add>, %70, %cst_61 [1] : vector<16x32xf32> to vector<16xf32>
    %74 = vector.shape_cast %73 : vector<16xf32> to vector<16x1xf32>
    %cst_62 = arith.constant 3.200000e+01 : f32
    %75 = vector.broadcast %cst_62 : f32 to vector<16x1xf32>
    %76 = arith.divf %74, %75 : vector<16x1xf32>
    %77 = vector.broadcast %76 : vector<16x1xf32> to vector<16x32xf32>
    %78 = arith.subf %70, %77 : vector<16x32xf32>
    %79 = arith.mulf %78, %78 : vector<16x32xf32>
    %cst_63 = arith.constant dense<0.000000e+00> : vector<16xf32>
    %80 = vector.multi_reduction <add>, %79, %cst_63 [1] : vector<16x32xf32> to vector<16xf32>
    %81 = vector.shape_cast %80 : vector<16xf32> to vector<16x1xf32>
    %cst_64 = arith.constant 3.200000e+01 : f32
    %82 = vector.broadcast %cst_64 : f32 to vector<16x1xf32>
    %83 = arith.divf %81, %82 : vector<16x1xf32>
    %84 = vector.broadcast %76 : vector<16x1xf32> to vector<16x32xf32>
    %85 = arith.subf %70, %84 : vector<16x32xf32>
    %cst_65 = arith.constant 9.99999974E-6 : f32
    %86 = vector.broadcast %cst_65 : f32 to vector<16x1xf32>
    %87 = arith.addf %83, %86 : vector<16x1xf32>
    %88 = math.rsqrt %87 : vector<16x1xf32>
    %89 = vector.broadcast %88 : vector<16x1xf32> to vector<16x32xf32>
    %90 = arith.mulf %85, %89 : vector<16x32xf32>
    %91 = vector.broadcast %71 : vector<1x32xf32> to vector<16x32xf32>
    %92 = arith.mulf %90, %91 : vector<16x32xf32>
    %93 = vector.broadcast %72 : vector<1x32xf32> to vector<16x32xf32>
    %94 = arith.addf %92, %93 : vector<16x32xf32>
    %c0_66 = arith.constant 0 : index
    %c0_67 = arith.constant 0 : index
    %c0_68 = arith.constant 0 : index
    %95 = vector.load %arg8[%c0_66, %c0_67, %c0_68] : memref<1x16x1xf32, #tpu.memory_space<vmem>>, vector<1x16x1xf32>
    %96 = vector.shape_cast %95 : vector<1x16x1xf32> to vector<16x1xf32>
    %97 = vector.broadcast %96 : vector<16x1xf32> to vector<16x32xf32>
    %98 = arith.mulf %94, %97 : vector<16x32xf32>
    %c0_69 = arith.constant 0 : index
    %c0_70 = arith.constant 0 : index
    %c0_71 = arith.constant 0 : index
    %99 = vector.load %arg9[%c0_69, %c0_70, %c0_71] : memref<1x16x32xf32, #tpu.memory_space<vmem>>, vector<1x16x32xf32>
    %100 = vector.shape_cast %99 : vector<1x16x32xf32> to vector<16x32xf32>
    %101 = vector.shape_cast %98 : vector<16x32xf32> to vector<1x16x32xf32>
    tpu.vector_store %arg9[%c0_69, %c0_70, %c0_71], %101 {strides = array<i32>} : memref<1x16x32xf32, #tpu.memory_space<vmem>>, vector<1x16x32xf32>,
    return
  }
  func.func @transform_0(%arg0: i32) -> (i32, i32, i32) {
    %c0_i32 = arith.constant 0 : i32
    %c0_i32_0 = arith.constant 0 : i32
    %c0_i32_1 = arith.constant 0 : i32
    return %arg0, %c0_i32, %c0_i32_0 : i32, i32, i32
  }
  func.func @transform_1(%arg0: i32) -> (i32, i32, i32) {
    %c0_i32 = arith.constant 0 : i32
    %c0_i32_0 = arith.constant 0 : i32
    %c0_i32_1 = arith.constant 0 : i32
    %c0_i32_2 = arith.constant 0 : i32
    return %c0_i32, %c0_i32_0, %c0_i32_1 : i32, i32, i32
  }
  func.func @transform_2(%arg0: i32) -> (i32, i32) {
    %c0_i32 = arith.constant 0 : i32
    %c0_i32_0 = arith.constant 0 : i32
    %c0_i32_1 = arith.constant 0 : i32
    return %c0_i32, %c0_i32_0 : i32, i32
  }
  func.func @transform_3(%arg0: i32) -> (i32, i32, i32) {
    %c0_i32 = arith.constant 0 : i32
    %c0_i32_0 = arith.constant 0 : i32
    %c0_i32_1 = arith.constant 0 : i32
    %c0_i32_2 = arith.constant 0 : i32
    return %c0_i32, %c0_i32_0, %c0_i32_1 : i32, i32, i32
  }
  func.func @transform_4(%arg0: i32) -> (i32, i32) {
    %c0_i32 = arith.constant 0 : i32
    %c0_i32_0 = arith.constant 0 : i32
    %c0_i32_1 = arith.constant 0 : i32
    return %c0_i32, %c0_i32_0 : i32, i32
  }
  func.func @transform_5(%arg0: i32) -> (i32, i32) {
    %c0_i32 = arith.constant 0 : i32
    %c0_i32_0 = arith.constant 0 : i32
    %c0_i32_1 = arith.constant 0 : i32
    return %c0_i32, %c0_i32_0 : i32, i32
  }
  func.func @transform_6(%arg0: i32) -> (i32, i32) {
    %c0_i32 = arith.constant 0 : i32
    %c0_i32_0 = arith.constant 0 : i32
    %c0_i32_1 = arith.constant 0 : i32
    return %c0_i32, %c0_i32_0 : i32, i32
  }
  func.func @transform_7(%arg0: i32) -> (i32, i32, i32) {
    %c0_i32 = arith.constant 0 : i32
    %c0_i32_0 = arith.constant 0 : i32
    %c0_i32_1 = arith.constant 0 : i32
    return %arg0, %c0_i32, %c0_i32_0 : i32, i32, i32
  }
  func.func @transform_8(%arg0: i32) -> (i32, i32, i32) {
    %c0_i32 = arith.constant 0 : i32
    %c0_i32_0 = arith.constant 0 : i32
    %c0_i32_1 = arith.constant 0 : i32
    return %arg0, %c0_i32, %c0_i32_0 : i32, i32, i32
  }
}

module attributes {stable_mosaic.version = 11 : i64} {
  func.func @_attn_block_kernel(%arg0: i32, %arg1: memref<1x16x32xf32, #tpu.memory_space<vmem>>, %arg2: memref<32x96xbf16, #tpu.memory_space<vmem>>, %arg3: memref<1x96xf32, #tpu.memory_space<vmem>>, %arg4: memref<32x32xbf16, #tpu.memory_space<vmem>>, %arg5: memref<1x32xf32, #tpu.memory_space<vmem>>, %arg6: memref<1x32xf32, #tpu.memory_space<vmem>>, %arg7: memref<1x32xf32, #tpu.memory_space<vmem>>, %arg8: memref<1x1x16xf32, #tpu.memory_space<vmem>>, %arg9: memref<1x16x1xf32, #tpu.memory_space<vmem>>, %arg10: memref<1x16x32xf32, #tpu.memory_space<vmem>>) attributes {dimension_semantics = [#tpu.dimension_semantics<parallel>], iteration_bounds = array<i64: 2>, scalar_prefetch = 0 : i64, scratch_operands = 0 : i64, tpu.core_type = #tpu.core_type<tc>, window_params = [{transform_indices = @transform_0, window_bounds = array<i64: 1, 16, 32>}, {pipeline_mode = #tpu.pipeline_mode<synchronous>, transform_indices = @transform_1, window_bounds = array<i64: 32, 96>}, {pipeline_mode = #tpu.pipeline_mode<synchronous>, transform_indices = @transform_2, window_bounds = array<i64: 1, 96>}, {pipeline_mode = #tpu.pipeline_mode<synchronous>, transform_indices = @transform_3, window_bounds = array<i64: 32, 32>}, {pipeline_mode = #tpu.pipeline_mode<synchronous>, transform_indices = @transform_4, window_bounds = array<i64: 1, 32>}, {pipeline_mode = #tpu.pipeline_mode<synchronous>, transform_indices = @transform_5, window_bounds = array<i64: 1, 32>}, {pipeline_mode = #tpu.pipeline_mode<synchronous>, transform_indices = @transform_6, window_bounds = array<i64: 1, 32>}, {transform_indices = @transform_7, window_bounds = array<i64: 1, 1, 16>}, {transform_indices = @transform_8, window_bounds = array<i64: 1, 16, 1>}, {transform_indices = @transform_9, window_bounds = array<i64: 1, 16, 32>}]} {
    %c0 = arith.constant 0 : index
    %c0_0 = arith.constant 0 : index
    %c0_1 = arith.constant 0 : index
    %0 = vector.load %arg1[%c0, %c0_0, %c0_1] : memref<1x16x32xf32, #tpu.memory_space<vmem>>, vector<1x16x32xf32>
    %1 = vector.shape_cast %0 : vector<1x16x32xf32> to vector<16x32xf32>
    %2 = arith.truncf %1 : vector<16x32xf32> to vector<16x32xbf16>
    %c0_2 = arith.constant 0 : index
    %c0_3 = arith.constant 0 : index
    %3 = vector.load %arg2[%c0_2, %c0_3] : memref<32x96xbf16, #tpu.memory_space<vmem>>, vector<32x96xbf16>
    %cst = arith.constant dense<0.000000e+00> : vector<16x96xf32>
    %4 = tpu.matmul %2, %3, %cst {dimension_numbers = #tpu.dot_dimension_numbers<[1], [0], [0], [1], [0, 0, 1, 1], [], []>} : vector<16x32xbf16>, vector<32x96xbf16>, vector<16x96xf32> -> vector<16x96xf32>
    %c0_4 = arith.constant 0 : index
    %c0_5 = arith.constant 0 : index
    %5 = vector.load %arg3[%c0_4, %c0_5] : memref<1x96xf32, #tpu.memory_space<vmem>>, vector<1x96xf32>
    %6 = vector.broadcast %5 : vector<1x96xf32> to vector<16x96xf32>
    %7 = arith.addf %4, %6 : vector<16x96xf32>
    %c0_6 = arith.constant 0 : index
    %c0_7 = arith.constant 0 : index
    %8 = vector.load %arg4[%c0_6, %c0_7] : memref<32x32xbf16, #tpu.memory_space<vmem>>, vector<32x32xbf16>
    %c0_8 = arith.constant 0 : index
    %c0_9 = arith.constant 0 : index
    %c0_10 = arith.constant 0 : index
    %9 = vector.load %arg8[%c0_8, %c0_9, %c0_10] : memref<1x1x16xf32, #tpu.memory_space<vmem>>, vector<1x1x16xf32>
    %10 = vector.shape_cast %9 : vector<1x1x16xf32> to vector<1x16xf32>
    %11 = vector.extract_strided_slice %7 {offsets = [0, 0], sizes = [16, 16], strides = [1, 1]} : vector<16x96xf32> to vector<16x16xf32>
    %12 = vector.extract_strided_slice %7 {offsets = [0, 32], sizes = [16, 16], strides = [1, 1]} : vector<16x96xf32> to vector<16x16xf32>
    %13 = vector.extract_strided_slice %7 {offsets = [0, 64], sizes = [16, 16], strides = [1, 1]} : vector<16x96xf32> to vector<16x16xf32>
    %14 = arith.truncf %11 : vector<16x16xf32> to vector<16x16xbf16>
    %15 = arith.truncf %12 : vector<16x16xf32> to vector<16x16xbf16>
    %cst_11 = arith.constant dense<0.000000e+00> : vector<16x16xf32>
    %16 = tpu.matmul %14, %15, %cst_11 {dimension_numbers = #tpu.dot_dimension_numbers<[1], [1], [0], [0], [0, 0, 1, 0], [], []>} : vector<16x16xbf16>, vector<16x16xbf16>, vector<16x16xf32> -> vector<16x16xf32>
    %cst_12 = arith.constant 2.500000e-01 : f32
    %17 = vector.broadcast %cst_12 : f32 to vector<16x16xf32>
    %18 = arith.mulf %16, %17 : vector<16x16xf32>
    %cst_13 = arith.constant 5.000000e-01 : f32
    %19 = vector.broadcast %cst_13 : f32 to vector<1x16xf32>
    %20 = arith.cmpf ogt, %10, %19 : vector<1x16xf32>
    %cst_14 = arith.constant -1.000000e+09 : f32
    %21 = vector.shape_cast %20 : vector<1x16xi1> to vector<1x16xi1>
    %22 = vector.broadcast %21 : vector<1x16xi1> to vector<16x16xi1>
    %23 = vector.broadcast %cst_14 : f32 to vector<16x16xf32>
    %24 = arith.select %22, %23, %18 : vector<16x16xi1>, vector<16x16xf32>
    %cst_15 = arith.constant dense<0xFF800000> : vector<16xf32>
    %25 = vector.multi_reduction <maximumf>, %24, %cst_15 [1] : vector<16x16xf32> to vector<16xf32>
    %26 = vector.shape_cast %25 : vector<16xf32> to vector<16x1xf32>
    %27 = vector.broadcast %26 : vector<16x1xf32> to vector<16x16xf32>
    %28 = arith.subf %24, %27 : vector<16x16xf32>
    %29 = math.exp %28 : vector<16x16xf32>
    %cst_16 = arith.constant dense<0.000000e+00> : vector<16xf32>
    %30 = vector.multi_reduction <add>, %29, %cst_16 [1] : vector<16x16xf32> to vector<16xf32>
    %31 = vector.shape_cast %30 : vector<16xf32> to vector<16x1xf32>
    %32 = tpu.reciprocal %31 {approx = true} : vector<16x1xf32> -> vector<16x1xf32>
    %33 = vector.broadcast %32 : vector<16x1xf32> to vector<16x16xf32>
    %34 = arith.mulf %29, %33 : vector<16x16xf32>
    %35 = arith.truncf %34 : vector<16x16xf32> to vector<16x16xbf16>
    %36 = arith.truncf %13 : vector<16x16xf32> to vector<16x16xbf16>
    %cst_17 = arith.constant dense<0.000000e+00> : vector<16x16xf32>
    %37 = tpu.matmul %35, %36, %cst_17 {dimension_numbers = #tpu.dot_dimension_numbers<[1], [0], [0], [1], [0, 0, 1, 1], [], []>} : vector<16x16xbf16>, vector<16x16xbf16>, vector<16x16xf32> -> vector<16x16xf32>
    %38 = arith.truncf %37 : vector<16x16xf32> to vector<16x16xbf16>
    %39 = vector.extract_strided_slice %8 {offsets = [0, 0], sizes = [16, 32], strides = [1, 1]} : vector<32x32xbf16> to vector<16x32xbf16>
    %cst_18 = arith.constant dense<0.000000e+00> : vector<16x32xf32>
    %40 = tpu.matmul %38, %39, %cst_18 {dimension_numbers = #tpu.dot_dimension_numbers<[1], [0], [0], [1], [0, 0, 1, 1], [], []>} : vector<16x16xbf16>, vector<16x32xbf16>, vector<16x32xf32> -> vector<16x32xf32>
    %41 = vector.extract_strided_slice %7 {offsets = [0, 16], sizes = [16, 16], strides = [1, 1]} : vector<16x96xf32> to vector<16x16xf32>
    %42 = vector.extract_strided_slice %7 {offsets = [0, 48], sizes = [16, 16], strides = [1, 1]} : vector<16x96xf32> to vector<16x16xf32>
    %43 = vector.extract_strided_slice %7 {offsets = [0, 80], sizes = [16, 16], strides = [1, 1]} : vector<16x96xf32> to vector<16x16xf32>
    %44 = arith.truncf %41 : vector<16x16xf32> to vector<16x16xbf16>
    %45 = arith.truncf %42 : vector<16x16xf32> to vector<16x16xbf16>
    %cst_19 = arith.constant dense<0.000000e+00> : vector<16x16xf32>
    %46 = tpu.matmul %44, %45, %cst_19 {dimension_numbers = #tpu.dot_dimension_numbers<[1], [1], [0], [0], [0, 0, 1, 0], [], []>} : vector<16x16xbf16>, vector<16x16xbf16>, vector<16x16xf32> -> vector<16x16xf32>
    %cst_20 = arith.constant 2.500000e-01 : f32
    %47 = vector.broadcast %cst_20 : f32 to vector<16x16xf32>
    %48 = arith.mulf %46, %47 : vector<16x16xf32>
    %cst_21 = arith.constant 5.000000e-01 : f32
    %49 = vector.broadcast %cst_21 : f32 to vector<1x16xf32>
    %50 = arith.cmpf ogt, %10, %49 : vector<1x16xf32>
    %cst_22 = arith.constant -1.000000e+09 : f32
    %51 = vector.shape_cast %50 : vector<1x16xi1> to vector<1x16xi1>
    %52 = vector.broadcast %51 : vector<1x16xi1> to vector<16x16xi1>
    %53 = vector.broadcast %cst_22 : f32 to vector<16x16xf32>
    %54 = arith.select %52, %53, %48 : vector<16x16xi1>, vector<16x16xf32>
    %cst_23 = arith.constant dense<0xFF800000> : vector<16xf32>
    %55 = vector.multi_reduction <maximumf>, %54, %cst_23 [1] : vector<16x16xf32> to vector<16xf32>
    %56 = vector.shape_cast %55 : vector<16xf32> to vector<16x1xf32>
    %57 = vector.broadcast %56 : vector<16x1xf32> to vector<16x16xf32>
    %58 = arith.subf %54, %57 : vector<16x16xf32>
    %59 = math.exp %58 : vector<16x16xf32>
    %cst_24 = arith.constant dense<0.000000e+00> : vector<16xf32>
    %60 = vector.multi_reduction <add>, %59, %cst_24 [1] : vector<16x16xf32> to vector<16xf32>
    %61 = vector.shape_cast %60 : vector<16xf32> to vector<16x1xf32>
    %62 = tpu.reciprocal %61 {approx = true} : vector<16x1xf32> -> vector<16x1xf32>
    %63 = vector.broadcast %62 : vector<16x1xf32> to vector<16x16xf32>
    %64 = arith.mulf %59, %63 : vector<16x16xf32>
    %65 = arith.truncf %64 : vector<16x16xf32> to vector<16x16xbf16>
    %66 = arith.truncf %43 : vector<16x16xf32> to vector<16x16xbf16>
    %cst_25 = arith.constant dense<0.000000e+00> : vector<16x16xf32>
    %67 = tpu.matmul %65, %66, %cst_25 {dimension_numbers = #tpu.dot_dimension_numbers<[1], [0], [0], [1], [0, 0, 1, 1], [], []>} : vector<16x16xbf16>, vector<16x16xbf16>, vector<16x16xf32> -> vector<16x16xf32>
    %68 = arith.truncf %67 : vector<16x16xf32> to vector<16x16xbf16>
    %69 = vector.extract_strided_slice %8 {offsets = [16, 0], sizes = [16, 32], strides = [1, 1]} : vector<32x32xbf16> to vector<16x32xbf16>
    %cst_26 = arith.constant dense<0.000000e+00> : vector<16x32xf32>
    %70 = tpu.matmul %68, %69, %cst_26 {dimension_numbers = #tpu.dot_dimension_numbers<[1], [0], [0], [1], [0, 0, 1, 1], [], []>} : vector<16x16xbf16>, vector<16x32xbf16>, vector<16x32xf32> -> vector<16x32xf32>
    %71 = arith.addf %40, %70 : vector<16x32xf32>
    %c0_27 = arith.constant 0 : index
    %c0_28 = arith.constant 0 : index
    %72 = vector.load %arg5[%c0_27, %c0_28] : memref<1x32xf32, #tpu.memory_space<vmem>>, vector<1x32xf32>
    %73 = vector.broadcast %72 : vector<1x32xf32> to vector<16x32xf32>
    %74 = arith.addf %71, %73 : vector<16x32xf32>
    %75 = arith.addf %74, %1 : vector<16x32xf32>
    %c0_29 = arith.constant 0 : index
    %c0_30 = arith.constant 0 : index
    %76 = vector.load %arg6[%c0_29, %c0_30] : memref<1x32xf32, #tpu.memory_space<vmem>>, vector<1x32xf32>
    %c0_31 = arith.constant 0 : index
    %c0_32 = arith.constant 0 : index
    %77 = vector.load %arg7[%c0_31, %c0_32] : memref<1x32xf32, #tpu.memory_space<vmem>>, vector<1x32xf32>
    %cst_33 = arith.constant dense<0.000000e+00> : vector<16xf32>
    %78 = vector.multi_reduction <add>, %75, %cst_33 [1] : vector<16x32xf32> to vector<16xf32>
    %79 = vector.shape_cast %78 : vector<16xf32> to vector<16x1xf32>
    %cst_34 = arith.constant 3.200000e+01 : f32
    %80 = vector.broadcast %cst_34 : f32 to vector<16x1xf32>
    %81 = arith.divf %79, %80 : vector<16x1xf32>
    %82 = vector.broadcast %81 : vector<16x1xf32> to vector<16x32xf32>
    %83 = arith.subf %75, %82 : vector<16x32xf32>
    %84 = arith.mulf %83, %83 : vector<16x32xf32>
    %cst_35 = arith.constant dense<0.000000e+00> : vector<16xf32>
    %85 = vector.multi_reduction <add>, %84, %cst_35 [1] : vector<16x32xf32> to vector<16xf32>
    %86 = vector.shape_cast %85 : vector<16xf32> to vector<16x1xf32>
    %cst_36 = arith.constant 3.200000e+01 : f32
    %87 = vector.broadcast %cst_36 : f32 to vector<16x1xf32>
    %88 = arith.divf %86, %87 : vector<16x1xf32>
    %89 = vector.broadcast %81 : vector<16x1xf32> to vector<16x32xf32>
    %90 = arith.subf %75, %89 : vector<16x32xf32>
    %cst_37 = arith.constant 9.99999974E-6 : f32
    %91 = vector.broadcast %cst_37 : f32 to vector<16x1xf32>
    %92 = arith.addf %88, %91 : vector<16x1xf32>
    %93 = math.rsqrt %92 : vector<16x1xf32>
    %94 = vector.broadcast %93 : vector<16x1xf32> to vector<16x32xf32>
    %95 = arith.mulf %90, %94 : vector<16x32xf32>
    %96 = vector.broadcast %76 : vector<1x32xf32> to vector<16x32xf32>
    %97 = arith.mulf %95, %96 : vector<16x32xf32>
    %98 = vector.broadcast %77 : vector<1x32xf32> to vector<16x32xf32>
    %99 = arith.addf %97, %98 : vector<16x32xf32>
    %c0_38 = arith.constant 0 : index
    %c0_39 = arith.constant 0 : index
    %c0_40 = arith.constant 0 : index
    %100 = vector.load %arg9[%c0_38, %c0_39, %c0_40] : memref<1x16x1xf32, #tpu.memory_space<vmem>>, vector<1x16x1xf32>
    %101 = vector.shape_cast %100 : vector<1x16x1xf32> to vector<16x1xf32>
    %102 = vector.broadcast %101 : vector<16x1xf32> to vector<16x32xf32>
    %103 = arith.mulf %99, %102 : vector<16x32xf32>
    %c0_41 = arith.constant 0 : index
    %c0_42 = arith.constant 0 : index
    %c0_43 = arith.constant 0 : index
    %104 = vector.load %arg10[%c0_41, %c0_42, %c0_43] : memref<1x16x32xf32, #tpu.memory_space<vmem>>, vector<1x16x32xf32>
    %105 = vector.shape_cast %104 : vector<1x16x32xf32> to vector<16x32xf32>
    %106 = vector.shape_cast %103 : vector<16x32xf32> to vector<1x16x32xf32>
    tpu.vector_store %arg10[%c0_41, %c0_42, %c0_43], %106 {strides = array<i32>} : memref<1x16x32xf32, #tpu.memory_space<vmem>>, vector<1x16x32xf32>,
    return
  }
  func.func @transform_0(%arg0: i32) -> (i32, i32, i32) {
    %c0_i32 = arith.constant 0 : i32
    %c0_i32_0 = arith.constant 0 : i32
    %c0_i32_1 = arith.constant 0 : i32
    return %arg0, %c0_i32, %c0_i32_0 : i32, i32, i32
  }
  func.func @transform_1(%arg0: i32) -> (i32, i32) {
    %c0_i32 = arith.constant 0 : i32
    %c0_i32_0 = arith.constant 0 : i32
    %c0_i32_1 = arith.constant 0 : i32
    return %c0_i32, %c0_i32_0 : i32, i32
  }
  func.func @transform_2(%arg0: i32) -> (i32, i32) {
    %c0_i32 = arith.constant 0 : i32
    %c0_i32_0 = arith.constant 0 : i32
    %c0_i32_1 = arith.constant 0 : i32
    return %c0_i32, %c0_i32_0 : i32, i32
  }
  func.func @transform_3(%arg0: i32) -> (i32, i32) {
    %c0_i32 = arith.constant 0 : i32
    %c0_i32_0 = arith.constant 0 : i32
    %c0_i32_1 = arith.constant 0 : i32
    return %c0_i32, %c0_i32_0 : i32, i32
  }
  func.func @transform_4(%arg0: i32) -> (i32, i32) {
    %c0_i32 = arith.constant 0 : i32
    %c0_i32_0 = arith.constant 0 : i32
    %c0_i32_1 = arith.constant 0 : i32
    return %c0_i32, %c0_i32_0 : i32, i32
  }
  func.func @transform_5(%arg0: i32) -> (i32, i32) {
    %c0_i32 = arith.constant 0 : i32
    %c0_i32_0 = arith.constant 0 : i32
    %c0_i32_1 = arith.constant 0 : i32
    return %c0_i32, %c0_i32_0 : i32, i32
  }
  func.func @transform_6(%arg0: i32) -> (i32, i32) {
    %c0_i32 = arith.constant 0 : i32
    %c0_i32_0 = arith.constant 0 : i32
    %c0_i32_1 = arith.constant 0 : i32
    return %c0_i32, %c0_i32_0 : i32, i32
  }
  func.func @transform_7(%arg0: i32) -> (i32, i32, i32) {
    %c0_i32 = arith.constant 0 : i32
    %c0_i32_0 = arith.constant 0 : i32
    %c0_i32_1 = arith.constant 0 : i32
    return %arg0, %c0_i32, %c0_i32_0 : i32, i32, i32
  }
  func.func @transform_8(%arg0: i32) -> (i32, i32, i32) {
    %c0_i32 = arith.constant 0 : i32
    %c0_i32_0 = arith.constant 0 : i32
    %c0_i32_1 = arith.constant 0 : i32
    return %arg0, %c0_i32, %c0_i32_0 : i32, i32, i32
  }
  func.func @transform_9(%arg0: i32) -> (i32, i32, i32) {
    %c0_i32 = arith.constant 0 : i32
    %c0_i32_0 = arith.constant 0 : i32
    %c0_i32_1 = arith.constant 0 : i32
    return %arg0, %c0_i32, %c0_i32_0 : i32, i32, i32
  }
}

module attributes {stable_mosaic.version = 11 : i64} {
  func.func @_mel_mask_kernel(%arg0: i32, %arg1: memref<1x16x32xf32, #tpu.memory_space<vmem>>, %arg2: memref<32x16xbf16, #tpu.memory_space<vmem>>, %arg3: memref<1x16xf32, #tpu.memory_space<vmem>>, %arg4: memref<1x16x1xf32, #tpu.memory_space<vmem>>, %arg5: memref<1x16x16xf32, #tpu.memory_space<vmem>>) attributes {dimension_semantics = [#tpu.dimension_semantics<parallel>], iteration_bounds = array<i64: 2>, scalar_prefetch = 0 : i64, scratch_operands = 0 : i64, tpu.core_type = #tpu.core_type<tc>, window_params = [{transform_indices = @transform_0, window_bounds = array<i64: 1, 16, 32>}, {pipeline_mode = #tpu.pipeline_mode<synchronous>, transform_indices = @transform_1, window_bounds = array<i64: 32, 16>}, {pipeline_mode = #tpu.pipeline_mode<synchronous>, transform_indices = @transform_2, window_bounds = array<i64: 1, 16>}, {transform_indices = @transform_3, window_bounds = array<i64: 1, 16, 1>}, {transform_indices = @transform_4, window_bounds = array<i64: 1, 16, 16>}]} {
    %c0 = arith.constant 0 : index
    %c0_0 = arith.constant 0 : index
    %c0_1 = arith.constant 0 : index
    %0 = vector.load %arg1[%c0, %c0_0, %c0_1] : memref<1x16x32xf32, #tpu.memory_space<vmem>>, vector<1x16x32xf32>
    %1 = vector.shape_cast %0 : vector<1x16x32xf32> to vector<16x32xf32>
    %2 = arith.truncf %1 : vector<16x32xf32> to vector<16x32xbf16>
    %c0_2 = arith.constant 0 : index
    %c0_3 = arith.constant 0 : index
    %3 = vector.load %arg2[%c0_2, %c0_3] : memref<32x16xbf16, #tpu.memory_space<vmem>>, vector<32x16xbf16>
    %cst = arith.constant dense<0.000000e+00> : vector<16x16xf32>
    %4 = tpu.matmul %2, %3, %cst {dimension_numbers = #tpu.dot_dimension_numbers<[1], [0], [0], [1], [0, 0, 1, 1], [], []>} : vector<16x32xbf16>, vector<32x16xbf16>, vector<16x16xf32> -> vector<16x16xf32>
    %c0_4 = arith.constant 0 : index
    %c0_5 = arith.constant 0 : index
    %5 = vector.load %arg3[%c0_4, %c0_5] : memref<1x16xf32, #tpu.memory_space<vmem>>, vector<1x16xf32>
    %6 = vector.broadcast %5 : vector<1x16xf32> to vector<16x16xf32>
    %7 = arith.addf %4, %6 : vector<16x16xf32>
    %c0_6 = arith.constant 0 : index
    %c0_7 = arith.constant 0 : index
    %c0_8 = arith.constant 0 : index
    %8 = vector.load %arg4[%c0_6, %c0_7, %c0_8] : memref<1x16x1xf32, #tpu.memory_space<vmem>>, vector<1x16x1xf32>
    %9 = vector.shape_cast %8 : vector<1x16x1xf32> to vector<16x1xf32>
    %10 = vector.broadcast %9 : vector<16x1xf32> to vector<16x16xf32>
    %11 = arith.mulf %7, %10 : vector<16x16xf32>
    %c0_9 = arith.constant 0 : index
    %c0_10 = arith.constant 0 : index
    %c0_11 = arith.constant 0 : index
    %12 = vector.load %arg5[%c0_9, %c0_10, %c0_11] : memref<1x16x16xf32, #tpu.memory_space<vmem>>, vector<1x16x16xf32>
    %13 = vector.shape_cast %12 : vector<1x16x16xf32> to vector<16x16xf32>
    %14 = vector.shape_cast %11 : vector<16x16xf32> to vector<1x16x16xf32>
    tpu.vector_store %arg5[%c0_9, %c0_10, %c0_11], %14 {strides = array<i32>} : memref<1x16x16xf32, #tpu.memory_space<vmem>>, vector<1x16x16xf32>,
    return
  }
  func.func @transform_0(%arg0: i32) -> (i32, i32, i32) {
    %c0_i32 = arith.constant 0 : i32
    %c0_i32_0 = arith.constant 0 : i32
    %c0_i32_1 = arith.constant 0 : i32
    return %arg0, %c0_i32, %c0_i32_0 : i32, i32, i32
  }
  func.func @transform_1(%arg0: i32) -> (i32, i32) {
    %c0_i32 = arith.constant 0 : i32
    %c0_i32_0 = arith.constant 0 : i32
    %c0_i32_1 = arith.constant 0 : i32
    return %c0_i32, %c0_i32_0 : i32, i32
  }
  func.func @transform_2(%arg0: i32) -> (i32, i32) {
    %c0_i32 = arith.constant 0 : i32
    %c0_i32_0 = arith.constant 0 : i32
    %c0_i32_1 = arith.constant 0 : i32
    return %c0_i32, %c0_i32_0 : i32, i32
  }
  func.func @transform_3(%arg0: i32) -> (i32, i32, i32) {
    %c0_i32 = arith.constant 0 : i32
    %c0_i32_0 = arith.constant 0 : i32
    %c0_i32_1 = arith.constant 0 : i32
    return %arg0, %c0_i32, %c0_i32_0 : i32, i32, i32
  }
  func.func @transform_4(%arg0: i32) -> (i32, i32, i32) {
    %c0_i32 = arith.constant 0 : i32
    %c0_i32_0 = arith.constant 0 : i32
    %c0_i32_1 = arith.constant 0 : i32
    return %arg0, %c0_i32, %c0_i32_0 : i32, i32, i32
  }
}

module attributes {stable_mosaic.version = 11 : i64} {
  func.func @_var_pred_kernel(%arg0: i32, %arg1: memref<1x16x32xf32, #tpu.memory_space<vmem>>, %arg2: memref<3x32x64xbf16, #tpu.memory_space<vmem>>, %arg3: memref<1x64xf32, #tpu.memory_space<vmem>>, %arg4: memref<1x64xf32, #tpu.memory_space<vmem>>, %arg5: memref<1x64xf32, #tpu.memory_space<vmem>>, %arg6: memref<3x64x64xbf16, #tpu.memory_space<vmem>>, %arg7: memref<1x64xf32, #tpu.memory_space<vmem>>, %arg8: memref<1x64xf32, #tpu.memory_space<vmem>>, %arg9: memref<1x64xf32, #tpu.memory_space<vmem>>, %arg10: memref<1x64xf32, #tpu.memory_space<vmem>>, %arg11: memref<1x1xf32, #tpu.memory_space<vmem>>, %arg12: memref<1x16x1xf32, #tpu.memory_space<vmem>>, %arg13: memref<32x32xf32, #tpu.memory_space<vmem>>, %arg14: memref<32x64xf32, #tpu.memory_space<vmem>>) attributes {dimension_semantics = [#tpu.dimension_semantics<parallel>], iteration_bounds = array<i64: 2>, scalar_prefetch = 0 : i64, scratch_operands = 2 : i64, tpu.core_type = #tpu.core_type<tc>, window_params = [{transform_indices = @transform_0, window_bounds = array<i64: 1, 16, 32>}, {pipeline_mode = #tpu.pipeline_mode<synchronous>, transform_indices = @transform_1, window_bounds = array<i64: 3, 32, 64>}, {pipeline_mode = #tpu.pipeline_mode<synchronous>, transform_indices = @transform_2, window_bounds = array<i64: 1, 64>}, {pipeline_mode = #tpu.pipeline_mode<synchronous>, transform_indices = @transform_3, window_bounds = array<i64: 1, 64>}, {pipeline_mode = #tpu.pipeline_mode<synchronous>, transform_indices = @transform_4, window_bounds = array<i64: 1, 64>}, {pipeline_mode = #tpu.pipeline_mode<synchronous>, transform_indices = @transform_5, window_bounds = array<i64: 3, 64, 64>}, {pipeline_mode = #tpu.pipeline_mode<synchronous>, transform_indices = @transform_6, window_bounds = array<i64: 1, 64>}, {pipeline_mode = #tpu.pipeline_mode<synchronous>, transform_indices = @transform_7, window_bounds = array<i64: 1, 64>}, {pipeline_mode = #tpu.pipeline_mode<synchronous>, transform_indices = @transform_8, window_bounds = array<i64: 1, 64>}, {pipeline_mode = #tpu.pipeline_mode<synchronous>, transform_indices = @transform_9, window_bounds = array<i64: 1, 64>}, {pipeline_mode = #tpu.pipeline_mode<synchronous>, transform_indices = @transform_10, window_bounds = array<i64: 1, 1>}, {transform_indices = @transform_11, window_bounds = array<i64: 1, 16, 1>}]} {
    %c0 = arith.constant 0 : index
    %c0_0 = arith.constant 0 : index
    %c0_1 = arith.constant 0 : index
    %0 = vector.load %arg1[%c0, %c0_0, %c0_1] : memref<1x16x32xf32, #tpu.memory_space<vmem>>, vector<1x16x32xf32>
    %1 = vector.shape_cast %0 : vector<1x16x32xf32> to vector<16x32xf32>
    %c0_2 = arith.constant 0 : index
    %c0_3 = arith.constant 0 : index
    %2 = vector.load %arg3[%c0_2, %c0_3] : memref<1x64xf32, #tpu.memory_space<vmem>>, vector<1x64xf32>
    %cst = arith.constant 0.000000e+00 : f32
    %3 = vector.broadcast %cst : f32 to vector<32x32xf32>
    %c0_4 = arith.constant 0 : index
    %c0_5 = arith.constant 0 : index
    %4 = vector.load %arg13[%c0_4, %c0_5] : memref<32x32xf32, #tpu.memory_space<vmem>>, vector<32x32xf32>
    tpu.vector_store %arg13[%c0_4, %c0_5], %3 {strides = array<i32>} : memref<32x32xf32, #tpu.memory_space<vmem>>, vector<32x32xf32>,
    %c8 = arith.constant 8 : index
    %c0_6 = arith.constant 0 : index
    %5 = vector.load %arg13[%c8, %c0_6] : memref<32x32xf32, #tpu.memory_space<vmem>>, vector<16x32xf32>
    tpu.vector_store %arg13[%c8, %c0_6], %1 {strides = array<i32>} : memref<32x32xf32, #tpu.memory_space<vmem>>, vector<16x32xf32>,
    %c7 = arith.constant 7 : index
    %c0_7 = arith.constant 0 : index
    %6 = vector.load %arg13[%c7, %c0_7] : memref<32x32xf32, #tpu.memory_space<vmem>>, vector<16x32xf32>
    %7 = arith.truncf %6 : vector<16x32xf32> to vector<16x32xbf16>
    %c0_8 = arith.constant 0 : index
    %c0_9 = arith.constant 0 : index
    %c0_10 = arith.constant 0 : index
    %8 = vector.load %arg2[%c0_8, %c0_9, %c0_10] : memref<3x32x64xbf16, #tpu.memory_space<vmem>>, vector<1x32x64xbf16>
    %9 = vector.shape_cast %8 : vector<1x32x64xbf16> to vector<32x64xbf16>
    %cst_11 = arith.constant dense<0.000000e+00> : vector<16x64xf32>
    %10 = tpu.matmul %7, %9, %cst_11 {dimension_numbers = #tpu.dot_dimension_numbers<[1], [0], [0], [1], [0, 0, 1, 1], [], []>} : vector<16x32xbf16>, vector<32x64xbf16>, vector<16x64xf32> -> vector<16x64xf32>
    %c8_12 = arith.constant 8 : index
    %c0_13 = arith.constant 0 : index
    %11 = vector.load %arg13[%c8_12, %c0_13] : memref<32x32xf32, #tpu.memory_space<vmem>>, vector<16x32xf32>
    %12 = arith.truncf %11 : vector<16x32xf32> to vector<16x32xbf16>
    %c1 = arith.constant 1 : index
    %c0_14 = arith.constant 0 : index
    %c0_15 = arith.constant 0 : index
    %13 = vector.load %arg2[%c1, %c0_14, %c0_15] : memref<3x32x64xbf16, #tpu.memory_space<vmem>>, vector<1x32x64xbf16>
    %14 = vector.shape_cast %13 : vector<1x32x64xbf16> to vector<32x64xbf16>
    %cst_16 = arith.constant dense<0.000000e+00> : vector<16x64xf32>
    %15 = tpu.matmul %12, %14, %cst_16 {dimension_numbers = #tpu.dot_dimension_numbers<[1], [0], [0], [1], [0, 0, 1, 1], [], []>} : vector<16x32xbf16>, vector<32x64xbf16>, vector<16x64xf32> -> vector<16x64xf32>
    %16 = arith.addf %10, %15 : vector<16x64xf32>
    %c9 = arith.constant 9 : index
    %c0_17 = arith.constant 0 : index
    %17 = vector.load %arg13[%c9, %c0_17] : memref<32x32xf32, #tpu.memory_space<vmem>>, vector<16x32xf32>
    %18 = arith.truncf %17 : vector<16x32xf32> to vector<16x32xbf16>
    %c2 = arith.constant 2 : index
    %c0_18 = arith.constant 0 : index
    %c0_19 = arith.constant 0 : index
    %19 = vector.load %arg2[%c2, %c0_18, %c0_19] : memref<3x32x64xbf16, #tpu.memory_space<vmem>>, vector<1x32x64xbf16>
    %20 = vector.shape_cast %19 : vector<1x32x64xbf16> to vector<32x64xbf16>
    %cst_20 = arith.constant dense<0.000000e+00> : vector<16x64xf32>
    %21 = tpu.matmul %18, %20, %cst_20 {dimension_numbers = #tpu.dot_dimension_numbers<[1], [0], [0], [1], [0, 0, 1, 1], [], []>} : vector<16x32xbf16>, vector<32x64xbf16>, vector<16x64xf32> -> vector<16x64xf32>
    %22 = arith.addf %16, %21 : vector<16x64xf32>
    %23 = vector.broadcast %2 : vector<1x64xf32> to vector<16x64xf32>
    %24 = arith.addf %22, %23 : vector<16x64xf32>
    %cst_21 = arith.constant 0.000000e+00 : f32
    %25 = vector.broadcast %cst_21 : f32 to vector<16x64xf32>
    %26 = arith.maximumf %24, %25 : vector<16x64xf32>
    %c0_22 = arith.constant 0 : index
    %c0_23 = arith.constant 0 : index
    %27 = vector.load %arg4[%c0_22, %c0_23] : memref<1x64xf32, #tpu.memory_space<vmem>>, vector<1x64xf32>
    %c0_24 = arith.constant 0 : index
    %c0_25 = arith.constant 0 : index
    %28 = vector.load %arg5[%c0_24, %c0_25] : memref<1x64xf32, #tpu.memory_space<vmem>>, vector<1x64xf32>
    %cst_26 = arith.constant dense<0.000000e+00> : vector<16xf32>
    %29 = vector.multi_reduction <add>, %26, %cst_26 [1] : vector<16x64xf32> to vector<16xf32>
    %30 = vector.shape_cast %29 : vector<16xf32> to vector<16x1xf32>
    %cst_27 = arith.constant 6.400000e+01 : f32
    %31 = vector.broadcast %cst_27 : f32 to vector<16x1xf32>
    %32 = arith.divf %30, %31 : vector<16x1xf32>
    %33 = vector.broadcast %32 : vector<16x1xf32> to vector<16x64xf32>
    %34 = arith.subf %26, %33 : vector<16x64xf32>
    %35 = arith.mulf %34, %34 : vector<16x64xf32>
    %cst_28 = arith.constant dense<0.000000e+00> : vector<16xf32>
    %36 = vector.multi_reduction <add>, %35, %cst_28 [1] : vector<16x64xf32> to vector<16xf32>
    %37 = vector.shape_cast %36 : vector<16xf32> to vector<16x1xf32>
    %cst_29 = arith.constant 6.400000e+01 : f32
    %38 = vector.broadcast %cst_29 : f32 to vector<16x1xf32>
    %39 = arith.divf %37, %38 : vector<16x1xf32>
    %40 = vector.broadcast %32 : vector<16x1xf32> to vector<16x64xf32>
    %41 = arith.subf %26, %40 : vector<16x64xf32>
    %cst_30 = arith.constant 9.99999974E-6 : f32
    %42 = vector.broadcast %cst_30 : f32 to vector<16x1xf32>
    %43 = arith.addf %39, %42 : vector<16x1xf32>
    %44 = math.rsqrt %43 : vector<16x1xf32>
    %45 = vector.broadcast %44 : vector<16x1xf32> to vector<16x64xf32>
    %46 = arith.mulf %41, %45 : vector<16x64xf32>
    %47 = vector.broadcast %27 : vector<1x64xf32> to vector<16x64xf32>
    %48 = arith.mulf %46, %47 : vector<16x64xf32>
    %49 = vector.broadcast %28 : vector<1x64xf32> to vector<16x64xf32>
    %50 = arith.addf %48, %49 : vector<16x64xf32>
    %c0_31 = arith.constant 0 : index
    %c0_32 = arith.constant 0 : index
    %51 = vector.load %arg7[%c0_31, %c0_32] : memref<1x64xf32, #tpu.memory_space<vmem>>, vector<1x64xf32>
    %cst_33 = arith.constant 0.000000e+00 : f32
    %52 = vector.broadcast %cst_33 : f32 to vector<32x64xf32>
    %c0_34 = arith.constant 0 : index
    %c0_35 = arith.constant 0 : index
    %53 = vector.load %arg14[%c0_34, %c0_35] : memref<32x64xf32, #tpu.memory_space<vmem>>, vector<32x64xf32>
    tpu.vector_store %arg14[%c0_34, %c0_35], %52 {strides = array<i32>} : memref<32x64xf32, #tpu.memory_space<vmem>>, vector<32x64xf32>,
    %c8_36 = arith.constant 8 : index
    %c0_37 = arith.constant 0 : index
    %54 = vector.load %arg14[%c8_36, %c0_37] : memref<32x64xf32, #tpu.memory_space<vmem>>, vector<16x64xf32>
    tpu.vector_store %arg14[%c8_36, %c0_37], %50 {strides = array<i32>} : memref<32x64xf32, #tpu.memory_space<vmem>>, vector<16x64xf32>,
    %c7_38 = arith.constant 7 : index
    %c0_39 = arith.constant 0 : index
    %55 = vector.load %arg14[%c7_38, %c0_39] : memref<32x64xf32, #tpu.memory_space<vmem>>, vector<16x64xf32>
    %56 = arith.truncf %55 : vector<16x64xf32> to vector<16x64xbf16>
    %c0_40 = arith.constant 0 : index
    %c0_41 = arith.constant 0 : index
    %c0_42 = arith.constant 0 : index
    %57 = vector.load %arg6[%c0_40, %c0_41, %c0_42] : memref<3x64x64xbf16, #tpu.memory_space<vmem>>, vector<1x64x64xbf16>
    %58 = vector.shape_cast %57 : vector<1x64x64xbf16> to vector<64x64xbf16>
    %cst_43 = arith.constant dense<0.000000e+00> : vector<16x64xf32>
    %59 = tpu.matmul %56, %58, %cst_43 {dimension_numbers = #tpu.dot_dimension_numbers<[1], [0], [0], [1], [0, 0, 1, 1], [], []>} : vector<16x64xbf16>, vector<64x64xbf16>, vector<16x64xf32> -> vector<16x64xf32>
    %c8_44 = arith.constant 8 : index
    %c0_45 = arith.constant 0 : index
    %60 = vector.load %arg14[%c8_44, %c0_45] : memref<32x64xf32, #tpu.memory_space<vmem>>, vector<16x64xf32>
    %61 = arith.truncf %60 : vector<16x64xf32> to vector<16x64xbf16>
    %c1_46 = arith.constant 1 : index
    %c0_47 = arith.constant 0 : index
    %c0_48 = arith.constant 0 : index
    %62 = vector.load %arg6[%c1_46, %c0_47, %c0_48] : memref<3x64x64xbf16, #tpu.memory_space<vmem>>, vector<1x64x64xbf16>
    %63 = vector.shape_cast %62 : vector<1x64x64xbf16> to vector<64x64xbf16>
    %cst_49 = arith.constant dense<0.000000e+00> : vector<16x64xf32>
    %64 = tpu.matmul %61, %63, %cst_49 {dimension_numbers = #tpu.dot_dimension_numbers<[1], [0], [0], [1], [0, 0, 1, 1], [], []>} : vector<16x64xbf16>, vector<64x64xbf16>, vector<16x64xf32> -> vector<16x64xf32>
    %65 = arith.addf %59, %64 : vector<16x64xf32>
    %c9_50 = arith.constant 9 : index
    %c0_51 = arith.constant 0 : index
    %66 = vector.load %arg14[%c9_50, %c0_51] : memref<32x64xf32, #tpu.memory_space<vmem>>, vector<16x64xf32>
    %67 = arith.truncf %66 : vector<16x64xf32> to vector<16x64xbf16>
    %c2_52 = arith.constant 2 : index
    %c0_53 = arith.constant 0 : index
    %c0_54 = arith.constant 0 : index
    %68 = vector.load %arg6[%c2_52, %c0_53, %c0_54] : memref<3x64x64xbf16, #tpu.memory_space<vmem>>, vector<1x64x64xbf16>
    %69 = vector.shape_cast %68 : vector<1x64x64xbf16> to vector<64x64xbf16>
    %cst_55 = arith.constant dense<0.000000e+00> : vector<16x64xf32>
    %70 = tpu.matmul %67, %69, %cst_55 {dimension_numbers = #tpu.dot_dimension_numbers<[1], [0], [0], [1], [0, 0, 1, 1], [], []>} : vector<16x64xbf16>, vector<64x64xbf16>, vector<16x64xf32> -> vector<16x64xf32>
    %71 = arith.addf %65, %70 : vector<16x64xf32>
    %72 = vector.broadcast %51 : vector<1x64xf32> to vector<16x64xf32>
    %73 = arith.addf %71, %72 : vector<16x64xf32>
    %cst_56 = arith.constant 0.000000e+00 : f32
    %74 = vector.broadcast %cst_56 : f32 to vector<16x64xf32>
    %75 = arith.maximumf %73, %74 : vector<16x64xf32>
    %c0_57 = arith.constant 0 : index
    %c0_58 = arith.constant 0 : index
    %76 = vector.load %arg8[%c0_57, %c0_58] : memref<1x64xf32, #tpu.memory_space<vmem>>, vector<1x64xf32>
    %c0_59 = arith.constant 0 : index
    %c0_60 = arith.constant 0 : index
    %77 = vector.load %arg9[%c0_59, %c0_60] : memref<1x64xf32, #tpu.memory_space<vmem>>, vector<1x64xf32>
    %cst_61 = arith.constant dense<0.000000e+00> : vector<16xf32>
    %78 = vector.multi_reduction <add>, %75, %cst_61 [1] : vector<16x64xf32> to vector<16xf32>
    %79 = vector.shape_cast %78 : vector<16xf32> to vector<16x1xf32>
    %cst_62 = arith.constant 6.400000e+01 : f32
    %80 = vector.broadcast %cst_62 : f32 to vector<16x1xf32>
    %81 = arith.divf %79, %80 : vector<16x1xf32>
    %82 = vector.broadcast %81 : vector<16x1xf32> to vector<16x64xf32>
    %83 = arith.subf %75, %82 : vector<16x64xf32>
    %84 = arith.mulf %83, %83 : vector<16x64xf32>
    %cst_63 = arith.constant dense<0.000000e+00> : vector<16xf32>
    %85 = vector.multi_reduction <add>, %84, %cst_63 [1] : vector<16x64xf32> to vector<16xf32>
    %86 = vector.shape_cast %85 : vector<16xf32> to vector<16x1xf32>
    %cst_64 = arith.constant 6.400000e+01 : f32
    %87 = vector.broadcast %cst_64 : f32 to vector<16x1xf32>
    %88 = arith.divf %86, %87 : vector<16x1xf32>
    %89 = vector.broadcast %81 : vector<16x1xf32> to vector<16x64xf32>
    %90 = arith.subf %75, %89 : vector<16x64xf32>
    %cst_65 = arith.constant 9.99999974E-6 : f32
    %91 = vector.broadcast %cst_65 : f32 to vector<16x1xf32>
    %92 = arith.addf %88, %91 : vector<16x1xf32>
    %93 = math.rsqrt %92 : vector<16x1xf32>
    %94 = vector.broadcast %93 : vector<16x1xf32> to vector<16x64xf32>
    %95 = arith.mulf %90, %94 : vector<16x64xf32>
    %96 = vector.broadcast %76 : vector<1x64xf32> to vector<16x64xf32>
    %97 = arith.mulf %95, %96 : vector<16x64xf32>
    %98 = vector.broadcast %77 : vector<1x64xf32> to vector<16x64xf32>
    %99 = arith.addf %97, %98 : vector<16x64xf32>
    %c0_66 = arith.constant 0 : index
    %c0_67 = arith.constant 0 : index
    %100 = vector.load %arg10[%c0_66, %c0_67] : memref<1x64xf32, #tpu.memory_space<vmem>>, vector<1x64xf32>
    %101 = vector.broadcast %100 : vector<1x64xf32> to vector<16x64xf32>
    %102 = arith.mulf %99, %101 : vector<16x64xf32>
    %cst_68 = arith.constant dense<0.000000e+00> : vector<16xf32>
    %103 = vector.multi_reduction <add>, %102, %cst_68 [1] : vector<16x64xf32> to vector<16xf32>
    %104 = vector.shape_cast %103 : vector<16xf32> to vector<16x1xf32>
    %c0_69 = arith.constant 0 : index
    %c0_70 = arith.constant 0 : index
    %105 = vector.load %arg11[%c0_69, %c0_70] : memref<1x1xf32, #tpu.memory_space<vmem>>, vector<1x1xf32>
    %106 = vector.broadcast %105 : vector<1x1xf32> to vector<16x1xf32>
    %107 = arith.addf %104, %106 : vector<16x1xf32>
    %c0_71 = arith.constant 0 : index
    %c0_72 = arith.constant 0 : index
    %c0_73 = arith.constant 0 : index
    %108 = vector.load %arg12[%c0_71, %c0_72, %c0_73] : memref<1x16x1xf32, #tpu.memory_space<vmem>>, vector<1x16x1xf32>
    %109 = vector.shape_cast %108 : vector<1x16x1xf32> to vector<16x1xf32>
    %110 = vector.shape_cast %107 : vector<16x1xf32> to vector<1x16x1xf32>
    tpu.vector_store %arg12[%c0_71, %c0_72, %c0_73], %110 {strides = array<i32>} : memref<1x16x1xf32, #tpu.memory_space<vmem>>, vector<1x16x1xf32>,
    return
  }
  func.func @transform_0(%arg0: i32) -> (i32, i32, i32) {
    %c0_i32 = arith.constant 0 : i32
    %c0_i32_0 = arith.constant 0 : i32
    %c0_i32_1 = arith.constant 0 : i32
    return %arg0, %c0_i32, %c0_i32_0 : i32, i32, i32
  }
  func.func @transform_1(%arg0: i32) -> (i32, i32, i32) {
    %c0_i32 = arith.constant 0 : i32
    %c0_i32_0 = arith.constant 0 : i32
    %c0_i32_1 = arith.constant 0 : i32
    %c0_i32_2 = arith.constant 0 : i32
    return %c0_i32, %c0_i32_0, %c0_i32_1 : i32, i32, i32
  }
  func.func @transform_2(%arg0: i32) -> (i32, i32) {
    %c0_i32 = arith.constant 0 : i32
    %c0_i32_0 = arith.constant 0 : i32
    %c0_i32_1 = arith.constant 0 : i32
    return %c0_i32, %c0_i32_0 : i32, i32
  }
  func.func @transform_3(%arg0: i32) -> (i32, i32) {
    %c0_i32 = arith.constant 0 : i32
    %c0_i32_0 = arith.constant 0 : i32
    %c0_i32_1 = arith.constant 0 : i32
    return %c0_i32, %c0_i32_0 : i32, i32
  }
  func.func @transform_4(%arg0: i32) -> (i32, i32) {
    %c0_i32 = arith.constant 0 : i32
    %c0_i32_0 = arith.constant 0 : i32
    %c0_i32_1 = arith.constant 0 : i32
    return %c0_i32, %c0_i32_0 : i32, i32
  }
  func.func @transform_5(%arg0: i32) -> (i32, i32, i32) {
    %c0_i32 = arith.constant 0 : i32
    %c0_i32_0 = arith.constant 0 : i32
    %c0_i32_1 = arith.constant 0 : i32
    %c0_i32_2 = arith.constant 0 : i32
    return %c0_i32, %c0_i32_0, %c0_i32_1 : i32, i32, i32
  }
  func.func @transform_6(%arg0: i32) -> (i32, i32) {
    %c0_i32 = arith.constant 0 : i32
    %c0_i32_0 = arith.constant 0 : i32
    %c0_i32_1 = arith.constant 0 : i32
    return %c0_i32, %c0_i32_0 : i32, i32
  }
  func.func @transform_7(%arg0: i32) -> (i32, i32) {
    %c0_i32 = arith.constant 0 : i32
    %c0_i32_0 = arith.constant 0 : i32
    %c0_i32_1 = arith.constant 0 : i32
    return %c0_i32, %c0_i32_0 : i32, i32
  }
  func.func @transform_8(%arg0: i32) -> (i32, i32) {
    %c0_i32 = arith.constant 0 : i32
    %c0_i32_0 = arith.constant 0 : i32
    %c0_i32_1 = arith.constant 0 : i32
    return %c0_i32, %c0_i32_0 : i32, i32
  }
  func.func @transform_9(%arg0: i32) -> (i32, i32) {
    %c0_i32 = arith.constant 0 : i32
    %c0_i32_0 = arith.constant 0 : i32
    %c0_i32_1 = arith.constant 0 : i32
    return %c0_i32, %c0_i32_0 : i32, i32
  }
  func.func @transform_10(%arg0: i32) -> (i32, i32) {
    %c0_i32 = arith.constant 0 : i32
    %c0_i32_0 = arith.constant 0 : i32
    %c0_i32_1 = arith.constant 0 : i32
    return %c0_i32, %c0_i32_0 : i32, i32
  }
  func.func @transform_11(%arg0: i32) -> (i32, i32, i32) {
    %c0_i32 = arith.constant 0 : i32
    %c0_i32_0 = arith.constant 0 : i32
    %c0_i32_1 = arith.constant 0 : i32
    return %arg0, %c0_i32, %c0_i32_0 : i32, i32, i32
  }
}

module attributes {stable_mosaic.version = 11 : i64} {
  func.func @_var_pred_kernel(%arg0: i32, %arg1: memref<1x16x32xf32, #tpu.memory_space<vmem>>, %arg2: memref<3x32x64xbf16, #tpu.memory_space<vmem>>, %arg3: memref<1x64xf32, #tpu.memory_space<vmem>>, %arg4: memref<1x64xf32, #tpu.memory_space<vmem>>, %arg5: memref<1x64xf32, #tpu.memory_space<vmem>>, %arg6: memref<3x64x64xbf16, #tpu.memory_space<vmem>>, %arg7: memref<1x64xf32, #tpu.memory_space<vmem>>, %arg8: memref<1x64xf32, #tpu.memory_space<vmem>>, %arg9: memref<1x64xf32, #tpu.memory_space<vmem>>, %arg10: memref<1x64xf32, #tpu.memory_space<vmem>>, %arg11: memref<1x1xf32, #tpu.memory_space<vmem>>, %arg12: memref<1x16x1xf32, #tpu.memory_space<vmem>>, %arg13: memref<32x32xf32, #tpu.memory_space<vmem>>, %arg14: memref<32x64xf32, #tpu.memory_space<vmem>>) attributes {dimension_semantics = [#tpu.dimension_semantics<parallel>], iteration_bounds = array<i64: 2>, scalar_prefetch = 0 : i64, scratch_operands = 2 : i64, tpu.core_type = #tpu.core_type<tc>, window_params = [{transform_indices = @transform_0, window_bounds = array<i64: 1, 16, 32>}, {pipeline_mode = #tpu.pipeline_mode<synchronous>, transform_indices = @transform_1, window_bounds = array<i64: 3, 32, 64>}, {pipeline_mode = #tpu.pipeline_mode<synchronous>, transform_indices = @transform_2, window_bounds = array<i64: 1, 64>}, {pipeline_mode = #tpu.pipeline_mode<synchronous>, transform_indices = @transform_3, window_bounds = array<i64: 1, 64>}, {pipeline_mode = #tpu.pipeline_mode<synchronous>, transform_indices = @transform_4, window_bounds = array<i64: 1, 64>}, {pipeline_mode = #tpu.pipeline_mode<synchronous>, transform_indices = @transform_5, window_bounds = array<i64: 3, 64, 64>}, {pipeline_mode = #tpu.pipeline_mode<synchronous>, transform_indices = @transform_6, window_bounds = array<i64: 1, 64>}, {pipeline_mode = #tpu.pipeline_mode<synchronous>, transform_indices = @transform_7, window_bounds = array<i64: 1, 64>}, {pipeline_mode = #tpu.pipeline_mode<synchronous>, transform_indices = @transform_8, window_bounds = array<i64: 1, 64>}, {pipeline_mode = #tpu.pipeline_mode<synchronous>, transform_indices = @transform_9, window_bounds = array<i64: 1, 64>}, {pipeline_mode = #tpu.pipeline_mode<synchronous>, transform_indices = @transform_10, window_bounds = array<i64: 1, 1>}, {transform_indices = @transform_11, window_bounds = array<i64: 1, 16, 1>}]} {
    %c0 = arith.constant 0 : index
    %c0_0 = arith.constant 0 : index
    %c0_1 = arith.constant 0 : index
    %0 = vector.load %arg1[%c0, %c0_0, %c0_1] : memref<1x16x32xf32, #tpu.memory_space<vmem>>, vector<1x16x32xf32>
    %1 = vector.shape_cast %0 : vector<1x16x32xf32> to vector<16x32xf32>
    %c0_2 = arith.constant 0 : index
    %c0_3 = arith.constant 0 : index
    %2 = vector.load %arg3[%c0_2, %c0_3] : memref<1x64xf32, #tpu.memory_space<vmem>>, vector<1x64xf32>
    %cst = arith.constant 0.000000e+00 : f32
    %3 = vector.broadcast %cst : f32 to vector<32x32xf32>
    %c0_4 = arith.constant 0 : index
    %c0_5 = arith.constant 0 : index
    %4 = vector.load %arg13[%c0_4, %c0_5] : memref<32x32xf32, #tpu.memory_space<vmem>>, vector<32x32xf32>
    tpu.vector_store %arg13[%c0_4, %c0_5], %3 {strides = array<i32>} : memref<32x32xf32, #tpu.memory_space<vmem>>, vector<32x32xf32>,
    %c8 = arith.constant 8 : index
    %c0_6 = arith.constant 0 : index
    %5 = vector.load %arg13[%c8, %c0_6] : memref<32x32xf32, #tpu.memory_space<vmem>>, vector<16x32xf32>
    tpu.vector_store %arg13[%c8, %c0_6], %1 {strides = array<i32>} : memref<32x32xf32, #tpu.memory_space<vmem>>, vector<16x32xf32>,
    %c7 = arith.constant 7 : index
    %c0_7 = arith.constant 0 : index
    %6 = vector.load %arg13[%c7, %c0_7] : memref<32x32xf32, #tpu.memory_space<vmem>>, vector<16x32xf32>
    %7 = arith.truncf %6 : vector<16x32xf32> to vector<16x32xbf16>
    %c0_8 = arith.constant 0 : index
    %c0_9 = arith.constant 0 : index
    %c0_10 = arith.constant 0 : index
    %8 = vector.load %arg2[%c0_8, %c0_9, %c0_10] : memref<3x32x64xbf16, #tpu.memory_space<vmem>>, vector<1x32x64xbf16>
    %9 = vector.shape_cast %8 : vector<1x32x64xbf16> to vector<32x64xbf16>
    %cst_11 = arith.constant dense<0.000000e+00> : vector<16x64xf32>
    %10 = tpu.matmul %7, %9, %cst_11 {dimension_numbers = #tpu.dot_dimension_numbers<[1], [0], [0], [1], [0, 0, 1, 1], [], []>} : vector<16x32xbf16>, vector<32x64xbf16>, vector<16x64xf32> -> vector<16x64xf32>
    %c8_12 = arith.constant 8 : index
    %c0_13 = arith.constant 0 : index
    %11 = vector.load %arg13[%c8_12, %c0_13] : memref<32x32xf32, #tpu.memory_space<vmem>>, vector<16x32xf32>
    %12 = arith.truncf %11 : vector<16x32xf32> to vector<16x32xbf16>
    %c1 = arith.constant 1 : index
    %c0_14 = arith.constant 0 : index
    %c0_15 = arith.constant 0 : index
    %13 = vector.load %arg2[%c1, %c0_14, %c0_15] : memref<3x32x64xbf16, #tpu.memory_space<vmem>>, vector<1x32x64xbf16>
    %14 = vector.shape_cast %13 : vector<1x32x64xbf16> to vector<32x64xbf16>
    %cst_16 = arith.constant dense<0.000000e+00> : vector<16x64xf32>
    %15 = tpu.matmul %12, %14, %cst_16 {dimension_numbers = #tpu.dot_dimension_numbers<[1], [0], [0], [1], [0, 0, 1, 1], [], []>} : vector<16x32xbf16>, vector<32x64xbf16>, vector<16x64xf32> -> vector<16x64xf32>
    %16 = arith.addf %10, %15 : vector<16x64xf32>
    %c9 = arith.constant 9 : index
    %c0_17 = arith.constant 0 : index
    %17 = vector.load %arg13[%c9, %c0_17] : memref<32x32xf32, #tpu.memory_space<vmem>>, vector<16x32xf32>
    %18 = arith.truncf %17 : vector<16x32xf32> to vector<16x32xbf16>
    %c2 = arith.constant 2 : index
    %c0_18 = arith.constant 0 : index
    %c0_19 = arith.constant 0 : index
    %19 = vector.load %arg2[%c2, %c0_18, %c0_19] : memref<3x32x64xbf16, #tpu.memory_space<vmem>>, vector<1x32x64xbf16>
    %20 = vector.shape_cast %19 : vector<1x32x64xbf16> to vector<32x64xbf16>
    %cst_20 = arith.constant dense<0.000000e+00> : vector<16x64xf32>
    %21 = tpu.matmul %18, %20, %cst_20 {dimension_numbers = #tpu.dot_dimension_numbers<[1], [0], [0], [1], [0, 0, 1, 1], [], []>} : vector<16x32xbf16>, vector<32x64xbf16>, vector<16x64xf32> -> vector<16x64xf32>
    %22 = arith.addf %16, %21 : vector<16x64xf32>
    %23 = vector.broadcast %2 : vector<1x64xf32> to vector<16x64xf32>
    %24 = arith.addf %22, %23 : vector<16x64xf32>
    %cst_21 = arith.constant 0.000000e+00 : f32
    %25 = vector.broadcast %cst_21 : f32 to vector<16x64xf32>
    %26 = arith.maximumf %24, %25 : vector<16x64xf32>
    %c0_22 = arith.constant 0 : index
    %c0_23 = arith.constant 0 : index
    %27 = vector.load %arg4[%c0_22, %c0_23] : memref<1x64xf32, #tpu.memory_space<vmem>>, vector<1x64xf32>
    %c0_24 = arith.constant 0 : index
    %c0_25 = arith.constant 0 : index
    %28 = vector.load %arg5[%c0_24, %c0_25] : memref<1x64xf32, #tpu.memory_space<vmem>>, vector<1x64xf32>
    %cst_26 = arith.constant dense<0.000000e+00> : vector<16xf32>
    %29 = vector.multi_reduction <add>, %26, %cst_26 [1] : vector<16x64xf32> to vector<16xf32>
    %30 = vector.shape_cast %29 : vector<16xf32> to vector<16x1xf32>
    %cst_27 = arith.constant 6.400000e+01 : f32
    %31 = vector.broadcast %cst_27 : f32 to vector<16x1xf32>
    %32 = arith.divf %30, %31 : vector<16x1xf32>
    %33 = vector.broadcast %32 : vector<16x1xf32> to vector<16x64xf32>
    %34 = arith.subf %26, %33 : vector<16x64xf32>
    %35 = arith.mulf %34, %34 : vector<16x64xf32>
    %cst_28 = arith.constant dense<0.000000e+00> : vector<16xf32>
    %36 = vector.multi_reduction <add>, %35, %cst_28 [1] : vector<16x64xf32> to vector<16xf32>
    %37 = vector.shape_cast %36 : vector<16xf32> to vector<16x1xf32>
    %cst_29 = arith.constant 6.400000e+01 : f32
    %38 = vector.broadcast %cst_29 : f32 to vector<16x1xf32>
    %39 = arith.divf %37, %38 : vector<16x1xf32>
    %40 = vector.broadcast %32 : vector<16x1xf32> to vector<16x64xf32>
    %41 = arith.subf %26, %40 : vector<16x64xf32>
    %cst_30 = arith.constant 9.99999974E-6 : f32
    %42 = vector.broadcast %cst_30 : f32 to vector<16x1xf32>
    %43 = arith.addf %39, %42 : vector<16x1xf32>
    %44 = math.rsqrt %43 : vector<16x1xf32>
    %45 = vector.broadcast %44 : vector<16x1xf32> to vector<16x64xf32>
    %46 = arith.mulf %41, %45 : vector<16x64xf32>
    %47 = vector.broadcast %27 : vector<1x64xf32> to vector<16x64xf32>
    %48 = arith.mulf %46, %47 : vector<16x64xf32>
    %49 = vector.broadcast %28 : vector<1x64xf32> to vector<16x64xf32>
    %50 = arith.addf %48, %49 : vector<16x64xf32>
    %c0_31 = arith.constant 0 : index
    %c0_32 = arith.constant 0 : index
    %51 = vector.load %arg7[%c0_31, %c0_32] : memref<1x64xf32, #tpu.memory_space<vmem>>, vector<1x64xf32>
    %cst_33 = arith.constant 0.000000e+00 : f32
    %52 = vector.broadcast %cst_33 : f32 to vector<32x64xf32>
    %c0_34 = arith.constant 0 : index
    %c0_35 = arith.constant 0 : index
    %53 = vector.load %arg14[%c0_34, %c0_35] : memref<32x64xf32, #tpu.memory_space<vmem>>, vector<32x64xf32>
    tpu.vector_store %arg14[%c0_34, %c0_35], %52 {strides = array<i32>} : memref<32x64xf32, #tpu.memory_space<vmem>>, vector<32x64xf32>,
    %c8_36 = arith.constant 8 : index
    %c0_37 = arith.constant 0 : index
    %54 = vector.load %arg14[%c8_36, %c0_37] : memref<32x64xf32, #tpu.memory_space<vmem>>, vector<16x64xf32>
    tpu.vector_store %arg14[%c8_36, %c0_37], %50 {strides = array<i32>} : memref<32x64xf32, #tpu.memory_space<vmem>>, vector<16x64xf32>,
    %c7_38 = arith.constant 7 : index
    %c0_39 = arith.constant 0 : index
    %55 = vector.load %arg14[%c7_38, %c0_39] : memref<32x64xf32, #tpu.memory_space<vmem>>, vector<16x64xf32>
    %56 = arith.truncf %55 : vector<16x64xf32> to vector<16x64xbf16>
    %c0_40 = arith.constant 0 : index
    %c0_41 = arith.constant 0 : index
    %c0_42 = arith.constant 0 : index
    %57 = vector.load %arg6[%c0_40, %c0_41, %c0_42] : memref<3x64x64xbf16, #tpu.memory_space<vmem>>, vector<1x64x64xbf16>
    %58 = vector.shape_cast %57 : vector<1x64x64xbf16> to vector<64x64xbf16>
    %cst_43 = arith.constant dense<0.000000e+00> : vector<16x64xf32>
    %59 = tpu.matmul %56, %58, %cst_43 {dimension_numbers = #tpu.dot_dimension_numbers<[1], [0], [0], [1], [0, 0, 1, 1], [], []>} : vector<16x64xbf16>, vector<64x64xbf16>, vector<16x64xf32> -> vector<16x64xf32>
    %c8_44 = arith.constant 8 : index
    %c0_45 = arith.constant 0 : index
    %60 = vector.load %arg14[%c8_44, %c0_45] : memref<32x64xf32, #tpu.memory_space<vmem>>, vector<16x64xf32>
    %61 = arith.truncf %60 : vector<16x64xf32> to vector<16x64xbf16>
    %c1_46 = arith.constant 1 : index
    %c0_47 = arith.constant 0 : index
    %c0_48 = arith.constant 0 : index
    %62 = vector.load %arg6[%c1_46, %c0_47, %c0_48] : memref<3x64x64xbf16, #tpu.memory_space<vmem>>, vector<1x64x64xbf16>
    %63 = vector.shape_cast %62 : vector<1x64x64xbf16> to vector<64x64xbf16>
    %cst_49 = arith.constant dense<0.000000e+00> : vector<16x64xf32>
    %64 = tpu.matmul %61, %63, %cst_49 {dimension_numbers = #tpu.dot_dimension_numbers<[1], [0], [0], [1], [0, 0, 1, 1], [], []>} : vector<16x64xbf16>, vector<64x64xbf16>, vector<16x64xf32> -> vector<16x64xf32>
    %65 = arith.addf %59, %64 : vector<16x64xf32>
    %c9_50 = arith.constant 9 : index
    %c0_51 = arith.constant 0 : index
    %66 = vector.load %arg14[%c9_50, %c0_51] : memref<32x64xf32, #tpu.memory_space<vmem>>, vector<16x64xf32>
    %67 = arith.truncf %66 : vector<16x64xf32> to vector<16x64xbf16>
    %c2_52 = arith.constant 2 : index
    %c0_53 = arith.constant 0 : index
    %c0_54 = arith.constant 0 : index
    %68 = vector.load %arg6[%c2_52, %c0_53, %c0_54] : memref<3x64x64xbf16, #tpu.memory_space<vmem>>, vector<1x64x64xbf16>
    %69 = vector.shape_cast %68 : vector<1x64x64xbf16> to vector<64x64xbf16>
    %cst_55 = arith.constant dense<0.000000e+00> : vector<16x64xf32>
    %70 = tpu.matmul %67, %69, %cst_55 {dimension_numbers = #tpu.dot_dimension_numbers<[1], [0], [0], [1], [0, 0, 1, 1], [], []>} : vector<16x64xbf16>, vector<64x64xbf16>, vector<16x64xf32> -> vector<16x64xf32>
    %71 = arith.addf %65, %70 : vector<16x64xf32>
    %72 = vector.broadcast %51 : vector<1x64xf32> to vector<16x64xf32>
    %73 = arith.addf %71, %72 : vector<16x64xf32>
    %cst_56 = arith.constant 0.000000e+00 : f32
    %74 = vector.broadcast %cst_56 : f32 to vector<16x64xf32>
    %75 = arith.maximumf %73, %74 : vector<16x64xf32>
    %c0_57 = arith.constant 0 : index
    %c0_58 = arith.constant 0 : index
    %76 = vector.load %arg8[%c0_57, %c0_58] : memref<1x64xf32, #tpu.memory_space<vmem>>, vector<1x64xf32>
    %c0_59 = arith.constant 0 : index
    %c0_60 = arith.constant 0 : index
    %77 = vector.load %arg9[%c0_59, %c0_60] : memref<1x64xf32, #tpu.memory_space<vmem>>, vector<1x64xf32>
    %cst_61 = arith.constant dense<0.000000e+00> : vector<16xf32>
    %78 = vector.multi_reduction <add>, %75, %cst_61 [1] : vector<16x64xf32> to vector<16xf32>
    %79 = vector.shape_cast %78 : vector<16xf32> to vector<16x1xf32>
    %cst_62 = arith.constant 6.400000e+01 : f32
    %80 = vector.broadcast %cst_62 : f32 to vector<16x1xf32>
    %81 = arith.divf %79, %80 : vector<16x1xf32>
    %82 = vector.broadcast %81 : vector<16x1xf32> to vector<16x64xf32>
    %83 = arith.subf %75, %82 : vector<16x64xf32>
    %84 = arith.mulf %83, %83 : vector<16x64xf32>
    %cst_63 = arith.constant dense<0.000000e+00> : vector<16xf32>
    %85 = vector.multi_reduction <add>, %84, %cst_63 [1] : vector<16x64xf32> to vector<16xf32>
    %86 = vector.shape_cast %85 : vector<16xf32> to vector<16x1xf32>
    %cst_64 = arith.constant 6.400000e+01 : f32
    %87 = vector.broadcast %cst_64 : f32 to vector<16x1xf32>
    %88 = arith.divf %86, %87 : vector<16x1xf32>
    %89 = vector.broadcast %81 : vector<16x1xf32> to vector<16x64xf32>
    %90 = arith.subf %75, %89 : vector<16x64xf32>
    %cst_65 = arith.constant 9.99999974E-6 : f32
    %91 = vector.broadcast %cst_65 : f32 to vector<16x1xf32>
    %92 = arith.addf %88, %91 : vector<16x1xf32>
    %93 = math.rsqrt %92 : vector<16x1xf32>
    %94 = vector.broadcast %93 : vector<16x1xf32> to vector<16x64xf32>
    %95 = arith.mulf %90, %94 : vector<16x64xf32>
    %96 = vector.broadcast %76 : vector<1x64xf32> to vector<16x64xf32>
    %97 = arith.mulf %95, %96 : vector<16x64xf32>
    %98 = vector.broadcast %77 : vector<1x64xf32> to vector<16x64xf32>
    %99 = arith.addf %97, %98 : vector<16x64xf32>
    %c0_66 = arith.constant 0 : index
    %c0_67 = arith.constant 0 : index
    %100 = vector.load %arg10[%c0_66, %c0_67] : memref<1x64xf32, #tpu.memory_space<vmem>>, vector<1x64xf32>
    %101 = vector.broadcast %100 : vector<1x64xf32> to vector<16x64xf32>
    %102 = arith.mulf %99, %101 : vector<16x64xf32>
    %cst_68 = arith.constant dense<0.000000e+00> : vector<16xf32>
    %103 = vector.multi_reduction <add>, %102, %cst_68 [1] : vector<16x64xf32> to vector<16xf32>
    %104 = vector.shape_cast %103 : vector<16xf32> to vector<16x1xf32>
    %c0_69 = arith.constant 0 : index
    %c0_70 = arith.constant 0 : index
    %105 = vector.load %arg11[%c0_69, %c0_70] : memref<1x1xf32, #tpu.memory_space<vmem>>, vector<1x1xf32>
    %106 = vector.broadcast %105 : vector<1x1xf32> to vector<16x1xf32>
    %107 = arith.addf %104, %106 : vector<16x1xf32>
    %c0_71 = arith.constant 0 : index
    %c0_72 = arith.constant 0 : index
    %c0_73 = arith.constant 0 : index
    %108 = vector.load %arg12[%c0_71, %c0_72, %c0_73] : memref<1x16x1xf32, #tpu.memory_space<vmem>>, vector<1x16x1xf32>
    %109 = vector.shape_cast %108 : vector<1x16x1xf32> to vector<16x1xf32>
    %110 = vector.shape_cast %107 : vector<16x1xf32> to vector<1x16x1xf32>
    tpu.vector_store %arg12[%c0_71, %c0_72, %c0_73], %110 {strides = array<i32>} : memref<1x16x1xf32, #tpu.memory_space<vmem>>, vector<1x16x1xf32>,
    return
  }
  func.func @transform_0(%arg0: i32) -> (i32, i32, i32) {
    %c0_i32 = arith.constant 0 : i32
    %c0_i32_0 = arith.constant 0 : i32
    %c0_i32_1 = arith.constant 0 : i32
    return %arg0, %c0_i32, %c0_i32_0 : i32, i32, i32
  }
  func.func @transform_1(%arg0: i32) -> (i32, i32, i32) {
    %c0_i32 = arith.constant 0 : i32
    %c0_i32_0 = arith.constant 0 : i32
    %c0_i32_1 = arith.constant 0 : i32
    %c0_i32_2 = arith.constant 0 : i32
    return %c0_i32, %c0_i32_0, %c0_i32_1 : i32, i32, i32
  }
  func.func @transform_2(%arg0: i32) -> (i32, i32) {
    %c0_i32 = arith.constant 0 : i32
    %c0_i32_0 = arith.constant 0 : i32
    %c0_i32_1 = arith.constant 0 : i32
    return %c0_i32, %c0_i32_0 : i32, i32
  }
  func.func @transform_3(%arg0: i32) -> (i32, i32) {
    %c0_i32 = arith.constant 0 : i32
    %c0_i32_0 = arith.constant 0 : i32
    %c0_i32_1 = arith.constant 0 : i32
    return %c0_i32, %c0_i32_0 : i32, i32
  }
  func.func @transform_4(%arg0: i32) -> (i32, i32) {
    %c0_i32 = arith.constant 0 : i32
    %c0_i32_0 = arith.constant 0 : i32
    %c0_i32_1 = arith.constant 0 : i32
    return %c0_i32, %c0_i32_0 : i32, i32
  }
  func.func @transform_5(%arg0: i32) -> (i32, i32, i32) {
    %c0_i32 = arith.constant 0 : i32
    %c0_i32_0 = arith.constant 0 : i32
    %c0_i32_1 = arith.constant 0 : i32
    %c0_i32_2 = arith.constant 0 : i32
    return %c0_i32, %c0_i32_0, %c0_i32_1 : i32, i32, i32
  }
  func.func @transform_6(%arg0: i32) -> (i32, i32) {
    %c0_i32 = arith.constant 0 : i32
    %c0_i32_0 = arith.constant 0 : i32
    %c0_i32_1 = arith.constant 0 : i32
    return %c0_i32, %c0_i32_0 : i32, i32
  }
  func.func @transform_7(%arg0: i32) -> (i32, i32) {
    %c0_i32 = arith.constant 0 : i32
    %c0_i32_0 = arith.constant 0 : i32
    %c0_i32_1 = arith.constant 0 : i32
    return %c0_i32, %c0_i32_0 : i32, i32
  }
  func.func @transform_8(%arg0: i32) -> (i32, i32) {
    %c0_i32 = arith.constant 0 : i32
    %c0_i32_0 = arith.constant 0 : i32
    %c0_i32_1 = arith.constant 0 : i32
    return %c0_i32, %c0_i32_0 : i32, i32
  }
  func.func @transform_9(%arg0: i32) -> (i32, i32) {
    %c0_i32 = arith.constant 0 : i32
    %c0_i32_0 = arith.constant 0 : i32
    %c0_i32_1 = arith.constant 0 : i32
    return %c0_i32, %c0_i32_0 : i32, i32
  }
  func.func @transform_10(%arg0: i32) -> (i32, i32) {
    %c0_i32 = arith.constant 0 : i32
    %c0_i32_0 = arith.constant 0 : i32
    %c0_i32_1 = arith.constant 0 : i32
    return %c0_i32, %c0_i32_0 : i32, i32
  }
  func.func @transform_11(%arg0: i32) -> (i32, i32, i32) {
    %c0_i32 = arith.constant 0 : i32
    %c0_i32_0 = arith.constant 0 : i32
    %c0_i32_1 = arith.constant 0 : i32
    return %arg0, %c0_i32, %c0_i32_0 : i32, i32, i32
  }
}

module attributes {stable_mosaic.version = 11 : i64} {
  func.func @_var_pred_kernel(%arg0: i32, %arg1: memref<1x8x32xf32, #tpu.memory_space<vmem>>, %arg2: memref<3x32x64xbf16, #tpu.memory_space<vmem>>, %arg3: memref<1x64xf32, #tpu.memory_space<vmem>>, %arg4: memref<1x64xf32, #tpu.memory_space<vmem>>, %arg5: memref<1x64xf32, #tpu.memory_space<vmem>>, %arg6: memref<3x64x64xbf16, #tpu.memory_space<vmem>>, %arg7: memref<1x64xf32, #tpu.memory_space<vmem>>, %arg8: memref<1x64xf32, #tpu.memory_space<vmem>>, %arg9: memref<1x64xf32, #tpu.memory_space<vmem>>, %arg10: memref<1x64xf32, #tpu.memory_space<vmem>>, %arg11: memref<1x1xf32, #tpu.memory_space<vmem>>, %arg12: memref<1x8x1xf32, #tpu.memory_space<vmem>>, %arg13: memref<24x32xf32, #tpu.memory_space<vmem>>, %arg14: memref<24x64xf32, #tpu.memory_space<vmem>>) attributes {dimension_semantics = [#tpu.dimension_semantics<parallel>], iteration_bounds = array<i64: 2>, scalar_prefetch = 0 : i64, scratch_operands = 2 : i64, tpu.core_type = #tpu.core_type<tc>, window_params = [{transform_indices = @transform_0, window_bounds = array<i64: 1, 8, 32>}, {pipeline_mode = #tpu.pipeline_mode<synchronous>, transform_indices = @transform_1, window_bounds = array<i64: 3, 32, 64>}, {pipeline_mode = #tpu.pipeline_mode<synchronous>, transform_indices = @transform_2, window_bounds = array<i64: 1, 64>}, {pipeline_mode = #tpu.pipeline_mode<synchronous>, transform_indices = @transform_3, window_bounds = array<i64: 1, 64>}, {pipeline_mode = #tpu.pipeline_mode<synchronous>, transform_indices = @transform_4, window_bounds = array<i64: 1, 64>}, {pipeline_mode = #tpu.pipeline_mode<synchronous>, transform_indices = @transform_5, window_bounds = array<i64: 3, 64, 64>}, {pipeline_mode = #tpu.pipeline_mode<synchronous>, transform_indices = @transform_6, window_bounds = array<i64: 1, 64>}, {pipeline_mode = #tpu.pipeline_mode<synchronous>, transform_indices = @transform_7, window_bounds = array<i64: 1, 64>}, {pipeline_mode = #tpu.pipeline_mode<synchronous>, transform_indices = @transform_8, window_bounds = array<i64: 1, 64>}, {pipeline_mode = #tpu.pipeline_mode<synchronous>, transform_indices = @transform_9, window_bounds = array<i64: 1, 64>}, {pipeline_mode = #tpu.pipeline_mode<synchronous>, transform_indices = @transform_10, window_bounds = array<i64: 1, 1>}, {transform_indices = @transform_11, window_bounds = array<i64: 1, 8, 1>}]} {
    %c0 = arith.constant 0 : index
    %c0_0 = arith.constant 0 : index
    %c0_1 = arith.constant 0 : index
    %0 = vector.load %arg1[%c0, %c0_0, %c0_1] : memref<1x8x32xf32, #tpu.memory_space<vmem>>, vector<1x8x32xf32>
    %1 = vector.shape_cast %0 : vector<1x8x32xf32> to vector<8x32xf32>
    %c0_2 = arith.constant 0 : index
    %c0_3 = arith.constant 0 : index
    %2 = vector.load %arg3[%c0_2, %c0_3] : memref<1x64xf32, #tpu.memory_space<vmem>>, vector<1x64xf32>
    %cst = arith.constant 0.000000e+00 : f32
    %3 = vector.broadcast %cst : f32 to vector<24x32xf32>
    %c0_4 = arith.constant 0 : index
    %c0_5 = arith.constant 0 : index
    %4 = vector.load %arg13[%c0_4, %c0_5] : memref<24x32xf32, #tpu.memory_space<vmem>>, vector<24x32xf32>
    tpu.vector_store %arg13[%c0_4, %c0_5], %3 {strides = array<i32>} : memref<24x32xf32, #tpu.memory_space<vmem>>, vector<24x32xf32>,
    %c8 = arith.constant 8 : index
    %c0_6 = arith.constant 0 : index
    %5 = vector.load %arg13[%c8, %c0_6] : memref<24x32xf32, #tpu.memory_space<vmem>>, vector<8x32xf32>
    tpu.vector_store %arg13[%c8, %c0_6], %1 {strides = array<i32>} : memref<24x32xf32, #tpu.memory_space<vmem>>, vector<8x32xf32>,
    %c7 = arith.constant 7 : index
    %c0_7 = arith.constant 0 : index
    %6 = vector.load %arg13[%c7, %c0_7] : memref<24x32xf32, #tpu.memory_space<vmem>>, vector<8x32xf32>
    %7 = arith.truncf %6 : vector<8x32xf32> to vector<8x32xbf16>
    %c0_8 = arith.constant 0 : index
    %c0_9 = arith.constant 0 : index
    %c0_10 = arith.constant 0 : index
    %8 = vector.load %arg2[%c0_8, %c0_9, %c0_10] : memref<3x32x64xbf16, #tpu.memory_space<vmem>>, vector<1x32x64xbf16>
    %9 = vector.shape_cast %8 : vector<1x32x64xbf16> to vector<32x64xbf16>
    %cst_11 = arith.constant dense<0.000000e+00> : vector<8x64xf32>
    %10 = tpu.matmul %7, %9, %cst_11 {dimension_numbers = #tpu.dot_dimension_numbers<[1], [0], [0], [1], [0, 0, 1, 1], [], []>} : vector<8x32xbf16>, vector<32x64xbf16>, vector<8x64xf32> -> vector<8x64xf32>
    %c8_12 = arith.constant 8 : index
    %c0_13 = arith.constant 0 : index
    %11 = vector.load %arg13[%c8_12, %c0_13] : memref<24x32xf32, #tpu.memory_space<vmem>>, vector<8x32xf32>
    %12 = arith.truncf %11 : vector<8x32xf32> to vector<8x32xbf16>
    %c1 = arith.constant 1 : index
    %c0_14 = arith.constant 0 : index
    %c0_15 = arith.constant 0 : index
    %13 = vector.load %arg2[%c1, %c0_14, %c0_15] : memref<3x32x64xbf16, #tpu.memory_space<vmem>>, vector<1x32x64xbf16>
    %14 = vector.shape_cast %13 : vector<1x32x64xbf16> to vector<32x64xbf16>
    %cst_16 = arith.constant dense<0.000000e+00> : vector<8x64xf32>
    %15 = tpu.matmul %12, %14, %cst_16 {dimension_numbers = #tpu.dot_dimension_numbers<[1], [0], [0], [1], [0, 0, 1, 1], [], []>} : vector<8x32xbf16>, vector<32x64xbf16>, vector<8x64xf32> -> vector<8x64xf32>
    %16 = arith.addf %10, %15 : vector<8x64xf32>
    %c9 = arith.constant 9 : index
    %c0_17 = arith.constant 0 : index
    %17 = vector.load %arg13[%c9, %c0_17] : memref<24x32xf32, #tpu.memory_space<vmem>>, vector<8x32xf32>
    %18 = arith.truncf %17 : vector<8x32xf32> to vector<8x32xbf16>
    %c2 = arith.constant 2 : index
    %c0_18 = arith.constant 0 : index
    %c0_19 = arith.constant 0 : index
    %19 = vector.load %arg2[%c2, %c0_18, %c0_19] : memref<3x32x64xbf16, #tpu.memory_space<vmem>>, vector<1x32x64xbf16>
    %20 = vector.shape_cast %19 : vector<1x32x64xbf16> to vector<32x64xbf16>
    %cst_20 = arith.constant dense<0.000000e+00> : vector<8x64xf32>
    %21 = tpu.matmul %18, %20, %cst_20 {dimension_numbers = #tpu.dot_dimension_numbers<[1], [0], [0], [1], [0, 0, 1, 1], [], []>} : vector<8x32xbf16>, vector<32x64xbf16>, vector<8x64xf32> -> vector<8x64xf32>
    %22 = arith.addf %16, %21 : vector<8x64xf32>
    %23 = vector.broadcast %2 : vector<1x64xf32> to vector<8x64xf32>
    %24 = arith.addf %22, %23 : vector<8x64xf32>
    %cst_21 = arith.constant 0.000000e+00 : f32
    %25 = vector.broadcast %cst_21 : f32 to vector<8x64xf32>
    %26 = arith.maximumf %24, %25 : vector<8x64xf32>
    %c0_22 = arith.constant 0 : index
    %c0_23 = arith.constant 0 : index
    %27 = vector.load %arg4[%c0_22, %c0_23] : memref<1x64xf32, #tpu.memory_space<vmem>>, vector<1x64xf32>
    %c0_24 = arith.constant 0 : index
    %c0_25 = arith.constant 0 : index
    %28 = vector.load %arg5[%c0_24, %c0_25] : memref<1x64xf32, #tpu.memory_space<vmem>>, vector<1x64xf32>
    %cst_26 = arith.constant dense<0.000000e+00> : vector<8xf32>
    %29 = vector.multi_reduction <add>, %26, %cst_26 [1] : vector<8x64xf32> to vector<8xf32>
    %30 = vector.shape_cast %29 : vector<8xf32> to vector<8x1xf32>
    %cst_27 = arith.constant 6.400000e+01 : f32
    %31 = vector.broadcast %cst_27 : f32 to vector<8x1xf32>
    %32 = arith.divf %30, %31 : vector<8x1xf32>
    %33 = vector.broadcast %32 : vector<8x1xf32> to vector<8x64xf32>
    %34 = arith.subf %26, %33 : vector<8x64xf32>
    %35 = arith.mulf %34, %34 : vector<8x64xf32>
    %cst_28 = arith.constant dense<0.000000e+00> : vector<8xf32>
    %36 = vector.multi_reduction <add>, %35, %cst_28 [1] : vector<8x64xf32> to vector<8xf32>
    %37 = vector.shape_cast %36 : vector<8xf32> to vector<8x1xf32>
    %cst_29 = arith.constant 6.400000e+01 : f32
    %38 = vector.broadcast %cst_29 : f32 to vector<8x1xf32>
    %39 = arith.divf %37, %38 : vector<8x1xf32>
    %40 = vector.broadcast %32 : vector<8x1xf32> to vector<8x64xf32>
    %41 = arith.subf %26, %40 : vector<8x64xf32>
    %cst_30 = arith.constant 9.99999974E-6 : f32
    %42 = vector.broadcast %cst_30 : f32 to vector<8x1xf32>
    %43 = arith.addf %39, %42 : vector<8x1xf32>
    %44 = math.rsqrt %43 : vector<8x1xf32>
    %45 = vector.broadcast %44 : vector<8x1xf32> to vector<8x64xf32>
    %46 = arith.mulf %41, %45 : vector<8x64xf32>
    %47 = vector.broadcast %27 : vector<1x64xf32> to vector<8x64xf32>
    %48 = arith.mulf %46, %47 : vector<8x64xf32>
    %49 = vector.broadcast %28 : vector<1x64xf32> to vector<8x64xf32>
    %50 = arith.addf %48, %49 : vector<8x64xf32>
    %c0_31 = arith.constant 0 : index
    %c0_32 = arith.constant 0 : index
    %51 = vector.load %arg7[%c0_31, %c0_32] : memref<1x64xf32, #tpu.memory_space<vmem>>, vector<1x64xf32>
    %cst_33 = arith.constant 0.000000e+00 : f32
    %52 = vector.broadcast %cst_33 : f32 to vector<24x64xf32>
    %c0_34 = arith.constant 0 : index
    %c0_35 = arith.constant 0 : index
    %53 = vector.load %arg14[%c0_34, %c0_35] : memref<24x64xf32, #tpu.memory_space<vmem>>, vector<24x64xf32>
    tpu.vector_store %arg14[%c0_34, %c0_35], %52 {strides = array<i32>} : memref<24x64xf32, #tpu.memory_space<vmem>>, vector<24x64xf32>,
    %c8_36 = arith.constant 8 : index
    %c0_37 = arith.constant 0 : index
    %54 = vector.load %arg14[%c8_36, %c0_37] : memref<24x64xf32, #tpu.memory_space<vmem>>, vector<8x64xf32>
    tpu.vector_store %arg14[%c8_36, %c0_37], %50 {strides = array<i32>} : memref<24x64xf32, #tpu.memory_space<vmem>>, vector<8x64xf32>,
    %c7_38 = arith.constant 7 : index
    %c0_39 = arith.constant 0 : index
    %55 = vector.load %arg14[%c7_38, %c0_39] : memref<24x64xf32, #tpu.memory_space<vmem>>, vector<8x64xf32>
    %56 = arith.truncf %55 : vector<8x64xf32> to vector<8x64xbf16>
    %c0_40 = arith.constant 0 : index
    %c0_41 = arith.constant 0 : index
    %c0_42 = arith.constant 0 : index
    %57 = vector.load %arg6[%c0_40, %c0_41, %c0_42] : memref<3x64x64xbf16, #tpu.memory_space<vmem>>, vector<1x64x64xbf16>
    %58 = vector.shape_cast %57 : vector<1x64x64xbf16> to vector<64x64xbf16>
    %cst_43 = arith.constant dense<0.000000e+00> : vector<8x64xf32>
    %59 = tpu.matmul %56, %58, %cst_43 {dimension_numbers = #tpu.dot_dimension_numbers<[1], [0], [0], [1], [0, 0, 1, 1], [], []>} : vector<8x64xbf16>, vector<64x64xbf16>, vector<8x64xf32> -> vector<8x64xf32>
    %c8_44 = arith.constant 8 : index
    %c0_45 = arith.constant 0 : index
    %60 = vector.load %arg14[%c8_44, %c0_45] : memref<24x64xf32, #tpu.memory_space<vmem>>, vector<8x64xf32>
    %61 = arith.truncf %60 : vector<8x64xf32> to vector<8x64xbf16>
    %c1_46 = arith.constant 1 : index
    %c0_47 = arith.constant 0 : index
    %c0_48 = arith.constant 0 : index
    %62 = vector.load %arg6[%c1_46, %c0_47, %c0_48] : memref<3x64x64xbf16, #tpu.memory_space<vmem>>, vector<1x64x64xbf16>
    %63 = vector.shape_cast %62 : vector<1x64x64xbf16> to vector<64x64xbf16>
    %cst_49 = arith.constant dense<0.000000e+00> : vector<8x64xf32>
    %64 = tpu.matmul %61, %63, %cst_49 {dimension_numbers = #tpu.dot_dimension_numbers<[1], [0], [0], [1], [0, 0, 1, 1], [], []>} : vector<8x64xbf16>, vector<64x64xbf16>, vector<8x64xf32> -> vector<8x64xf32>
    %65 = arith.addf %59, %64 : vector<8x64xf32>
    %c9_50 = arith.constant 9 : index
    %c0_51 = arith.constant 0 : index
    %66 = vector.load %arg14[%c9_50, %c0_51] : memref<24x64xf32, #tpu.memory_space<vmem>>, vector<8x64xf32>
    %67 = arith.truncf %66 : vector<8x64xf32> to vector<8x64xbf16>
    %c2_52 = arith.constant 2 : index
    %c0_53 = arith.constant 0 : index
    %c0_54 = arith.constant 0 : index
    %68 = vector.load %arg6[%c2_52, %c0_53, %c0_54] : memref<3x64x64xbf16, #tpu.memory_space<vmem>>, vector<1x64x64xbf16>
    %69 = vector.shape_cast %68 : vector<1x64x64xbf16> to vector<64x64xbf16>
    %cst_55 = arith.constant dense<0.000000e+00> : vector<8x64xf32>
    %70 = tpu.matmul %67, %69, %cst_55 {dimension_numbers = #tpu.dot_dimension_numbers<[1], [0], [0], [1], [0, 0, 1, 1], [], []>} : vector<8x64xbf16>, vector<64x64xbf16>, vector<8x64xf32> -> vector<8x64xf32>
    %71 = arith.addf %65, %70 : vector<8x64xf32>
    %72 = vector.broadcast %51 : vector<1x64xf32> to vector<8x64xf32>
    %73 = arith.addf %71, %72 : vector<8x64xf32>
    %cst_56 = arith.constant 0.000000e+00 : f32
    %74 = vector.broadcast %cst_56 : f32 to vector<8x64xf32>
    %75 = arith.maximumf %73, %74 : vector<8x64xf32>
    %c0_57 = arith.constant 0 : index
    %c0_58 = arith.constant 0 : index
    %76 = vector.load %arg8[%c0_57, %c0_58] : memref<1x64xf32, #tpu.memory_space<vmem>>, vector<1x64xf32>
    %c0_59 = arith.constant 0 : index
    %c0_60 = arith.constant 0 : index
    %77 = vector.load %arg9[%c0_59, %c0_60] : memref<1x64xf32, #tpu.memory_space<vmem>>, vector<1x64xf32>
    %cst_61 = arith.constant dense<0.000000e+00> : vector<8xf32>
    %78 = vector.multi_reduction <add>, %75, %cst_61 [1] : vector<8x64xf32> to vector<8xf32>
    %79 = vector.shape_cast %78 : vector<8xf32> to vector<8x1xf32>
    %cst_62 = arith.constant 6.400000e+01 : f32
    %80 = vector.broadcast %cst_62 : f32 to vector<8x1xf32>
    %81 = arith.divf %79, %80 : vector<8x1xf32>
    %82 = vector.broadcast %81 : vector<8x1xf32> to vector<8x64xf32>
    %83 = arith.subf %75, %82 : vector<8x64xf32>
    %84 = arith.mulf %83, %83 : vector<8x64xf32>
    %cst_63 = arith.constant dense<0.000000e+00> : vector<8xf32>
    %85 = vector.multi_reduction <add>, %84, %cst_63 [1] : vector<8x64xf32> to vector<8xf32>
    %86 = vector.shape_cast %85 : vector<8xf32> to vector<8x1xf32>
    %cst_64 = arith.constant 6.400000e+01 : f32
    %87 = vector.broadcast %cst_64 : f32 to vector<8x1xf32>
    %88 = arith.divf %86, %87 : vector<8x1xf32>
    %89 = vector.broadcast %81 : vector<8x1xf32> to vector<8x64xf32>
    %90 = arith.subf %75, %89 : vector<8x64xf32>
    %cst_65 = arith.constant 9.99999974E-6 : f32
    %91 = vector.broadcast %cst_65 : f32 to vector<8x1xf32>
    %92 = arith.addf %88, %91 : vector<8x1xf32>
    %93 = math.rsqrt %92 : vector<8x1xf32>
    %94 = vector.broadcast %93 : vector<8x1xf32> to vector<8x64xf32>
    %95 = arith.mulf %90, %94 : vector<8x64xf32>
    %96 = vector.broadcast %76 : vector<1x64xf32> to vector<8x64xf32>
    %97 = arith.mulf %95, %96 : vector<8x64xf32>
    %98 = vector.broadcast %77 : vector<1x64xf32> to vector<8x64xf32>
    %99 = arith.addf %97, %98 : vector<8x64xf32>
    %c0_66 = arith.constant 0 : index
    %c0_67 = arith.constant 0 : index
    %100 = vector.load %arg10[%c0_66, %c0_67] : memref<1x64xf32, #tpu.memory_space<vmem>>, vector<1x64xf32>
    %101 = vector.broadcast %100 : vector<1x64xf32> to vector<8x64xf32>
    %102 = arith.mulf %99, %101 : vector<8x64xf32>
    %cst_68 = arith.constant dense<0.000000e+00> : vector<8xf32>
    %103 = vector.multi_reduction <add>, %102, %cst_68 [1] : vector<8x64xf32> to vector<8xf32>
    %104 = vector.shape_cast %103 : vector<8xf32> to vector<8x1xf32>
    %c0_69 = arith.constant 0 : index
    %c0_70 = arith.constant 0 : index
    %105 = vector.load %arg11[%c0_69, %c0_70] : memref<1x1xf32, #tpu.memory_space<vmem>>, vector<1x1xf32>
    %106 = vector.broadcast %105 : vector<1x1xf32> to vector<8x1xf32>
    %107 = arith.addf %104, %106 : vector<8x1xf32>
    %c0_71 = arith.constant 0 : index
    %c0_72 = arith.constant 0 : index
    %c0_73 = arith.constant 0 : index
    %108 = vector.load %arg12[%c0_71, %c0_72, %c0_73] : memref<1x8x1xf32, #tpu.memory_space<vmem>>, vector<1x8x1xf32>
    %109 = vector.shape_cast %108 : vector<1x8x1xf32> to vector<8x1xf32>
    %110 = vector.shape_cast %107 : vector<8x1xf32> to vector<1x8x1xf32>
    tpu.vector_store %arg12[%c0_71, %c0_72, %c0_73], %110 {strides = array<i32>} : memref<1x8x1xf32, #tpu.memory_space<vmem>>, vector<1x8x1xf32>,
    return
  }
  func.func @transform_0(%arg0: i32) -> (i32, i32, i32) {
    %c0_i32 = arith.constant 0 : i32
    %c0_i32_0 = arith.constant 0 : i32
    %c0_i32_1 = arith.constant 0 : i32
    return %arg0, %c0_i32, %c0_i32_0 : i32, i32, i32
  }
  func.func @transform_1(%arg0: i32) -> (i32, i32, i32) {
    %c0_i32 = arith.constant 0 : i32
    %c0_i32_0 = arith.constant 0 : i32
    %c0_i32_1 = arith.constant 0 : i32
    %c0_i32_2 = arith.constant 0 : i32
    return %c0_i32, %c0_i32_0, %c0_i32_1 : i32, i32, i32
  }
  func.func @transform_2(%arg0: i32) -> (i32, i32) {
    %c0_i32 = arith.constant 0 : i32
    %c0_i32_0 = arith.constant 0 : i32
    %c0_i32_1 = arith.constant 0 : i32
    return %c0_i32, %c0_i32_0 : i32, i32
  }
  func.func @transform_3(%arg0: i32) -> (i32, i32) {
    %c0_i32 = arith.constant 0 : i32
    %c0_i32_0 = arith.constant 0 : i32
    %c0_i32_1 = arith.constant 0 : i32
    return %c0_i32, %c0_i32_0 : i32, i32
  }
  func.func @transform_4(%arg0: i32) -> (i32, i32) {
    %c0_i32 = arith.constant 0 : i32
    %c0_i32_0 = arith.constant 0 : i32
    %c0_i32_1 = arith.constant 0 : i32
    return %c0_i32, %c0_i32_0 : i32, i32
  }
  func.func @transform_5(%arg0: i32) -> (i32, i32, i32) {
    %c0_i32 = arith.constant 0 : i32
    %c0_i32_0 = arith.constant 0 : i32
    %c0_i32_1 = arith.constant 0 : i32
    %c0_i32_2 = arith.constant 0 : i32
    return %c0_i32, %c0_i32_0, %c0_i32_1 : i32, i32, i32
  }
  func.func @transform_6(%arg0: i32) -> (i32, i32) {
    %c0_i32 = arith.constant 0 : i32
    %c0_i32_0 = arith.constant 0 : i32
    %c0_i32_1 = arith.constant 0 : i32
    return %c0_i32, %c0_i32_0 : i32, i32
  }
  func.func @transform_7(%arg0: i32) -> (i32, i32) {
    %c0_i32 = arith.constant 0 : i32
    %c0_i32_0 = arith.constant 0 : i32
    %c0_i32_1 = arith.constant 0 : i32
    return %c0_i32, %c0_i32_0 : i32, i32
  }
  func.func @transform_8(%arg0: i32) -> (i32, i32) {
    %c0_i32 = arith.constant 0 : i32
    %c0_i32_0 = arith.constant 0 : i32
    %c0_i32_1 = arith.constant 0 : i32
    return %c0_i32, %c0_i32_0 : i32, i32
  }
  func.func @transform_9(%arg0: i32) -> (i32, i32) {
    %c0_i32 = arith.constant 0 : i32
    %c0_i32_0 = arith.constant 0 : i32
    %c0_i32_1 = arith.constant 0 : i32
    return %c0_i32, %c0_i32_0 : i32, i32
  }
  func.func @transform_10(%arg0: i32) -> (i32, i32) {
    %c0_i32 = arith.constant 0 : i32
    %c0_i32_0 = arith.constant 0 : i32
    %c0_i32_1 = arith.constant 0 : i32
    return %c0_i32, %c0_i32_0 : i32, i32
  }
  func.func @transform_11(%arg0: i32) -> (i32, i32, i32) {
    %c0_i32 = arith.constant 0 : i32
    %c0_i32_0 = arith.constant 0 : i32
    %c0_i32_1 = arith.constant 0 : i32
    return %arg0, %c0_i32, %c0_i32_0 : i32, i32, i32
  }
}

</mosaic_0001>

<bundles_post_ra>
// kernel: run.13
= control target key start
LH: loop header
LB: loop body
LE: loop exit
PB: predicated region body
PF: predicated region fallthrough
CT: control target
= control target key end

     0   :  { %s1058_s27 = smov 0   ;;  %s1181_s0 = inlined_call_operand.vmem [shape: f32[2,8,32], index: 0, kind: input, shape index: {}]   ;;  %s1182_s1 = inlined_call_operand.vmem [shape: bf16[9,32,64], index: 1, kind: input, shape index: {}]   ;;  %s1183_s2 = inlined_call_operand.vmem [shape: f32[1,64], index: 2, kind: input, shape index: {}]   ;;  %s1184_s3 = inlined_call_operand.vmem [shape: bf16[1,64,32], index: 3, kind: input, shape index: {}]   ;;  %s1185_s4 = inlined_call_operand.vmem [shape: f32[1,32], index: 4, kind: input, shape index: {}]   ;;  %s1186_s5 = inlined_call_operand.vmem [shape: f32[1,32], index: 5, kind: input, shape index: {}]   ;;  %s1187_s6 = inlined_call_operand.vmem [shape: f32[1,32], index: 6, kind: input, shape index: {}]   ;;  %s1188_s7 = inlined_call_operand.vmem [shape: f32[2,8,1], index: 7, kind: input, shape index: {}]   ;;  %s1189_s8 = inlined_call_operand.vmem [shape: f32[2,8,32], index: 8, kind: output, shape index: {}]  }
   0x1 LB: > { %s819_s28 = sadd.s32 4294967295, %s1008_s27   ;;  %p823_p0 = scmp.ge.s32.totalorder %s1008_s27, 1  ;;  %s1008_s27 = sphi %s1058_s27, %s18_s27  }
   0x2   : > { %p270_p1 = scmp.lt.s32.totalorder %s1008_s27, 3 }
   0x4   : > { %p271_p2 = pnand %p823_p0, %p270_p1 }
   0x5   : > { %p306_p3 = scmp.lt.s32.totalorder (!%p271_p2), %s819_s28, 1 }
   0x6   : > { %274 = sbr.rel (%p271_p2) target bundleno = 593 (0x251), region = 52 }
   0xb   : > { %v962_v0 = vld [vmem:[%s1182_s1 + $0x18] sm:$0xff]  ;;  %v960_v1 = vld [vmem:[%s1182_s1 + $0x8] sm:$0xff]  ;;  %vm321_vm0 = vcmask 261120   ;;  %v1010_v4 = vmov 0.0   ;;  %v961_v5 = vld [vmem:[%s1182_s1 + $0x10] sm:$0xff]  ;;  %s1191_s28 = smov (!%p306_p3, %s819_s28), 1 }
   0xc   : > { %v964_v2 = vld [vmem:[%s1182_s1 + $0x28] sm:$0xff]  ;;  %v966_v3 = vld [vmem:[%s1182_s1 + $0x38] sm:$0xff]  ;;  %322 = vst.msk [vmem:[#allocation2] sm:$0xff] %vm321_vm0, %v1010_v4  ;;  %360 = vmatpush.bf16.msra.mxu0 %v962_v0  ;;  %388 = vmatpush.bf16.msra.mxu1 %v960_v1  ;;  %v959_v6 = vld [vmem:[%s1182_s1] sm:$0xff]  ;;  %s1093_s23 = sshll.u32 %s1191_s28, 3  ;;  %vm689_vm1 = vcmask 523264  }
   0xd   : > { %323 = vst.msk [vmem:[#allocation2 + $0x8] sm:$0xff] %vm321_vm0, %v1010_v4  ;;  %423 = vmatpush.bf16.msra.mxu2 %v964_v2  ;;  %459 = vmatpush.bf16.msra.mxu3 %v966_v3  ;;  %v963_v7 = vld [vmem:[%s1182_s1 + $0x20] sm:$0xff]  ;;  %v965_v8 = vld [vmem:[%s1182_s1 + $0x30] sm:$0xff]  ;;  %v968_v9 = vld [vmem:[%s1182_s1 + $0x48] sm:$0xff]  ;;  %s309_s10 = scalar_lea.vmem %s1181_s0, %s1093_s23  ;;  %s313_s20 = scalar_lea.vmem %s1188_s7, %s1093_s23 }
   0xe   : > { %324 = vst.msk [vmem:[#allocation2 + $0x10] sm:$0xff] %vm321_vm0, %v1010_v4  ;;  %v972_v10 = vld [vmem:[%s1182_s1 + $0x68] sm:$0xff]  ;;  %v974_v11 = vld [vmem:[%s1182_s1 + $0x78] sm:$0xff]  ;;  %v1111_v13 = vld [vmem:[%s309_s10] sm:$0xff]  ;;  %s317_s30 = scalar_lea.vmem %s1189_s8, %s1093_s23 }
   0xf   : > { %v970_v12 = vld [vmem:[%s1182_s1 + $0x58] sm:$0xff]  ;;  %325 = vst.msk [vmem:[#allocation2 + $0x8] sm:$0xff] %vm321_vm0, %v1111_v13  ;;  %v967_v14 = vld [vmem:[%s1182_s1 + $0x40] sm:$0xff]  ;;  %v973_v16 = vld [vmem:[%s1182_s1 + $0x70] sm:$0xff] }
  0x10   : > { %361 = vmatpush.bf16.msra.mxu0 %v961_v5  ;;  %389 = vmatpush.bf16.msra.mxu1 %v959_v6  ;;  %v971_v15 = vld [vmem:[%s1182_s1 + $0x60] sm:$0xff]  ;;  %v969_v17 = vld [vmem:[%s1182_s1 + $0x50] sm:$0xff]  ;;  %v976_v25 = vld [vmem:[%s1182_s1 + $0x88] sm:$0xff] }
  0x11   : > { %424 = vmatpush.bf16.msra.mxu2 %v963_v7  ;;  %460 = vmatpush.bf16.msra.mxu3 %v965_v8  ;;  %v975_v27 = vld [vmem:[%s1182_s1 + $0x80] sm:$0xff]  ;;  %v980_v38 = vld [vmem:[%s1184_s3 + $0x18] sm:$0xff]  ;;  %v979_v39 = vld [vmem:[%s1184_s3 + $0x10] sm:$0xff] }
  0x12   : > { %v978_v42 = vld [vmem:[%s1184_s3 + $0x8] sm:$0xff]  ;;  %v977_v43 = vld [vmem:[%s1184_s3] sm:$0xff] }
  0x13   : > { %v994_v1 = vld [vmem:[%s1183_s2] ss:$0 sm:$0xff] }
  0x14   : > { %495 = vmatpush.bf16.msrb.mxu0 %v968_v9  ;;  %531 = vmatpush.bf16.msrb.mxu1 %v970_v12  ;;  %v995_v8 = vld [vmem:[%s1185_s4] ss:$0 sm:$0xff] }
  0x15   : > { %567 = vmatpush.bf16.msrb.mxu2 %v972_v10  ;;  %603 = vmatpush.bf16.msrb.mxu3 %v974_v11 }
  0x16   : > { %v332_v18 = vld [vmem:[#allocation2 + $0x5] sm:$0xff] }
  0x17   : > { %v326_v19 = vld [vmem:[#allocation2 + $0x4] sm:$0xff]  ;;  %v333_v21 = vpack.c.bf16 %v332_v18, %v332_v18  ;;  %v611_v36 = vld [vmem:[#allocation2 + $0xc] sm:$0xff] }
  0x18   : > { %496 = vmatpush.bf16.msrb.mxu0 %v967_v14  ;;  %532 = vmatpush.bf16.msrb.mxu1 %v969_v17  ;;  %v395_v20 = vld [vmem:[#allocation2 + $0x6] sm:$0xff]  ;;  %v327_v22 = vpack.c.bf16 %v326_v19, %v326_v19  ;;  %v612_v37 = vpack.c.bf16 %v611_v36, %v611_v36  ;;  %v1012_v17 = vmov 0  }
  0x19   : > { %568 = vmatpush.bf16.msrb.mxu2 %v971_v15  ;;  %604 = vmatpush.bf16.msrb.mxu3 %v973_v16  ;;  %v396_v23 = vpack.c.bf16 %v395_v20, %v395_v20  ;;  %v431_v24 = vld [vmem:[#allocation2 + $0x7] sm:$0xff]  ;;  %v1011_v15 = vmov 32.0  }
  0x1a   : > { %v432_v26 = vpack.c.bf16 %v431_v24, %v431_v24  ;;  %839 = vmatmul.msk.bf16.vlgmr.msra.gmra.mxu0 %vm321_vm0, %v333_v21  ;;  %848 = vmatmul.msk.bf16.vlgmr.msra.gmra.mxu1 %vm321_vm0, %v327_v22  ;;  %v467_v28 = vld [vmem:[#allocation2 + $0x8] sm:$0xff]  ;;  %998 = vrcp.f32 %v1011_v15  ;;  %v746_v16 = vld [vmem:[%s313_s20] sm:$0xff] }
  0x1b   : > { %861 = vmatmul.msk.bf16.vlgmr.msra.gmra.mxu2 %vm321_vm0, %v396_v23  ;;  %v503_v29 = vld [vmem:[#allocation2 + $0x9] sm:$0xff]  ;;  %v468_v32 = vpack.c.bf16 %v467_v28, %v467_v28  ;;  %992 = vset.pattern.permute.xlu1 %v1012_v17 }
  0x1c   : > { %874 = vmatmul.msk.bf16.vlgmr.msra.gmra.mxu3 %vm321_vm0, %v432_v26  ;;  %639 = vmatpush.bf16.msra.mxu0 %v976_v25  ;;  %v539_v30 = vld [vmem:[#allocation2 + $0xa] sm:$0xff]  ;;  %v504_v33 = vpack.c.bf16 %v503_v29, %v503_v29 }
  0x1d   : > { %v575_v31 = vld [vmem:[#allocation2 + $0xb] sm:$0xff]  ;;  %v540_v34 = vpack.c.bf16 %v539_v30, %v539_v30  ;;  %697 = vmatpush.bf16.msra.mxu1 %v980_v38  ;;  %993 = vset.pattern.permute.xlu0 %v1012_v17 }
  0x1e   : > { %v576_v35 = vpack.c.bf16 %v575_v31, %v575_v31  ;;  %749 = vperm.xlu1 %992, %v746_v16  }
  0x20   : > { %640 = vmatpush.bf16.msra.mxu0 %v975_v27  ;;  %v999_v18 = vpop.eup %998 }
  0x21   : > { %698 = vmatpush.bf16.msra.mxu1 %v979_v39  ;;  %v713_v19 = vmul.f32 32.0, %v999_v18  ;;  %vm717_vm2 = vweird.f32 %v999_v18  ;;  %v997_v39 = vld [vmem:[%s1187_s6] ss:$0 sm:$0xff] }
  0x23   : > { %v714_v20 = vsub.f32 1.0, %v713_v19 }
  0x25   : > { %699 = vmatpush.bf16.msra.mxu1 %v978_v42  ;;  %v715_v21 = vmul.f32 %v999_v18, %v714_v20 }
  0x29   : > { %700 = vmatpush.bf16.msra.mxu1 %v977_v43 }
  0x2a   : > { %887 = vmatmul.msk.bf16.vlgmr.msrb.gmra.mxu0 %vm321_vm0, %v468_v32  ;;  %900 = vmatmul.msk.bf16.vlgmr.msrb.gmra.mxu1 %vm321_vm0, %v504_v33 }
  0x2b   : > { %913 = vmatmul.msk.bf16.vlgmr.msrb.gmra.mxu2 %vm321_vm0, %v540_v34 }
  0x2c   : > { %926 = vmatmul.msk.bf16.vlgmr.msrb.gmra.mxu3 %vm321_vm0, %v576_v35 }
  0x3a   : > { %939 = vmatmul.msk.bf16.vlgmr.msra.gmra.mxu0 %vm321_vm0, %v612_v37  ;;  %v996_v37 = vld [vmem:[%s1186_s5] ss:$0 sm:$0xff] }
  0x90   : > { %v750_v42 = vpop.permute.xlu1 %749 }
  0x97   : > { %v363_v40 = vpop.f32.mrf.mxu0  ;;  %v391_v41 = vpop.f32.mrf.mxu1 }
  0x98   : > { %v392_v48 = vadd.f32 %v391_v41, %v363_v40 }
  0x9e   : > { %v426_v44 = vpop.f32.mrf.mxu2 }
  0x9f   : > { %v462_v45 = vpop.f32.mrf.mxu3  ;;  %v365_v46 = vpop.f32.mrf.mxu0  ;;  %v430_v49 = vadd.f32 %v426_v44, %v392_v48 }
  0xa0   : > { %v393_v47 = vpop.f32.mrf.mxu1 }
  0xa1   : > { %v466_v54 = vadd.f32 %v462_v45, %v430_v49 }
  0xa6   : > { %v428_v50 = vpop.f32.mrf.mxu2 }
  0xa7   : > { %v464_v51 = vpop.f32.mrf.mxu3  ;;  %v498_v52 = vpop.f32.mrf.mxu0 }
  0xa8   : > { %v534_v53 = vpop.f32.mrf.mxu1  ;;  %v502_v55 = vadd.f32 %v498_v52, %v466_v54 }
  0xaa   : > { %v538_v60 = vadd.f32 %v534_v53, %v502_v55 }
  0xae   : > { %v570_v56 = vpop.f32.mrf.mxu2 }
  0xaf   : > { %v606_v57 = vpop.f32.mrf.mxu3  ;;  %v500_v58 = vpop.f32.mrf.mxu0  ;;  %v574_v61 = vadd.f32 %v570_v56, %v538_v60 }
  0xb0   : > { %v536_v59 = vpop.f32.mrf.mxu1 }
  0xb1   : > { %v610_v62 = vadd.f32 %v606_v57, %v574_v61 }
  0xb6   : > { %v572_v63 = vpop.f32.mrf.mxu2 }
  0xb7   : > { %v608_v0 = vpop.f32.mrf.mxu3  ;;  %v642_v2 = vpop.f32.mrf.mxu0 }
  0xb8   : > { %v646_v3 = vadd.f32 %v642_v2, %v610_v62 }
  0xba   : > { %v650_v4 = vadd.f32 %v994_v1, %v646_v3 }
  0xbc   : > { %v651_v5 = vmax.f32 %v650_v4, 0.0 }
  0xbe   : > { %v653_v6 = vpack.c.bf16 %v651_v5, %v651_v5 }
  0xbf   : > { %v644_v7 = vpop.f32.mrf.mxu0 }
  0xc0   : > { %956 = vmatmul.msk.bf16.vlgmr.msra.gmra.mxu1 %vm689_vm1, %v653_v6 }
 0x13d   : > { %v702_v9 = vpop.f32.mrf.mxu1 }
 0x13e   : > { %v703_v10 = vadd.f32 %v995_v8, %v702_v9 }
 0x140   : > { %v706_v11 = vadd.f32 %v703_v10, %v1111_v13  ;;  %v716_v13 = vadd.f32 %v999_v18, %v715_v21 }
 0x142   : > { %v709_v12 = vsel %vm321_vm0, %v706_v11, 0.0  ;;  %v718_v22 = vsel %vm717_vm2, %v999_v18, %v716_v13 }
 0x143   : > { %710 = vadd.xlane.f32.xlu0 %v709_v12 }
 0x145   : > { %v704_v14 = vpop.f32.mrf.mxu1 }
 0x1b6   : > { %v711_v23 = vpop.xlane.xlu0 %710 }
 0x1b7   : > { %v719_v24 = vmul.f32 %v718_v22, %v711_v23 }
 0x1b9   : > { %v720_v25 = vsub.f32 %v706_v11, %v719_v24 }
 0x1bb   : > { %v721_v26 = vmul.f32 %v720_v25, %v720_v25 }
 0x1bd   : > { %v722_v27 = vsel %vm321_vm0, %v721_v26, 0.0 }
 0x1be   : > { %723 = vadd.xlane.f32.xlu0 %v722_v27 }
 0x231   : > { %v724_v28 = vpop.xlane.xlu0 %723 }
 0x232   : > { %v725_v29 = vmul.f32 %v724_v28, %v718_v22 }
 0x234   : > { %v726_v30 = vadd.f32 1e-05, %v725_v29 }
 0x236   : > { %1000 = vrsqrt.f32 %v726_v30  ;;  %vm733_vm4 = vweird.f32 %v726_v30 }
 0x23c   : > { %v1001_v31 = vpop.eup %1000 }
 0x23d   : > { %v728_v32 = vmul.f32 %v1001_v31, %v726_v30  ;;  %vm734_vm3 = vweird.f32 %v1001_v31 }
 0x23e   : > { %vm735_vm5 = vmor %vm733_vm4, %vm734_vm3 }
 0x23f   : > { %v729_v33 = vmul.f32 %v1001_v31, %v728_v32 }
 0x241   : > { %v730_v34 = vmul.f32 0.5, %v729_v33 }
 0x243   : > { %v731_v35 = vsub.f32 1.5, %v730_v34 }
 0x245   : > { %v732_v36 = vmul.f32 %v1001_v31, %v731_v35 }
 0x247   : > { %v736_v38 = vsel %vm735_vm5, %v1001_v31, %v732_v36 }
 0x248   : > { %v737_v40 = vmul.f32 %v736_v38, %v720_v25 }
 0x24a   : > { %v741_v41 = vmul.f32 %v996_v37, %v737_v40 }
 0x24c   : > { %v745_v43 = vadd.f32 %v997_v39, %v741_v41 }
 0x24e   : > { %v752_v44 = vmul.f32 %v750_v42, %v745_v43 }
 0x250   : > { %753 = vst.msk [vmem:[%s317_s30] sm:$0xff] %vm321_vm0, %v752_v44 }
 0x251 PF: > { %s18_s27 = sadd.s32 1, %s1008_s27  }
 0x252   : > { %p15_p4 = scmp.ge.s32.totalorder %s18_s27, 4  }
 0x254   :  { %17 = sbr.rel (!%p15_p4) target bundleno = 1 (0x1), region = 93 }

// kernel: run.12
= control target key start
LH: loop header
LB: loop body
LE: loop exit
PB: predicated region body
PF: predicated region fallthrough
CT: control target
= control target key end

     0   :  { %s835_s30 = smov 0   ;;  %s912_s0 = inlined_call_operand.vmem [shape: f32[2,8,32], index: 0, kind: input, shape index: {}]   ;;  %s913_s1 = inlined_call_operand.vmem [shape: bf16[32,96], index: 1, kind: input, shape index: {}]   ;;  %s914_s2 = inlined_call_operand.vmem [shape: f32[1,96], index: 2, kind: input, shape index: {}]   ;;  %s915_s3 = inlined_call_operand.vmem [shape: bf16[32,32], index: 3, kind: input, shape index: {}]   ;;  %s916_s4 = inlined_call_operand.vmem [shape: f32[1,32], index: 4, kind: input, shape index: {}]   ;;  %s917_s5 = inlined_call_operand.vmem [shape: f32[1,32], index: 5, kind: input, shape index: {}]   ;;  %s918_s6 = inlined_call_operand.vmem [shape: f32[1,32], index: 6, kind: input, shape index: {}]   ;;  %s919_s7 = inlined_call_operand.vmem [shape: f32[2,1,8], index: 7, kind: input, shape index: {}]   ;;  %s920_s8 = inlined_call_operand.vmem [shape: f32[2,8,1], index: 8, kind: input, shape index: {}]   ;;  %s921_s9 = inlined_call_operand.vmem [shape: f32[2,8,32], index: 9, kind: output, shape index: {}]  }
   0x1 LB: > { %s700_s10 = sadd.s32 4294967295, %s776_s30   ;;  %p704_p0 = scmp.ge.s32.totalorder %s776_s30, 1  ;;  %s776_s30 = sphi %s835_s30, %s19_s30  }
   0x2   : > { %p303_p1 = scmp.lt.s32.totalorder %s776_s30, 3 }
   0x4   : > { %p304_p2 = pnand %p704_p0, %p303_p1 }
   0x5   : > { %p344_p3 = scmp.lt.s32.totalorder (!%p304_p2), %s700_s10, 1  ;;  %s778_s21 = smov (!%p304_p2), 112  }
   0x6   : > { %307 = sbr.rel (%p304_p2) target bundleno = 1210 (0x4ba), region = 56  ;;  %s779_s22 = smov (!%p304_p2), 96  }
   0x7   : > { %s780_s23 = smov (!%p304_p2), 80   ;;  %s781_s24 = smov (!%p304_p2), 64  }
   0x8   : > { %s782_s25 = smov (!%p304_p2), 48  }
   0xb   : > { %v734_v0 = vld [vmem:[%s913_s1 + $0x8] sm:$0xff]  ;;  %v733_v1 = vld [vmem:[%s913_s1] sm:$0xff]  ;;  %s923_s10 = smov (!%p344_p3, %s700_s10), 1  ;;  %vm382_vm0 = vcmask 261120   ;;  %vm408_vm1 = vcmask 130048   ;;  %vm452_vm2 = vcmask 1043456  }
   0xc   : > { %392 = vmatpush.bf16.msra.mxu0 %v734_v0  ;;  %s852_s15 = sshll.u32 %s923_s10, 3  ;;  %v754_v4 = vld [vmem:[%s914_s2] ss:$0 sm:$0xff]  ;;  %v783_v18 = vmov 0   ;;  %s350_s28 = scalar_lea.vmem %s919_s7, %s923_s10  ;;  %vm434_vm5 = vcmask 64512   ;;  %v736_v51 = vld [vmem:[%s915_s3 + $0x8] sm:$0xff] }
   0xd   : > { %s347_s18 = scalar_lea.vmem %s912_s0, %s852_s15  ;;  %752 = vset.pattern.permute.xlu2 %v783_v18  ;;  %753 = vset.pattern.permute.xlu0 %v783_v18  ;;  %v403_v19 = vld [vmem:[%s350_s28] sm:$0x1] }
   0xe   : > { %v858_v2 = vld [vmem:[%s347_s18] sm:$0xff]  ;;  %vm429_vm3 = vcmp.gt.f32.partialorder %v403_v19, 0.5  ;;  %s354_s18 = scalar_lea.vmem %s920_s8, %s852_s15 }
   0xf   : > { %v361_v3 = vpack.c.bf16 %v858_v2, %v858_v2  ;;  %v430_v20 = vsel %vm429_vm3, 1, %v783_v18  ;;  %v735_v50 = vld [vmem:[%s915_s3] sm:$0xff] }
  0x10   : > { %393 = vmatpush.bf16.msra.mxu0 %v733_v1  ;;  %v431_v21 = vperm.slane %v430_v20, 0  ;;  %v755_v60 = vld [vmem:[%s916_s4] ss:$0 sm:$0xff] }
  0x12   : > { %vm432_vm4 = vcmp.eq.s32.totalorder %v431_v21, 1 }
  0x13   : > { %716 = vmatmul.msk.bf16.vlgmr.msra.gmra.mxu0 %vm382_vm0, %v361_v3 }
  0x14   : > { %545 = vmatpush.bf16.msrb.mxu0 %v736_v51 }
  0x90   : > { %v395_v5 = vpop.f32.mrf.mxu0 }
  0x91   : > { %v396_v6 = vadd.f32 %v754_v4, %v395_v5  ;;  %v784_v4 = vmov 32.0   ;;  %v618_v5 = vld [vmem:[%s354_s18] sm:$0xff] }
  0x93   : > { %v404_v7 = vpack.c.bf16 %v396_v6, %v396_v6 }
  0x95   : > { %470 = vrot.lane.b32.xlu1 %v404_v7, %s778_s21  ;;  %406 = vrot.lane.b32.xlu0 %v404_v7, %s779_s22 }
  0x98   : > { %v397_v8 = vpop.f32.mrf.mxu0 }
  0x9d   : > { %472 = vrot.lane.b32.xlu0 %v404_v7, %s780_s23 }
  0xa5   : > { %447 = vrot.lane.b32.xlu0 %v404_v7, %s781_s24 }
  0xad   : > { %507 = vrot.lane.b32.xlu0 %v404_v7, %s782_s25  ;;  %s358_s25 = scalar_lea.vmem %s921_s9, %s852_s15 }
 0x107   : > { %v407_v9 = vpop.permute.xlu0 %406  ;;  %v471_v13 = vpop.permute.xlu1 %470 }
 0x108   : > { %v413_v10 = vsel %vm408_vm1, %v407_v9, 0 }
 0x109   : > { %422 = vmatpush.bf16.xpose.msra.mxu1 %v413_v10 }
 0x10f   : > { %v473_v11 = vpop.permute.xlu0 %472 }
 0x110   : > { %717 = vmatmul.msk.bf16.vlgmr.msra.gmra.mxu1 %vm408_vm1, %v404_v7  ;;  %v478_v12 = vsel %vm408_vm1, %v473_v11, 0 }
 0x111   : > { %487 = vmatpush.bf16.xpose.msra.mxu3 %v478_v12  ;;  %567 = vmatpush.bf16.msrb.mxu1 %v735_v50 }
 0x117   : > { %v448_v14 = vpop.permute.xlu0 %447 }
 0x118   : > { %719 = vmatmul.msk.bf16.vlgmr.msra.gmra.mxu3 %vm408_vm1, %v471_v13  ;;  %v454_v15 = vsel %vm452_vm2, %v448_v14, 0 }
 0x119   : > { %463 = vmatpush.bf16.msra.mxu2 %v454_v15 }
 0x11f   : > { %v508_v16 = vpop.permute.xlu0 %507 }
 0x120   : > { %v513_v17 = vsel %vm452_vm2, %v508_v16, 0 }
 0x121   : > { %522 = vmatpush.bf16.msrb.mxu2 %v513_v17 }
 0x18d   : > { %v424_v22 = vpop.f32.mrf.mxu1 }
 0x18e   : > { %v428_v23 = vmul.f32 0.25, %v424_v22 }
 0x190   : > { %v433_v24 = vsel %vm432_vm4, -1e+09, %v428_v23 }
 0x191   : > { %v435_v25 = vsel %vm434_vm5, %v433_v24, -inf }
 0x192   : > { %436 = vmax.xlane.f32.xlu1 %v435_v25  ;;  %v756_v25 = vld [vmem:[%s917_s5] ss:$0 sm:$0xff] }
 0x195   : > { %v426_v26 = vpop.f32.mrf.mxu1 }
 0x19b   : > { %v489_v27 = vpop.f32.mrf.mxu3 }
 0x19c   : > { %v493_v28 = vmul.f32 0.25, %v489_v27 }
 0x19e   : > { %v494_v29 = vsel %vm432_vm4, -1e+09, %v493_v28  ;;  %v757_v28 = vld [vmem:[%s918_s6] ss:$0 sm:$0xff] }
 0x19f   : > { %v495_v30 = vsel %vm434_vm5, %v494_v29, -inf }
 0x1a0   : > { %496 = vmax.xlane.f32.xlu2 %v495_v30 }
 0x1a3   : > { %v491_v31 = vpop.f32.mrf.mxu3 }
 0x205   : > { %v437_v32 = vpop.xlane.xlu1 %436 }
 0x206   : > { %v438_v33 = vsub.f32 %v433_v24, %v437_v32 }
 0x208   : > { %v439_v34 = vmul.f32 1.442695, %v438_v33 }
 0x20a   : > { %758 = vpow2.f32 %v439_v34 }
 0x210   : > { %v759_v35 = vpop.eup %758 }
 0x211   : > { %v441_v36 = vsel %vm434_vm5, %v759_v35, 0.0 }
 0x212   : > { %442 = vadd.xlane.f32.xlu2 %v441_v36 }
 0x213   : > { %v497_v37 = vpop.xlane.xlu2 %496 }
 0x214   : > { %v498_v38 = vsub.f32 %v494_v29, %v497_v37 }
 0x216   : > { %v499_v39 = vmul.f32 1.442695, %v498_v38 }
 0x218   : > { %760 = vpow2.f32 %v499_v39 }
 0x21e   : > { %v761_v40 = vpop.eup %760 }
 0x21f   : > { %v501_v41 = vsel %vm434_vm5, %v761_v40, 0.0 }
 0x220   : > { %502 = vadd.xlane.f32.xlu2 %v501_v41 }
 0x285   : > { %v443_v42 = vpop.xlane.xlu2 %442 }
 0x286   : > { %762 = vrcp.f32 %v443_v42 }
 0x28c   : > { %v763_v43 = vpop.eup %762 }
 0x28d   : > { %v445_v44 = vmul.f32 %v763_v43, %v759_v35 }
 0x28f   : > { %v446_v45 = vpack.c.bf16 %v445_v44, %v445_v44 }
 0x291   : > { %718 = vmatmul.msk.bf16.vlgmr.msra.gmra.mxu2 %vm434_vm5, %v446_v45 }
 0x293   : > { %v503_v46 = vpop.xlane.xlu2 %502 }
 0x294   : > { %764 = vrcp.f32 %v503_v46 }
 0x295   : > { %766 = vrcp.f32 %v784_v4 }
 0x29a   : > { %v765_v47 = vpop.eup %764 }
 0x29b   : > { %v505_v48 = vmul.f32 %v765_v47, %v761_v40  ;;  %v767_v6 = vpop.eup %766 }
 0x29c   : > { %v585_v7 = vmul.f32 32.0, %v767_v6  ;;  %vm589_vm6 = vweird.f32 %v767_v6 }
 0x29d   : > { %v506_v49 = vpack.c.bf16 %v505_v48, %v505_v48 }
 0x29e   : > { %v586_v8 = vsub.f32 1.0, %v585_v7 }
 0x2a0   : > { %v587_v9 = vmul.f32 %v767_v6, %v586_v8 }
 0x2a1   : > { %720 = vmatmul.msk.bf16.vlgmr.msrb.gmra.mxu2 %vm434_vm5, %v506_v49 }
 0x2a2   : > { %v588_v10 = vadd.f32 %v767_v6, %v587_v9 }
 0x2a4   : > { %v590_v11 = vsel %vm589_vm6, %v767_v6, %v588_v10 }
 0x314   : > { %v465_v52 = vpop.f32.mrf.mxu2 }
 0x315   : > { %v469_v53 = vpack.c.bf16 %v465_v52, %v465_v52 }
 0x317   : > { %730 = vmatmul.msk.bf16.vlgmr.msrb.gmra.mxu1 %vm408_vm1, %v469_v53 }
 0x31c   : > { %v467_v54 = vpop.f32.mrf.mxu2 }
 0x324   : > { %v524_v55 = vpop.f32.mrf.mxu2 }
 0x325   : > { %v528_v56 = vpack.c.bf16 %v524_v55, %v524_v55 }
 0x327   : > { %725 = vmatmul.msk.bf16.vlgmr.msrb.gmra.mxu0 %vm408_vm1, %v528_v56 }
 0x32c   : > { %v526_v57 = vpop.f32.mrf.mxu2 }
 0x394   : > { %v569_v58 = vpop.f32.mrf.mxu1 }
 0x39c   : > { %v571_v59 = vpop.f32.mrf.mxu1 }
 0x3a4   : > { %v547_v61 = vpop.f32.mrf.mxu0 }
 0x3a5   : > { %v570_v62 = vadd.f32 %v569_v58, %v547_v61 }
 0x3a7   : > { %v577_v63 = vadd.f32 %v755_v60, %v570_v62 }
 0x3a9   : > { %v578_v0 = vadd.f32 %v577_v63, %v858_v2 }
 0x3ab   : > { %v581_v1 = vsel %vm382_vm0, %v578_v0, 0.0 }
 0x3ac   : > { %582 = vadd.xlane.f32.xlu2 %v581_v1  ;;  %v549_v3 = vpop.f32.mrf.mxu0 }
 0x3c4   : > { %621 = vperm.xlu2 %752, %v618_v5  }
 0x41f   : > { %v583_v2 = vpop.xlane.xlu2 %582 }
 0x420   : > { %v591_v12 = vmul.f32 %v590_v11, %v583_v2 }
 0x422   : > { %v592_v13 = vsub.f32 %v578_v0, %v591_v12 }
 0x424   : > { %v593_v14 = vmul.f32 %v592_v13, %v592_v13 }
 0x426   : > { %v594_v15 = vsel %vm382_vm0, %v593_v14, 0.0 }
 0x427   : > { %595 = vadd.xlane.f32.xlu0 %v594_v15  ;;  %v622_v30 = vpop.permute.xlu2 %621 }
 0x49a   : > { %v596_v16 = vpop.xlane.xlu0 %595 }
 0x49b   : > { %v597_v17 = vmul.f32 %v596_v16, %v590_v11 }
 0x49d   : > { %v598_v18 = vadd.f32 1e-05, %v597_v17 }
 0x49f   : > { %768 = vrsqrt.f32 %v598_v18  ;;  %vm605_vm8 = vweird.f32 %v598_v18 }
 0x4a5   : > { %v769_v19 = vpop.eup %768 }
 0x4a6   : > { %v600_v20 = vmul.f32 %v769_v19, %v598_v18  ;;  %vm606_vm7 = vweird.f32 %v769_v19 }
 0x4a7   : > { %vm607_vm9 = vmor %vm605_vm8, %vm606_vm7 }
 0x4a8   : > { %v601_v21 = vmul.f32 %v769_v19, %v600_v20 }
 0x4aa   : > { %v602_v22 = vmul.f32 0.5, %v601_v21 }
 0x4ac   : > { %v603_v23 = vsub.f32 1.5, %v602_v22 }
 0x4ae   : > { %v604_v24 = vmul.f32 %v769_v19, %v603_v23 }
 0x4b0   : > { %v608_v26 = vsel %vm607_vm9, %v769_v19, %v604_v24 }
 0x4b1   : > { %v609_v27 = vmul.f32 %v608_v26, %v592_v13 }
 0x4b3   : > { %v613_v29 = vmul.f32 %v756_v25, %v609_v27 }
 0x4b5   : > { %v617_v31 = vadd.f32 %v757_v28, %v613_v29 }
 0x4b7   : > { %v624_v32 = vmul.f32 %v622_v30, %v617_v31 }
 0x4b9   : > { %625 = vst.msk [vmem:[%s358_s25] sm:$0xff] %vm382_vm0, %v624_v32 }
 0x4ba PF: > { %s19_s30 = sadd.s32 1, %s776_s30  }
 0x4bb   : > { %p16_p4 = scmp.ge.s32.totalorder %s19_s30, 4  }
 0x4bd   :  { %18 = sbr.rel (!%p16_p4) target bundleno = 1 (0x1), region = 92 }

// kernel: run.20
= control target key start
LH: loop header
LB: loop body
LE: loop exit
PB: predicated region body
PF: predicated region fallthrough
CT: control target
= control target key end

     0   :  { %s1140_s27 = smov 0   ;;  %s1272_s0 = inlined_call_operand.vmem [shape: f32[2,16,32], index: 0, kind: input, shape index: {}]   ;;  %s1273_s1 = inlined_call_operand.vmem [shape: bf16[9,32,64], index: 1, kind: input, shape index: {}]   ;;  %s1274_s2 = inlined_call_operand.vmem [shape: f32[1,64], index: 2, kind: input, shape index: {}]   ;;  %s1275_s3 = inlined_call_operand.vmem [shape: bf16[1,64,32], index: 3, kind: input, shape index: {}]   ;;  %s1276_s4 = inlined_call_operand.vmem [shape: f32[1,32], index: 4, kind: input, shape index: {}]   ;;  %s1277_s5 = inlined_call_operand.vmem [shape: f32[1,32], index: 5, kind: input, shape index: {}]   ;;  %s1278_s6 = inlined_call_operand.vmem [shape: f32[1,32], index: 6, kind: input, shape index: {}]   ;;  %s1279_s7 = inlined_call_operand.vmem [shape: f32[2,16,1], index: 7, kind: input, shape index: {}]   ;;  %s1280_s8 = inlined_call_operand.vmem [shape: f32[2,16,32], index: 8, kind: output, shape index: {}]  }
   0x1 LB: > { %s893_s28 = sadd.s32 4294967295, %s1090_s27   ;;  %p897_p0 = scmp.ge.s32.totalorder %s1090_s27, 1  ;;  %s1090_s27 = sphi %s1140_s27, %s18_s27  }
   0x2   : > { %p272_p1 = scmp.lt.s32.totalorder %s1090_s27, 3 }
   0x4   : > { %p273_p2 = pnand %p897_p0, %p272_p1 }
   0x5   : > { %p311_p3 = scmp.lt.s32.totalorder (!%p273_p2), %s893_s28, 1 }
   0x6   : > { %276 = sbr.rel (%p273_p2) target bundleno = 610 (0x262), region = 52 }
   0xb   : > { %v1042_v0 = vld [vmem:[%s1273_s1 + $0x18] sm:$0xff]  ;;  %v1040_v1 = vld [vmem:[%s1273_s1 + $0x8] sm:$0xff]  ;;  %vm330_vm0 = vcmask 261120   ;;  %v1092_v4 = vmov 0.0   ;;  %v1041_v5 = vld [vmem:[%s1273_s1 + $0x10] sm:$0xff]  ;;  %s1282_s28 = smov (!%p311_p3, %s893_s28), 1 }
   0xc   : > { %v1044_v2 = vld [vmem:[%s1273_s1 + $0x28] sm:$0xff]  ;;  %v1046_v3 = vld [vmem:[%s1273_s1 + $0x38] sm:$0xff]  ;;  %331 = vst.msk [vmem:[#allocation2] sm:$0xff] %vm330_vm0, %v1092_v4  ;;  %373 = vmatpush.bf16.msra.mxu0 %v1042_v0  ;;  %402 = vmatpush.bf16.msra.mxu1 %v1040_v1  ;;  %v1039_v6 = vld [vmem:[%s1273_s1] sm:$0xff]  ;;  %s1175_s23 = sshll.u32 %s1282_s28, 4  ;;  %vm727_vm1 = vcmask 523264  }
   0xd   : > { %332 = vst.msk [vmem:[#allocation2 + $0x8] sm:$0xff] %vm330_vm0, %v1092_v4  ;;  %439 = vmatpush.bf16.msra.mxu2 %v1044_v2  ;;  %478 = vmatpush.bf16.msra.mxu3 %v1046_v3  ;;  %v1043_v7 = vld [vmem:[%s1273_s1 + $0x20] sm:$0xff]  ;;  %v1045_v8 = vld [vmem:[%s1273_s1 + $0x30] sm:$0xff]  ;;  %v1048_v9 = vld [vmem:[%s1273_s1 + $0x48] sm:$0xff]  ;;  %s315_s10 = scalar_lea.vmem %s1272_s0, %s1175_s23  ;;  %s320_s20 = scalar_lea.vmem %s1279_s7, %s1175_s23 }
   0xe   : > { %333 = vst.msk [vmem:[#allocation2 + $0x10] sm:$0xff] %vm330_vm0, %v1092_v4  ;;  %v1052_v10 = vld [vmem:[%s1273_s1 + $0x68] sm:$0xff]  ;;  %v1054_v11 = vld [vmem:[%s1273_s1 + $0x78] sm:$0xff]  ;;  %v1194_v13 = vld [vmem:[%s315_s10] sm:$0xff]  ;;  %s325_s30 = scalar_lea.vmem %s1280_s8, %s1175_s23 }
   0xf   : > { %334 = vst.msk [vmem:[#allocation2 + $0x18] sm:$0xff] %vm330_vm0, %v1092_v4  ;;  %v1050_v12 = vld [vmem:[%s1273_s1 + $0x58] sm:$0xff]  ;;  %v1196_v14 = vld [vmem:[%s315_s10 + $0x8] sm:$0xff]  ;;  %v1047_v15 = vld [vmem:[%s1273_s1 + $0x40] sm:$0xff] }
  0x10   : > { %374 = vmatpush.bf16.msra.mxu0 %v1041_v5  ;;  %403 = vmatpush.bf16.msra.mxu1 %v1039_v6  ;;  %335 = vst.msk [vmem:[#allocation2 + $0x8] sm:$0xff] %vm330_vm0, %v1194_v13  ;;  %v1051_v16 = vld [vmem:[%s1273_s1 + $0x60] sm:$0xff]  ;;  %v1053_v17 = vld [vmem:[%s1273_s1 + $0x70] sm:$0xff]  ;;  %v1056_v30 = vld [vmem:[%s1273_s1 + $0x88] sm:$0xff] }
  0x11   : > { %440 = vmatpush.bf16.msra.mxu2 %v1043_v7  ;;  %479 = vmatpush.bf16.msra.mxu3 %v1045_v8  ;;  %336 = vst.msk [vmem:[#allocation2 + $0x10] sm:$0xff] %vm330_vm0, %v1196_v14  ;;  %v1049_v18 = vld [vmem:[%s1273_s1 + $0x50] sm:$0xff]  ;;  %v1055_v32 = vld [vmem:[%s1273_s1 + $0x80] sm:$0xff]  ;;  %v1060_v48 = vld [vmem:[%s1275_s3 + $0x18] sm:$0xff] }
  0x12   : > { %v1059_v50 = vld [vmem:[%s1275_s3 + $0x10] sm:$0xff]  ;;  %v1058_v54 = vld [vmem:[%s1275_s3 + $0x8] sm:$0xff]  ;;  %v1057_v56 = vld [vmem:[%s1275_s3] sm:$0xff] }
  0x14   : > { %517 = vmatpush.bf16.msrb.mxu0 %v1048_v9  ;;  %556 = vmatpush.bf16.msrb.mxu1 %v1050_v12 }
  0x15   : > { %595 = vmatpush.bf16.msrb.mxu2 %v1052_v10  ;;  %634 = vmatpush.bf16.msrb.mxu3 %v1054_v11 }
  0x17   : > { %v344_v19 = vld [vmem:[#allocation2 + $0x5] sm:$0xff] }
  0x18   : > { %518 = vmatpush.bf16.msrb.mxu0 %v1047_v15  ;;  %557 = vmatpush.bf16.msrb.mxu1 %v1049_v18  ;;  %v337_v20 = vld [vmem:[#allocation2 + $0x4] sm:$0xff]  ;;  %v345_v22 = vld [vmem:[#allocation2 + $0xd] sm:$0xff] }
  0x19   : > { %596 = vmatpush.bf16.msrb.mxu2 %v1051_v16  ;;  %635 = vmatpush.bf16.msrb.mxu3 %v1053_v17  ;;  %v410_v21 = vld [vmem:[#allocation2 + $0x6] sm:$0xff]  ;;  %v411_v24 = vld [vmem:[#allocation2 + $0xe] sm:$0xff]  ;;  %v346_v25 = vpack.c.bf16 %v345_v22, %v344_v19  ;;  %v1074_v19 = vld [vmem:[%s1274_s2] ss:$0 sm:$0xff] }
  0x1a   : > { %v338_v23 = vld [vmem:[#allocation2 + $0xc] sm:$0xff]  ;;  %v412_v27 = vpack.c.bf16 %v411_v24, %v410_v21  ;;  %v645_v45 = vld [vmem:[#allocation2 + $0x14] sm:$0xff] }
  0x1b   : > { %v339_v26 = vpack.c.bf16 %v338_v23, %v337_v20  ;;  %v449_v28 = vld [vmem:[#allocation2 + $0x7] sm:$0xff]  ;;  %v450_v29 = vld [vmem:[#allocation2 + $0xf] sm:$0xff]  ;;  %916 = vmatmul.msk.bf16.vlgmr.msra.gmra.mxu0 %vm330_vm0, %v346_v25  ;;  %v646_v46 = vpack.c.bf16 %v645_v45, %v338_v23 }
  0x1c   : > { %v451_v31 = vpack.c.bf16 %v450_v29, %v449_v28  ;;  %938 = vmatmul.msk.bf16.vlgmr.msra.gmra.mxu2 %vm330_vm0, %v412_v27  ;;  %673 = vmatpush.bf16.msra.mxu0 %v1056_v30  ;;  %v488_v33 = vld [vmem:[#allocation2 + $0x8] sm:$0xff]  ;;  %v489_v34 = vld [vmem:[#allocation2 + $0x10] sm:$0xff]  ;;  %v1075_v29 = vld [vmem:[%s1276_s4] ss:$0 sm:$0xff] }
  0x1d   : > { %925 = vmatmul.msk.bf16.vlgmr.msra.gmra.mxu1 %vm330_vm0, %v339_v26  ;;  %v566_v35 = vld [vmem:[#allocation2 + $0xa] sm:$0xff]  ;;  %v567_v38 = vld [vmem:[#allocation2 + $0x12] sm:$0xff]  ;;  %v490_v41 = vpack.c.bf16 %v489_v34, %v488_v33 }
  0x1e   : > { %951 = vmatmul.msk.bf16.vlgmr.msra.gmra.mxu3 %vm330_vm0, %v451_v31  ;;  %v527_v36 = vld [vmem:[#allocation2 + $0x9] sm:$0xff]  ;;  %v528_v37 = vld [vmem:[#allocation2 + $0x11] sm:$0xff]  ;;  %v568_v43 = vpack.c.bf16 %v567_v38, %v566_v35  ;;  %735 = vmatpush.bf16.msra.mxu1 %v1060_v48  ;;  %v1093_v38 = vmov 32.0  }
  0x1f   : > { %v605_v39 = vld [vmem:[#allocation2 + $0xb] sm:$0xff]  ;;  %v606_v40 = vld [vmem:[#allocation2 + $0x13] sm:$0xff]  ;;  %v529_v42 = vpack.c.bf16 %v528_v37, %v527_v36  ;;  %1078 = vrcp.f32 %v1093_v38 }
  0x20   : > { %674 = vmatpush.bf16.msra.mxu0 %v1055_v32  ;;  %v607_v44 = vpack.c.bf16 %v606_v40, %v605_v39 }
  0x22   : > { %736 = vmatpush.bf16.msra.mxu1 %v1059_v50 }
  0x25   : > { %v1079_v39 = vpop.eup %1078 }
  0x26   : > { %737 = vmatpush.bf16.msra.mxu1 %v1058_v54  ;;  %v756_v40 = vmul.f32 32.0, %v1079_v39  ;;  %vm760_vm2 = vweird.f32 %v1079_v39 }
  0x2a   : > { %738 = vmatpush.bf16.msra.mxu1 %v1057_v56 }
  0x2b   : > { %964 = vmatmul.msk.bf16.vlgmr.msrb.gmra.mxu0 %vm330_vm0, %v490_v41  ;;  %v810_v41 = vld [vmem:[%s320_s20] sm:$0xff] }
  0x2c   : > { %990 = vmatmul.msk.bf16.vlgmr.msrb.gmra.mxu2 %vm330_vm0, %v568_v43 }
  0x2d   : > { %977 = vmatmul.msk.bf16.vlgmr.msrb.gmra.mxu1 %vm330_vm0, %v529_v42  ;;  %v757_v42 = vsub.f32 1.0, %v756_v40 }
  0x2e   : > { %1003 = vmatmul.msk.bf16.vlgmr.msrb.gmra.mxu3 %vm330_vm0, %v607_v44  ;;  %v811_v44 = vld [vmem:[%s320_s20 + $0x8] sm:$0xff] }
  0x2f   : > { %v758_v43 = vmul.f32 %v1079_v39, %v757_v42 }
  0x3b   : > { %1016 = vmatmul.msk.bf16.vlgmr.msra.gmra.mxu0 %vm330_vm0, %v646_v46 }
  0x98   : > { %v376_v47 = vpop.f32.mrf.mxu0 }
  0x9a   : > { %v405_v49 = vpop.f32.mrf.mxu1 }
  0x9b   : > { %v406_v59 = vadd.f32 %v405_v49, %v376_v47 }
  0x9f   : > { %v442_v51 = vpop.f32.mrf.mxu2 }
  0xa0   : > { %v378_v53 = vpop.f32.mrf.mxu0  ;;  %v447_v61 = vadd.f32 %v442_v51, %v406_v59 }
  0xa1   : > { %v481_v52 = vpop.f32.mrf.mxu3 }
  0xa2   : > { %v407_v55 = vpop.f32.mrf.mxu1  ;;  %v486_v0 = vadd.f32 %v481_v52, %v447_v61 }
  0xa3   : > { %v408_v63 = vadd.f32 %v407_v55, %v378_v53 }
  0xa7   : > { %v444_v57 = vpop.f32.mrf.mxu2 }
  0xa8   : > { %v520_v58 = vpop.f32.mrf.mxu0  ;;  %v448_v1 = vadd.f32 %v444_v57, %v408_v63 }
  0xa9   : > { %v483_v60 = vpop.f32.mrf.mxu3  ;;  %v525_v4 = vadd.f32 %v520_v58, %v486_v0 }
  0xaa   : > { %v559_v62 = vpop.f32.mrf.mxu1  ;;  %v487_v5 = vadd.f32 %v483_v60, %v448_v1 }
  0xab   : > { %v564_v7 = vadd.f32 %v559_v62, %v525_v4 }
  0xaf   : > { %v598_v2 = vpop.f32.mrf.mxu2 }
  0xb0   : > { %v522_v3 = vpop.f32.mrf.mxu0  ;;  %v603_v10 = vadd.f32 %v598_v2, %v564_v7 }
  0xb1   : > { %v637_v6 = vpop.f32.mrf.mxu3  ;;  %v526_v8 = vadd.f32 %v522_v3, %v487_v5 }
  0xb2   : > { %v561_v9 = vpop.f32.mrf.mxu1  ;;  %v642_v16 = vadd.f32 %v637_v6, %v603_v10  ;;  %v1076_v6 = vld [vmem:[%s1277_s5] ss:$0 sm:$0xff] }
  0xb3   : > { %v565_v15 = vadd.f32 %v561_v9, %v526_v8  ;;  %v1077_v9 = vld [vmem:[%s1278_s6] ss:$0 sm:$0xff] }
  0xb7   : > { %v600_v11 = vpop.f32.mrf.mxu2 }
  0xb8   : > { %v676_v12 = vpop.f32.mrf.mxu0  ;;  %v604_v17 = vadd.f32 %v600_v11, %v565_v15 }
  0xb9   : > { %v681_v18 = vadd.f32 %v676_v12, %v642_v16  ;;  %v639_v20 = vpop.f32.mrf.mxu3 }
  0xba   : > { %v643_v21 = vadd.f32 %v639_v20, %v604_v17 }
  0xbb   : > { %v686_v23 = vadd.f32 %v1074_v19, %v681_v18 }
  0xbd   : > { %v688_v26 = vmax.f32 %v686_v23, 0.0 }
  0xc0   : > { %v678_v22 = vpop.f32.mrf.mxu0 }
  0xc1   : > { %v682_v24 = vadd.f32 %v678_v22, %v643_v21 }
  0xc3   : > { %v687_v25 = vadd.f32 %v1074_v19, %v682_v24 }
  0xc5   : > { %v689_v27 = vmax.f32 %v687_v25, 0.0 }
  0xc7   : > { %v691_v28 = vpack.c.bf16 %v689_v27, %v688_v26 }
  0xc9   : > { %1033 = vmatmul.msk.bf16.vlgmr.msra.gmra.mxu1 %vm727_vm1, %v691_v28 }
 0x146   : > { %v740_v30 = vpop.f32.mrf.mxu1 }
 0x147   : > { %v741_v31 = vadd.f32 %v1075_v29, %v740_v30 }
 0x149   : > { %v745_v32 = vadd.f32 %v741_v31, %v1194_v13  ;;  %v1094_v13 = vmov 0  }
 0x14a   : > { %1072 = vset.pattern.permute.xlu2 %v1094_v13  ;;  %1073 = vset.pattern.permute.xlu0 %v1094_v13 }
 0x14b   : > { %v749_v33 = vsel %vm330_vm0, %v745_v32, 0.0  ;;  %814 = vperm.xlu2 %1072, %v810_v41  }
 0x14c   : > { %750 = vadd.xlane.f32.xlu0 %v749_v33 }
 0x14e   : > { %v742_v34 = vpop.f32.mrf.mxu1 }
 0x14f   : > { %v743_v35 = vadd.f32 %v1075_v29, %v742_v34 }
 0x151   : > { %v746_v36 = vadd.f32 %v743_v35, %v1196_v14  ;;  %v759_v14 = vadd.f32 %v1079_v39, %v758_v43 }
 0x153   : > { %v752_v37 = vsel %vm330_vm0, %v746_v36, 0.0  ;;  %819 = vperm.xlu2 %1072, %v811_v44   ;;  %v761_v45 = vsel %vm760_vm2, %v1079_v39, %v759_v14 }
 0x154   : > { %753 = vadd.xlane.f32.xlu0 %v752_v37 }
 0x1a5   : > { %v815_v16 = vpop.permute.xlu2 %814 }
 0x1ad   : > { %v820_v24 = vpop.permute.xlu2 %819 }
 0x1bf   : > { %v751_v46 = vpop.xlane.xlu0 %750 }
 0x1c0   : > { %v762_v47 = vmul.f32 %v761_v45, %v751_v46 }
 0x1c2   : > { %v764_v48 = vsub.f32 %v745_v32, %v762_v47 }
 0x1c4   : > { %v766_v49 = vmul.f32 %v764_v48, %v764_v48 }
 0x1c6   : > { %v768_v50 = vsel %vm330_vm0, %v766_v49, 0.0 }
 0x1c7   : > { %769 = vadd.xlane.f32.xlu1 %v768_v50  ;;  %v754_v51 = vpop.xlane.xlu0 %753 }
 0x1c8   : > { %v763_v52 = vmul.f32 %v761_v45, %v754_v51 }
 0x1ca   : > { %v765_v53 = vsub.f32 %v746_v36, %v763_v52 }
 0x1cc   : > { %v767_v54 = vmul.f32 %v765_v53, %v765_v53 }
 0x1ce   : > { %v771_v55 = vsel %vm330_vm0, %v767_v54, 0.0 }
 0x1cf   : > { %772 = vadd.xlane.f32.xlu1 %v771_v55 }
 0x23a   : > { %v770_v56 = vpop.xlane.xlu1 %769 }
 0x23b   : > { %v774_v57 = vmul.f32 %v770_v56, %v761_v45 }
 0x23d   : > { %v776_v58 = vadd.f32 1e-05, %v774_v57 }
 0x23f   : > { %1080 = vrsqrt.f32 %v776_v58  ;;  %vm784_vm4 = vweird.f32 %v776_v58 }
 0x242   : > { %v773_v59 = vpop.xlane.xlu1 %772 }
 0x243   : > { %v775_v60 = vmul.f32 %v773_v59, %v761_v45 }
 0x245   : > { %v1081_v61 = vpop.eup %1080  ;;  %v777_v62 = vadd.f32 1e-05, %v775_v60 }
 0x246   : > { %v779_v63 = vmul.f32 %v1081_v61, %v776_v58  ;;  %vm785_vm3 = vweird.f32 %v1081_v61 }
 0x247   : > { %1082 = vrsqrt.f32 %v777_v62  ;;  %vm786_vm5 = vmor %vm784_vm4, %vm785_vm3  ;;  %vm794_vm7 = vweird.f32 %v777_v62 }
 0x248   : > { %v780_v0 = vmul.f32 %v1081_v61, %v779_v63 }
 0x24a   : > { %v781_v1 = vmul.f32 0.5, %v780_v0 }
 0x24c   : > { %v782_v2 = vsub.f32 1.5, %v781_v1 }
 0x24d   : > { %v1083_v3 = vpop.eup %1082 }
 0x24e   : > { %v783_v4 = vmul.f32 %v1081_v61, %v782_v2  ;;  %v789_v5 = vmul.f32 %v1083_v3, %v777_v62  ;;  %vm795_vm6 = vweird.f32 %v1083_v3 }
 0x24f   : > { %vm796_vm8 = vmor %vm794_vm7, %vm795_vm6 }
 0x250   : > { %v790_v7 = vmul.f32 %v1083_v3, %v789_v5  ;;  %v787_v8 = vsel %vm786_vm5, %v1081_v61, %v783_v4 }
 0x251   : > { %v798_v10 = vmul.f32 %v787_v8, %v764_v48 }
 0x252   : > { %v791_v11 = vmul.f32 0.5, %v790_v7 }
 0x253   : > { %v803_v12 = vmul.f32 %v1076_v6, %v798_v10 }
 0x254   : > { %v792_v15 = vsub.f32 1.5, %v791_v11 }
 0x255   : > { %v808_v17 = vadd.f32 %v1077_v9, %v803_v12 }
 0x256   : > { %v793_v18 = vmul.f32 %v1083_v3, %v792_v15 }
 0x257   : > { %v822_v19 = vmul.f32 %v815_v16, %v808_v17 }
 0x258   : > { %v797_v20 = vsel %vm796_vm8, %v1083_v3, %v793_v18 }
 0x259   : > { %824 = vst.msk [vmem:[%s325_s30] sm:$0xff] %vm330_vm0, %v822_v19  ;;  %v799_v21 = vmul.f32 %v797_v20, %v765_v53 }
 0x25b   : > { %v804_v22 = vmul.f32 %v1076_v6, %v799_v21 }
 0x25d   : > { %v809_v23 = vadd.f32 %v1077_v9, %v804_v22 }
 0x25f   : > { %v823_v25 = vmul.f32 %v820_v24, %v809_v23 }
 0x261   : > { %825 = vst.msk [vmem:[%s325_s30 + $0x8] sm:$0xff] %vm330_vm0, %v823_v25 }
 0x262 PF: > { %s18_s27 = sadd.s32 1, %s1090_s27  }
 0x263   : > { %p15_p4 = scmp.ge.s32.totalorder %s18_s27, 4  }
 0x265   :  { %17 = sbr.rel (!%p15_p4) target bundleno = 1 (0x1), region = 93 }

// kernel: run.19
= control target key start
LH: loop header
LB: loop body
LE: loop exit
PB: predicated region body
PF: predicated region fallthrough
CT: control target
= control target key end

     0   :  { %s924_s30 = smov 0   ;;  %s1019_s0 = inlined_call_operand.vmem [shape: f32[2,16,32], index: 0, kind: input, shape index: {}]   ;;  %s1020_s1 = inlined_call_operand.vmem [shape: bf16[32,96], index: 1, kind: input, shape index: {}]   ;;  %s1021_s2 = inlined_call_operand.vmem [shape: f32[1,96], index: 2, kind: input, shape index: {}]   ;;  %s1022_s3 = inlined_call_operand.vmem [shape: bf16[32,32], index: 3, kind: input, shape index: {}]   ;;  %s1023_s4 = inlined_call_operand.vmem [shape: f32[1,32], index: 4, kind: input, shape index: {}]   ;;  %s1024_s5 = inlined_call_operand.vmem [shape: f32[1,32], index: 5, kind: input, shape index: {}]   ;;  %s1025_s6 = inlined_call_operand.vmem [shape: f32[1,32], index: 6, kind: input, shape index: {}]   ;;  %s1026_s7 = inlined_call_operand.vmem [shape: f32[2,1,16], index: 7, kind: input, shape index: {}]   ;;  %s1027_s8 = inlined_call_operand.vmem [shape: f32[2,16,1], index: 8, kind: input, shape index: {}]   ;;  %s1028_s9 = inlined_call_operand.vmem [shape: f32[2,16,32], index: 9, kind: output, shape index: {}]  }
   0x1 LB: > { %s772_s10 = sadd.s32 4294967295, %s865_s30   ;;  %p776_p0 = scmp.ge.s32.totalorder %s865_s30, 1  ;;  %s865_s30 = sphi %s924_s30, %s19_s30  }
   0x2   : > { %p305_p1 = scmp.lt.s32.totalorder %s865_s30, 3 }
   0x4   : > { %p306_p2 = pnand %p776_p0, %p305_p1 }
   0x5   : > { %p349_p3 = scmp.lt.s32.totalorder (!%p306_p2), %s772_s10, 1  ;;  %s867_s21 = smov (!%p306_p2), 112  }
   0x6   : > { %309 = sbr.rel (%p306_p2) target bundleno = 1305 (0x519), region = 56  ;;  %s868_s22 = smov (!%p306_p2), 96  }
   0x7   : > { %s869_s23 = smov (!%p306_p2), 80   ;;  %s871_s27 = smov (!%p306_p2), 48  }
   0x8   : > { %s872_s28 = smov (!%p306_p2), 64  }
   0xb   : > { %v812_v0 = vld [vmem:[%s1020_s1 + $0x8] sm:$0xff]  ;;  %v811_v1 = vld [vmem:[%s1020_s1] sm:$0xff]  ;;  %s1030_s10 = smov (!%p349_p3, %s772_s10), 1  ;;  %vm391_vm0 = vcmask 261120   ;;  %vm418_vm1 = vcmask 130048   ;;  %v870_v16 = vmov 0  }
   0xc   : > { %401 = vmatpush.bf16.msra.mxu0 %v812_v0  ;;  %s941_s15 = sshll.u32 %s1030_s10, 4  ;;  %v833_v6 = vld [vmem:[%s1021_s2] ss:$0 sm:$0xff]  ;;  %830 = vset.pattern.permute.xlu1 %v870_v16  ;;  %s356_s26 = scalar_lea.vmem %s1026_s7, %s1030_s10 }
   0xd   : > { %s353_s18 = scalar_lea.vmem %s1019_s0, %s941_s15  ;;  %831 = vset.pattern.permute.xlu2 %v870_v16  ;;  %832 = vset.pattern.permute.xlu0 %v870_v16  ;;  %v413_v17 = vld [vmem:[%s356_s26] sm:$0x1]  ;;  %s366_s25 = scalar_lea.vmem %s1028_s9, %s941_s15 }
   0xe   : > { %v947_v2 = vld [vmem:[%s353_s18] sm:$0xff]  ;;  %v949_v3 = vld [vmem:[%s353_s18 + $0x8] sm:$0xff]  ;;  %vm441_vm2 = vcmp.gt.f32.partialorder %v413_v17, 0.5  ;;  %s361_s18 = scalar_lea.vmem %s1027_s8, %s941_s15 }
   0xf   : > { %v370_v4 = vpack.c.bf16 %v949_v3, %v947_v2  ;;  %v442_v18 = vsel %vm441_vm2, 1, %v870_v16 }
  0x10   : > { %402 = vmatpush.bf16.msra.mxu0 %v811_v1  ;;  %v443_v19 = vperm.slane %v442_v18, 0 }
  0x12   : > { %vm444_vm3 = vcmp.eq.s32.totalorder %v443_v19, 1  ;;  %v834_v19 = vld [vmem:[%s1023_s4] ss:$0 sm:$0xff] }
  0x13   : > { %791 = vmatmul.msk.bf16.vlgmr.msra.gmra.mxu0 %vm391_vm0, %v370_v4 }
  0x90   : > { %v404_v5 = vpop.f32.mrf.mxu0 }
  0x91   : > { %v405_v8 = vadd.f32 %v833_v6, %v404_v5 }
  0x98   : > { %v406_v7 = vpop.f32.mrf.mxu0 }
  0x99   : > { %v407_v9 = vadd.f32 %v833_v6, %v406_v7 }
  0x9b   : > { %v957_v10 = vpack.c.bf16 %v407_v9, %v405_v8 }
  0x9d   : > { %491 = vrot.lane.b32.xlu1 %v957_v10, %s867_s21  ;;  %416 = vrot.lane.b32.xlu0 %v957_v10, %s868_s22 }
  0xa5   : > { %493 = vrot.lane.b32.xlu0 %v957_v10, %s869_s23 }
 0x10f   : > { %v417_v11 = vpop.permute.xlu0 %416  ;;  %v492_v15 = vpop.permute.xlu1 %491 }
 0x110   : > { %v423_v12 = vsel %vm418_vm1, %v417_v11, 0  ;;  %v814_v11 = vld [vmem:[%s1022_s3 + $0x8] sm:$0xff] }
 0x111   : > { %432 = vmatpush.bf16.xpose.msra.mxu1 %v423_v12  ;;  %579 = vmatpush.bf16.msrb.mxu0 %v814_v11 }
 0x117   : > { %v494_v13 = vpop.permute.xlu0 %493 }
 0x118   : > { %792 = vmatmul.msk.bf16.vlgmr.msra.gmra.mxu1 %vm418_vm1, %v957_v10  ;;  %v499_v14 = vsel %vm418_vm1, %v494_v13, 0 }
 0x119   : > { %508 = vmatpush.bf16.xpose.msra.mxu3 %v499_v14 }
 0x120   : > { %794 = vmatmul.msk.bf16.vlgmr.msra.gmra.mxu3 %vm418_vm1, %v492_v15 }
 0x195   : > { %v434_v20 = vpop.f32.mrf.mxu1 }
 0x196   : > { %v439_v21 = vmul.f32 0.25, %v434_v20 }
 0x198   : > { %v445_v22 = vsel %vm444_vm3, -1e+09, %v439_v21 }
 0x199   : > { %v447_v23 = vsel %vm418_vm1, %v445_v22, -inf }
 0x19a   : > { %448 = vmax.xlane.f32.xlu1 %v447_v23 }
 0x19d   : > { %v436_v26 = vpop.f32.mrf.mxu1 }
 0x19e   : > { %v440_v29 = vmul.f32 0.25, %v436_v26 }
 0x1a0   : > { %v446_v32 = vsel %vm444_vm3, -1e+09, %v440_v29 }
 0x1a1   : > { %v450_v34 = vsel %vm418_vm1, %v446_v32, -inf }
 0x1a3   : > { %v510_v24 = vpop.f32.mrf.mxu3 }
 0x1a4   : > { %v515_v25 = vmul.f32 0.25, %v510_v24 }
 0x1a6   : > { %v517_v27 = vsel %vm444_vm3, -1e+09, %v515_v25 }
 0x1a7   : > { %v519_v28 = vsel %vm418_vm1, %v517_v27, -inf }
 0x1a8   : > { %520 = vmax.xlane.f32.xlu2 %v519_v28 }
 0x1ab   : > { %v512_v30 = vpop.f32.mrf.mxu3 }
 0x1ac   : > { %v516_v31 = vmul.f32 0.25, %v512_v30 }
 0x1ae   : > { %v518_v33 = vsel %vm444_vm3, -1e+09, %v516_v31  ;;  %v873_v31 = vmov 32.0  }
 0x1af   : > { %v522_v35 = vsel %vm418_vm1, %v518_v33, -inf }
 0x1b0   : > { %451 = vmax.xlane.f32.xlu2 %v450_v34  ;;  %523 = vmax.xlane.f32.xlu0 %v522_v35 }
 0x1c4   : > { %542 = vrot.lane.b32.xlu0 %v957_v10, %s871_s27 }
 0x20d   : > { %v449_v36 = vpop.xlane.xlu1 %448 }
 0x20e   : > { %v453_v37 = vsub.f32 %v445_v22, %v449_v36 }
 0x210   : > { %v455_v38 = vmul.f32 1.442695, %v453_v37 }
 0x212   : > { %837 = vpow2.f32 %v455_v38 }
 0x218   : > { %v838_v39 = vpop.eup %837 }
 0x219   : > { %v459_v40 = vsel %vm418_vm1, %v838_v39, 0.0 }
 0x21a   : > { %460 = vadd.xlane.f32.xlu2 %v459_v40 }
 0x21b   : > { %v521_v41 = vpop.xlane.xlu2 %520 }
 0x21c   : > { %v525_v42 = vsub.f32 %v517_v27, %v521_v41 }
 0x21e   : > { %v527_v43 = vmul.f32 1.442695, %v525_v42 }
 0x220   : > { %839 = vpow2.f32 %v527_v43 }
 0x223   : > { %v452_v44 = vpop.xlane.xlu2 %451  ;;  %v524_v51 = vpop.xlane.xlu0 %523 }
 0x224   : > { %v454_v45 = vsub.f32 %v446_v32, %v452_v44  ;;  %v526_v52 = vsub.f32 %v518_v33, %v524_v51 }
 0x226   : > { %v840_v46 = vpop.eup %839  ;;  %v457_v47 = vmul.f32 1.442695, %v454_v45  ;;  %v529_v53 = vmul.f32 1.442695, %v526_v52 }
 0x227   : > { %v531_v48 = vsel %vm418_vm1, %v840_v46, 0.0 }
 0x228   : > { %841 = vpow2.f32 %v457_v47  ;;  %532 = vadd.xlane.f32.xlu1 %v531_v48  ;;  %v680_v47 = vld [vmem:[%s361_s18] sm:$0xff] }
 0x229   : > { %843 = vpow2.f32 %v529_v53 }
 0x22e   : > { %v842_v49 = vpop.eup %841 }
 0x22f   : > { %v462_v50 = vsel %vm418_vm1, %v842_v49, 0.0  ;;  %v844_v54 = vpop.eup %843 }
 0x230   : > { %463 = vadd.xlane.f32.xlu2 %v462_v50  ;;  %v534_v55 = vsel %vm418_vm1, %v844_v54, 0.0 }
 0x236   : > { %v543_v63 = vpop.permute.xlu0 %542 }
 0x248   : > { %470 = vrot.lane.b32.xlu2 %v957_v10, %s872_s28  ;;  %v813_v10 = vld [vmem:[%s1022_s3] sm:$0xff] }
 0x249   : > { %602 = vmatpush.bf16.msrb.mxu1 %v813_v10 }
 0x271   : > { %535 = vadd.xlane.f32.xlu2 %v534_v55 }
 0x28d   : > { %v461_v56 = vpop.xlane.xlu2 %460 }
 0x28e   : > { %845 = vrcp.f32 %v461_v56 }
 0x294   : > { %v846_v58 = vpop.eup %845 }
 0x295   : > { %v467_v61 = vmul.f32 %v846_v58, %v838_v39  ;;  %v681_v39 = vld [vmem:[%s361_s18 + $0x8] sm:$0xff] }
 0x296   : > { %689 = vperm.xlu2 %831, %v681_v39  }
 0x29b   : > { %v533_v1 = vpop.xlane.xlu1 %532 }
 0x2a3   : > { %v464_v57 = vpop.xlane.xlu2 %463 }
 0x2a4   : > { %847 = vrcp.f32 %v464_v57 }
 0x2a5   : > { %849 = vrcp.f32 %v533_v1 }
 0x2aa   : > { %v848_v59 = vpop.eup %847 }
 0x2ab   : > { %v471_v60 = vpop.permute.xlu2 %470  ;;  %v468_v62 = vmul.f32 %v848_v59, %v842_v49  ;;  %v850_v5 = vpop.eup %849 }
 0x2ac   : > { %483 = vmatpush.bf16.msra.mxu2 %v471_v60  ;;  %v539_v7 = vmul.f32 %v850_v5, %v840_v46 }
 0x2ad   : > { %v469_v0 = vpack.c.bf16 %v468_v62, %v467_v61  ;;  %v835_v62 = vld [vmem:[%s1024_s5] ss:$0 sm:$0xff] }
 0x2af   : > { %793 = vmatmul.msk.bf16.vlgmr.msra.gmra.mxu2 %vm418_vm1, %v469_v0 }
 0x2b0   : > { %555 = vmatpush.bf16.msrb.mxu2 %v543_v63 }
 0x2e4   : > { %v536_v4 = vpop.xlane.xlu2 %535 }
 0x2e5   : > { %851 = vrcp.f32 %v536_v4  ;;  %v836_v4 = vld [vmem:[%s1025_s6] ss:$0 sm:$0xff] }
 0x2e6   : > { %853 = vrcp.f32 %v873_v31 }
 0x2eb   : > { %v852_v6 = vpop.eup %851 }
 0x2ec   : > { %v540_v8 = vmul.f32 %v852_v6, %v844_v54  ;;  %v854_v32 = vpop.eup %853 }
 0x2ed   : > { %v626_v33 = vmul.f32 32.0, %v854_v32  ;;  %vm630_vm4 = vweird.f32 %v854_v32 }
 0x2ee   : > { %v541_v9 = vpack.c.bf16 %v540_v8, %v539_v7 }
 0x2ef   : > { %v627_v34 = vsub.f32 1.0, %v626_v33 }
 0x2f0   : > { %795 = vmatmul.msk.bf16.vlgmr.msrb.gmra.mxu2 %vm418_vm1, %v541_v9 }
 0x2f1   : > { %v628_v35 = vmul.f32 %v854_v32, %v627_v34 }
 0x332   : > { %v485_v12 = vpop.f32.mrf.mxu2 }
 0x33a   : > { %v487_v13 = vpop.f32.mrf.mxu2 }
 0x33b   : > { %v490_v14 = vpack.c.bf16 %v487_v13, %v485_v12 }
 0x33d   : > { %805 = vmatmul.msk.bf16.vlgmr.msrb.gmra.mxu1 %vm418_vm1, %v490_v14 }
 0x373   : > { %v557_v15 = vpop.f32.mrf.mxu2 }
 0x37b   : > { %v559_v16 = vpop.f32.mrf.mxu2 }
 0x37c   : > { %v562_v17 = vpack.c.bf16 %v559_v16, %v557_v15  ;;  %v690_v15 = vpop.permute.xlu2 %689 }
 0x37e   : > { %800 = vmatmul.msk.bf16.vlgmr.msrb.gmra.mxu0 %vm418_vm1, %v562_v17 }
 0x3ba   : > { %v604_v18 = vpop.f32.mrf.mxu1 }
 0x3c2   : > { %v606_v25 = vpop.f32.mrf.mxu1 }
 0x3fb   : > { %v581_v20 = vpop.f32.mrf.mxu0 }
 0x3fc   : > { %v605_v21 = vadd.f32 %v604_v18, %v581_v20 }
 0x3fe   : > { %v613_v22 = vadd.f32 %v834_v19, %v605_v21 }
 0x400   : > { %v615_v23 = vadd.f32 %v613_v22, %v947_v2  ;;  %v629_v2 = vadd.f32 %v854_v32, %v628_v35 }
 0x402   : > { %v619_v24 = vsel %vm391_vm0, %v615_v23, 0.0  ;;  %v631_v36 = vsel %vm630_vm4, %v854_v32, %v629_v2 }
 0x403   : > { %620 = vadd.xlane.f32.xlu1 %v619_v24  ;;  %v583_v26 = vpop.f32.mrf.mxu0 }
 0x404   : > { %v607_v27 = vadd.f32 %v606_v25, %v583_v26 }
 0x406   : > { %v614_v28 = vadd.f32 %v834_v19, %v607_v27 }
 0x408   : > { %v616_v29 = vadd.f32 %v614_v28, %v949_v3 }
 0x40a   : > { %v622_v30 = vsel %vm391_vm0, %v616_v29, 0.0 }
 0x40b   : > { %623 = vadd.xlane.f32.xlu1 %v622_v30 }
 0x476   : > { %v621_v37 = vpop.xlane.xlu1 %620 }
 0x477   : > { %v632_v38 = vmul.f32 %v631_v36, %v621_v37 }
 0x479   : > { %v634_v3 = vsub.f32 %v615_v23, %v632_v38 }
 0x47b   : > { %v636_v40 = vmul.f32 %v634_v3, %v634_v3 }
 0x47d   : > { %v638_v41 = vsel %vm391_vm0, %v636_v40, 0.0 }
 0x47e   : > { %639 = vadd.xlane.f32.xlu1 %v638_v41  ;;  %v624_v42 = vpop.xlane.xlu1 %623 }
 0x47f   : > { %v633_v43 = vmul.f32 %v631_v36, %v624_v42 }
 0x481   : > { %v635_v44 = vsub.f32 %v616_v29, %v633_v43 }
 0x483   : > { %v637_v45 = vmul.f32 %v635_v44, %v635_v44 }
 0x485   : > { %v641_v46 = vsel %vm391_vm0, %v637_v45, 0.0 }
 0x486   : > { %642 = vadd.xlane.f32.xlu0 %v641_v46 }
 0x497   : > { %684 = vperm.xlu1 %830, %v680_v47  }
 0x4f1   : > { %v640_v48 = vpop.xlane.xlu1 %639 }
 0x4f2   : > { %v644_v49 = vmul.f32 %v640_v48, %v631_v36 }
 0x4f4   : > { %v646_v50 = vadd.f32 1e-05, %v644_v49 }
 0x4f6   : > { %855 = vrsqrt.f32 %v646_v50  ;;  %vm654_vm6 = vweird.f32 %v646_v50 }
 0x4f9   : > { %v643_v51 = vpop.xlane.xlu0 %642 }
 0x4fa   : > { %v645_v52 = vmul.f32 %v643_v51, %v631_v36 }
 0x4fc   : > { %v856_v53 = vpop.eup %855  ;;  %v647_v54 = vadd.f32 1e-05, %v645_v52 }
 0x4fd   : > { %v649_v55 = vmul.f32 %v856_v53, %v646_v50  ;;  %vm655_vm5 = vweird.f32 %v856_v53 }
 0x4fe   : > { %857 = vrsqrt.f32 %v647_v54  ;;  %vm656_vm7 = vmor %vm654_vm6, %vm655_vm5  ;;  %vm664_vm9 = vweird.f32 %v647_v54 }
 0x4ff   : > { %v650_v56 = vmul.f32 %v856_v53, %v649_v55 }
 0x501   : > { %v651_v57 = vmul.f32 0.5, %v650_v56 }
 0x503   : > { %v652_v58 = vsub.f32 1.5, %v651_v57 }
 0x504   : > { %v858_v59 = vpop.eup %857 }
 0x505   : > { %v653_v60 = vmul.f32 %v856_v53, %v652_v58  ;;  %v659_v61 = vmul.f32 %v858_v59, %v647_v54  ;;  %vm665_vm8 = vweird.f32 %v858_v59 }
 0x506   : > { %vm666_vm10 = vmor %vm664_vm9, %vm665_vm8 }
 0x507   : > { %v660_v63 = vmul.f32 %v858_v59, %v659_v61  ;;  %v657_v0 = vsel %vm656_vm7, %v856_v53, %v653_v60 }
 0x508   : > { %v668_v1 = vmul.f32 %v657_v0, %v634_v3 }
 0x509   : > { %v661_v5 = vmul.f32 0.5, %v660_v63  ;;  %v685_v8 = vpop.permute.xlu1 %684 }
 0x50a   : > { %v673_v6 = vmul.f32 %v835_v62, %v668_v1 }
 0x50b   : > { %v662_v7 = vsub.f32 1.5, %v661_v5 }
 0x50c   : > { %v678_v9 = vadd.f32 %v836_v4, %v673_v6 }
 0x50d   : > { %v663_v10 = vmul.f32 %v858_v59, %v662_v7 }
 0x50e   : > { %v692_v11 = vmul.f32 %v685_v8, %v678_v9 }
 0x50f   : > { %v667_v12 = vsel %vm666_vm10, %v858_v59, %v663_v10 }
 0x510   : > { %694 = vst.msk [vmem:[%s366_s25] sm:$0xff] %vm391_vm0, %v692_v11  ;;  %v669_v13 = vmul.f32 %v667_v12, %v635_v44 }
 0x512   : > { %v674_v14 = vmul.f32 %v835_v62, %v669_v13 }
 0x514   : > { %v679_v16 = vadd.f32 %v836_v4, %v674_v14 }
 0x516   : > { %v693_v17 = vmul.f32 %v690_v15, %v679_v16 }
 0x518   : > { %695 = vst.msk [vmem:[%s366_s25 + $0x8] sm:$0xff] %vm391_vm0, %v693_v17 }
 0x519 PF: > { %s19_s30 = sadd.s32 1, %s865_s30  }
 0x51a   : > { %p16_p4 = scmp.ge.s32.totalorder %s19_s30, 4  }
 0x51c   :  { %18 = sbr.rel (!%p16_p4) target bundleno = 1 (0x1), region = 92 }

// kernel: run.23
= control target key start
LH: loop header
LB: loop body
LE: loop exit
PB: predicated region body
PF: predicated region fallthrough
CT: control target
= control target key end

     0   :  { %9 = vsyncpa [#allocation3], 0  ;;  %s626_s0 = inlined_call_operand.vmem [shape: f32[2,16,32], index: 0, kind: input, shape index: {}]   ;;  %s627_s1 = inlined_call_operand.vmem [shape: bf16[32,16], index: 1, kind: input, shape index: {}]   ;;  %s628_s2 = inlined_call_operand.vmem [shape: f32[1,16], index: 2, kind: input, shape index: {}]   ;;  %s629_s3 = inlined_call_operand.vmem [shape: f32[2,16,1], index: 3, kind: input, shape index: {}]   ;;  %s630_s4 = inlined_call_operand.hbm [shape: f32[2,16,16], index: 4, kind: output, shape index: {}]  }
   0x1   :  { %11 = vsyncpa [#allocation3 + $0x1], 0  ;;  %s529_s15 = smov 0   ;;  %s531_s16 = smov 0  }
   0x2   :  { %s533_s17 = smov 0   ;;  %s535_s18 = smov 0  }
   0x3 LB: > { %s550_s19 = sadd.s32 4294967295, %s499_s18   ;;  %s365_s20 = sadd.s32 4294967294, %s499_s18   ;;  %s499_s18 = sphi %s535_s18, %s636_s18   ;;  %s495_s17 = sphi %s533_s17, %s635_s17   ;;  %s491_s16 = sphi %s531_s16, %s634_s16   ;;  %s487_s15 = sphi %s529_s15, %s633_s15  }
   0x4   : > { %s554_s21 = sadd.s32 1, %s499_s18   ;;  %s118_s22 = sadd.s32 1, %s495_s17 }
   0x5   : > { %s115_s23 = ssub.s32 %s499_s18, %s554_s21  ;;  %p128_p0 = scmp.ne.s32.totalorder %s495_s17, %s491_s16 }
   0x6   : > { %p116_p1 = scmp.eq.s32.totalorder %s115_s23, 0  ;;  %p129_p2 = scmp.eq.s32.totalorder %s550_s19, 1 }
   0x7   : > { %p134_p3 = scmp.ne.s32.totalorder %s491_s16, %s487_s15  ;;  %p135_p4 = scmp.eq.s32.totalorder %s365_s20, 1 }
   0x8   : > { %s565_s24 = scalar_select %p116_p1, %s495_s17, %s118_s22  }
   0x9   : > { %p567_p5 = por %p129_p2, %p128_p0  ;;  %p571_p6 = por %p135_p4, %p134_p3 }
   0xa   : > { %p368_p7 = scmp.ge.s32.totalorder %s499_s18, 1  ;;  %p175_p8 = scmp.lt.s32.totalorder %s499_s18, 3 }
   0xc   : > { %p176_p9 = pnand %p368_p7, %p175_p8 }
   0xd   : > { %p206_p10 = scmp.lt.s32.totalorder (!%p176_p9), %s550_s19, 1  ;;  %s203_s13 = sand.u32 (!%p176_p9), 1, %s491_s16  }
   0xe   : > { %179 = sbr.rel (%p176_p9) target bundleno = 169 (0xa9), region = 36  ;;  %s369_s22 = sshll.u32 (!%p176_p9), %s203_s13, 4 }
   0xf   : > { %s392_s23 = sshll.u32 (!%p176_p9), %s550_s19, 4  ;;  %s205_s30 = scalar_lea.vmem (!%p176_p9), [#allocation2], %s369_s22 }
  0x10   : > { %s287_s29 = scalar_lea.hbm (!%p176_p9), %s630_s4, %s392_s23  ;;  %s276_s7 = scalar_lea.sflag (!%p176_p9), [#allocation3], %s203_s13 }
  0x11   : > { %s457_s11 = scalar_lea.hbm (!%p176_p9), %s630_s4, 32 }
  0x13   : > { %v391_v0 = vld [vmem:[%s627_s1 + $0x8] sm:$0xff]  ;;  %v501_v1 = vmov 0   ;;  %v390_v2 = vld [vmem:[%s627_s1] sm:$0xff]  ;;  %s207_s5 = scalar_select %p206_p10, %s550_s19, 1  ;;  %vm240_vm0 = vcmask 261120   ;;  %vm272_vm1 = vcmask 130048  }
  0x14   : > { %435 = vset.pattern.permute.xlu0 %v501_v1  ;;  %250 = vmatpush.bf16.msra.mxu0 %v391_v0  ;;  %v436_v8 = vld [vmem:[%s628_s2] ss:$0 sm:$0xff] }
  0x15   : > { %s388_s6 = sshll.u32 %s207_s5, 4  ;;  %s288_s5 = sshll.u32 %s205_s30, 4  ;;  %s289_s5 = int_to_ptr.vmem [resolvable:$true] %s288_s5 }
  0x16   : > { %s210_s9 = scalar_lea.vmem %s626_s0, %s388_s6  ;;  %s215_s12 = scalar_lea.vmem %s629_s3, %s388_s6 }
  0x17   : > { %v217_v3 = vld [vmem:[%s210_s9] sm:$0xff]  ;;  %v218_v4 = vld [vmem:[%s210_s9 + $0x8] sm:$0xff]  ;;  %s290_s6 = sshll.u32 %s287_s29, 4  ;;  %s291_s6 = int_to_ptr.hbm [resolvable:$true] %s290_s6 }
  0x18   : > { %251 = vmatpush.bf16.msra.mxu0 %v390_v2  ;;  %v258_v5 = vld [vmem:[%s215_s12] sm:$0xff]  ;;  %v219_v6 = vpack.c.bf16 %v218_v4, %v217_v3  ;;  %v259_v7 = vld [vmem:[%s215_s12 + $0x8] sm:$0xff]  ;;  %s451_s19 = sshra.s32 %s291_s6, 4  ;;  %s452_s19 = int_to_ptr.hbm [resolvable:$true] %s451_s19 }
  0x19   : > { %262 = vperm.xlu0 %435, %v258_v5   ;;  %s453_s8 = scalar_lea.hbm %s452_s19, 16  ;;  %p458_p0 = scmp.lt.s32.totalorder %s452_s19, %s630_s4 }
  0x1a   : > { %p454_p11 = scmp.ne.s32.totalorder %s452_s19, %s453_s8  ;;  %p459_p1 = scmp.lt.s32.totalorder %s457_s11, %s453_s8 }
  0x1b   : > { %382 = vmatmul.msk.bf16.vlgmr.msra.gmra.mxu0 %vm240_vm0, %v219_v6 }
  0x1c   : > { %p455_p12 = pnand %p454_p11, %p567_p5  ;;  %p460_p2 = por %p459_p1, %p458_p0 }
  0x1e   : > { %p456_p13 = pneg %p455_p12 }
  0x20   : > { %p461_p3 = pnand %p460_p2, %p456_p13 }
  0x21   : > { %267 = vperm.xlu0 %435, %v259_v7  }
  0x8b   : > { %v263_v9 = vpop.permute.xlu0 %262 }
  0x93   : > { %v268_v15 = vpop.permute.xlu0 %267 }
  0x98   : > { %v253_v10 = vpop.f32.mrf.mxu0 }
  0x99   : > { %v254_v11 = vadd.f32 %v436_v8, %v253_v10 }
  0x9b   : > { %v270_v12 = vmul.f32 %v263_v9, %v254_v11 }
  0x9d   : > { %273 = vst.msk [vmem:[%s205_s30] sm:$0xff] %vm272_vm1, %v270_v12 }
  0xa0   : > { %v255_v13 = vpop.f32.mrf.mxu0 }
  0xa1   : > { %v256_v14 = vadd.f32 %v436_v8, %v255_v13 }
  0xa3   : > { %v271_v16 = vmul.f32 %v268_v15, %v256_v14 }
  0xa5   : > { %274 = vst.msk [vmem:[%s205_s30 + $0x8] sm:$0xff] %vm272_vm1, %v271_v16 }
  0xa6   : > { %464 = shalt.err (!%p461_p3)
}
  0xa7   : > { %s502_s13 = smov 128   ;;  %s503_s20 = smov 8  }
  0xa8   : > { %393 = dma.vmem_to_hbm [thread:$0]  (%p567_p5), %s289_s5, 256, %s291_s6, %s276_s7, %s502_s13, %s502_s13, %s503_s20  }
  0xa9 PF: > { %p399_p4 = scmp.ge.s32.totalorder %s499_s18, 2  ;;  %s305_s22 = sand.u32 1, %s487_s15  }
  0xaa   : > { %s306_s23 = scalar_lea.sflag [#allocation3], %s305_s22 }
  0xab   : > { %p396_p7 = pnand %p399_p4, %p571_p6 }
  0xad   : > { %p397_p8 = pneg %p396_p7 }
  0xaf   : > { %482 = dma.done.wait (%p397_p8), %s306_s23, 256  }
  0xb0   : > { %484 = vsyncadd (%p397_p8), %s306_s23, 4294967040  ;;  %p14_p9 = scmp.ge.s32.totalorder %s554_s21, 4   ;;  %s633_s15 = smov %s491_s16 }
  0xb1   : > { %s634_s16 = smov %s495_s17  ;;  %s635_s17 = smov %s565_s24 }
  0xb2   : > { %s636_s18 = smov %s554_s21  ;;  %16 = sbr.rel (!%p14_p9) target bundleno = 3 (0x3), region = 74 }
  0xb7   :  { %312 = vsyncpa [#allocation3], 1 }
  0xb8   :  { %314 = vsyncpa [#allocation3 + $0x1], 1 }

// kernel: run.17
= control target key start
LH: loop header
LB: loop body
LE: loop exit
PB: predicated region body
PF: predicated region fallthrough
CT: control target
= control target key end

     0   :  { %s1123_s19 = smov 0   ;;  %s1265_s0 = inlined_call_operand.vmem [shape: f32[2,16,32], index: 0, kind: input, shape index: {}]   ;;  %s1266_s1 = inlined_call_operand.vmem [shape: bf16[3,32,64], index: 1, kind: input, shape index: {}]   ;;  %s1267_s2 = inlined_call_operand.vmem [shape: f32[1,64], index: 2, kind: input, shape index: {}]   ;;  %s1268_s3 = inlined_call_operand.vmem [shape: f32[1,64], index: 3, kind: input, shape index: {}]   ;;  %s1269_s4 = inlined_call_operand.vmem [shape: f32[1,64], index: 4, kind: input, shape index: {}]   ;;  %s1270_s5 = inlined_call_operand.vmem [shape: bf16[3,64,64], index: 5, kind: input, shape index: {}]   ;;  %s1271_s6 = inlined_call_operand.vmem [shape: f32[1,64], index: 6, kind: input, shape index: {}]   ;;  %s1272_s7 = inlined_call_operand.vmem [shape: f32[1,64], index: 7, kind: input, shape index: {}]   ;;  %s1273_s8 = inlined_call_operand.vmem [shape: f32[1,64], index: 8, kind: input, shape index: {}]   ;;  %s1274_s9 = inlined_call_operand.vmem [shape: f32[1,64], index: 9, kind: input, shape index: {}]   ;;  %s1275_s10 = inlined_call_operand.<no memory space> [shape: f32[1,1], index: 10, kind: input, shape index: {}]   ;;  %s1276_s11 = inlined_call_operand.vmem [shape: f32[2,16,1], index: 11, kind: output, shape index: {}]  }
   0x1   :  { %v16_v0 = vstv %s1275_s10 }
   0x2   :  { %17 = vst [vmem:[#allocation4] sm:$0x1] %v16_v0 }
   0x3 LB: > { %s889_s20 = sadd.s32 4294967295, %s1056_s19   ;;  %p893_p0 = scmp.ge.s32.totalorder %s1056_s19, 1  ;;  %s1056_s19 = sphi %s1123_s19, %s23_s19  }
   0x4   : > { %p339_p1 = scmp.lt.s32.totalorder %s1056_s19, 3 }
   0x6   : > { %p340_p2 = pnand %p893_p0, %p339_p1 }
   0x7   : > { %p379_p3 = scmp.lt.s32.totalorder (!%p340_p2), %s889_s20, 1 }
   0x8   : > { %343 = sbr.rel (%p340_p2) target bundleno = 993 (0x3e1), region = 64 }
   0xd   : > { %v1007_v1 = vld [vmem:[%s1266_s1 + $0x18] sm:$0xff]  ;;  %v1005_v2 = vld [vmem:[%s1266_s1 + $0x8] sm:$0xff]  ;;  %vm393_vm0 = vcmask 261120   ;;  %v1006_v4 = vld [vmem:[%s1266_s1 + $0x10] sm:$0xff]  ;;  %v1058_v6 = vmov 0.0   ;;  %s1278_s20 = smov (!%p379_p3, %s889_s20), 1 }
   0xe   : > { %v1009_v3 = vld [vmem:[%s1266_s1 + $0x28] sm:$0xff]  ;;  %v1004_v5 = vld [vmem:[%s1266_s1] sm:$0xff]  ;;  %395 = vst.msk [vmem:[#allocation2 + $0x8] sm:$0xff] %vm393_vm0, %v1058_v6  ;;  %436 = vmatpush.bf16.msra.mxu0 %v1007_v1  ;;  %465 = vmatpush.bf16.msra.mxu1 %v1005_v2  ;;  %s1002_s13 = sshll.u32 %s1278_s20, 4  ;;  %vm521_vm1 = vcmask 523264   ;;  %v1059_v36 = vmov 64.0  }
   0xf   : > { %396 = vst.msk [vmem:[#allocation2 + $0x10] sm:$0xff] %vm393_vm0, %v1058_v6  ;;  %502 = vmatpush.bf16.msra.mxu2 %v1009_v3  ;;  %v1008_v7 = vld [vmem:[%s1266_s1 + $0x20] sm:$0xff]  ;;  %s383_s16 = scalar_lea.vmem %s1265_s0, %s1002_s13  ;;  %1040 = vrcp.f32 %v1059_v36  ;;  %v1017_v53 = vld [vmem:[%s1270_s5 + $0x38] sm:$0xff]  ;;  %v1016_v58 = vld [vmem:[%s1270_s5 + $0x30] sm:$0xff]  ;;  %s388_s24 = scalar_lea.vmem %s1276_s11, %s1002_s13  ;;  %vm831_vm15 = vcmask 7168  }
  0x10   : > { %394 = vst.msk [vmem:[#allocation2] sm:$0xff] %vm393_vm0, %v1058_v6  ;;  %v390_v8 = vld [vmem:[%s383_s16] sm:$0xff]  ;;  %v391_v9 = vld [vmem:[%s383_s16 + $0x8] sm:$0xff]  ;;  %v1013_v54 = vld [vmem:[%s1270_s5 + $0x18] sm:$0xff]  ;;  %644 = vmatpush.bf16.msra.mxu3 %v1017_v53 }
  0x11   : > { %397 = vst.msk [vmem:[#allocation2 + $0x18] sm:$0xff] %vm393_vm0, %v1058_v6  ;;  %v1032_v22 = vld [vmem:[%s1267_s2] ss:$0 sm:$0xff]  ;;  %v1021_v55 = vld [vmem:[%s1270_s5 + $0x58] sm:$0xff]  ;;  %v1012_v59 = vld [vmem:[%s1270_s5 + $0x10] sm:$0xff] }
  0x12   : > { %437 = vmatpush.bf16.msra.mxu0 %v1006_v4  ;;  %466 = vmatpush.bf16.msra.mxu1 %v1004_v5  ;;  %398 = vst.msk [vmem:[#allocation2 + $0x8] sm:$0xff] %vm393_vm0, %v390_v8  ;;  %v1020_v60 = vld [vmem:[%s1270_s5 + $0x50] sm:$0xff]  ;;  %v1015_v62 = vld [vmem:[%s1270_s5 + $0x28] sm:$0xff]  ;;  %v1014_v2 = vld [vmem:[%s1270_s5 + $0x20] sm:$0xff] }
  0x13   : > { %503 = vmatpush.bf16.msra.mxu2 %v1008_v7  ;;  %399 = vst.msk [vmem:[#allocation2 + $0x10] sm:$0xff] %vm393_vm0, %v391_v9  ;;  %v1011_v63 = vld [vmem:[%s1270_s5 + $0x8] sm:$0xff]  ;;  %v1010_v3 = vld [vmem:[%s1270_s5] sm:$0xff] }
  0x14   : > { %584 = vst.msk [vmem:[#allocation3] sm:$0xff] %vm521_vm1, %v1058_v6  ;;  %645 = vmatpush.bf16.msra.mxu3 %v1016_v58  ;;  %v1019_v0 = vld [vmem:[%s1270_s5 + $0x48] sm:$0xff]  ;;  %v1018_v5 = vld [vmem:[%s1270_s5 + $0x40] sm:$0xff] }
  0x15   : > { %585 = vst.msk [vmem:[#allocation3 + $0x8] sm:$0xff] %vm521_vm1, %v1058_v6  ;;  %v1041_v37 = vpop.eup %1040 }
  0x16   : > { %586 = vst.msk [vmem:[#allocation3 + $0x10] sm:$0xff] %vm521_vm1, %v1058_v6  ;;  %v529_v38 = vmul.f32 64.0, %v1041_v37  ;;  %vm533_vm2 = vweird.f32 %v1041_v37  ;;  %685 = vmatpush.bf16.msrb.mxu0 %v1013_v54  ;;  %738 = vmatpush.bf16.msrb.mxu1 %v1021_v55 }
  0x17   : > { %587 = vst.msk [vmem:[#allocation3 + $0x18] sm:$0xff] %vm521_vm1, %v1058_v6 }
  0x18   : > { %v530_v39 = vsub.f32 1.0, %v529_v38  ;;  %646 = vmatpush.bf16.msra.mxu3 %v1015_v62 }
  0x19   : > { %v407_v10 = vld [vmem:[#allocation2 + $0x8] sm:$0xff] }
  0x1a   : > { %v400_v11 = vld [vmem:[#allocation2 + $0x7] sm:$0xff]  ;;  %v408_v12 = vld [vmem:[#allocation2 + $0x10] sm:$0xff]  ;;  %v531_v40 = vmul.f32 %v1041_v37, %v530_v39  ;;  %686 = vmatpush.bf16.msrb.mxu0 %v1012_v59  ;;  %739 = vmatpush.bf16.msrb.mxu1 %v1020_v60 }
  0x1b   : > { %v401_v13 = vld [vmem:[#allocation2 + $0xf] sm:$0xff]  ;;  %v409_v15 = vpack.c.bf16 %v408_v12, %v407_v10 }
  0x1c   : > { %v473_v14 = vld [vmem:[#allocation2 + $0x9] sm:$0xff]  ;;  %v402_v16 = vpack.c.bf16 %v401_v13, %v400_v11  ;;  %v474_v17 = vld [vmem:[#allocation2 + $0x11] sm:$0xff]  ;;  %v532_v41 = vadd.f32 %v1041_v37, %v531_v40  ;;  %647 = vmatpush.bf16.msra.mxu3 %v1014_v2 }
  0x1d   : > { %v475_v18 = vpack.c.bf16 %v474_v17, %v473_v14  ;;  %910 = vmatmul.msk.bf16.vlgmr.msra.gmra.mxu0 %vm393_vm0, %v409_v15  ;;  %v1033_v15 = vld [vmem:[%s1268_s3] ss:$0 sm:$0xff] }
  0x1e   : > { %919 = vmatmul.msk.bf16.vlgmr.msra.gmra.mxu1 %vm393_vm0, %v402_v16  ;;  %v1175_v42 = vsel %vm533_vm2, %v1041_v37, %v532_v41  ;;  %687 = vmatpush.bf16.msrb.mxu0 %v1011_v63 }
  0x1f   : > { %932 = vmatmul.msk.bf16.vlgmr.msra.gmra.mxu2 %vm393_vm0, %v475_v18  ;;  %740 = vmatpush.bf16.msrb.mxu1 %v1019_v0  ;;  %v1034_v18 = vld [vmem:[%s1269_s4] ss:$0 sm:$0xff] }
  0x22   : > { %688 = vmatpush.bf16.msrb.mxu0 %v1010_v3 }
  0x23   : > { %741 = vmatpush.bf16.msrb.mxu1 %v1018_v5 }
  0x9a   : > { %v439_v19 = vpop.f32.mrf.mxu0 }
  0x9b   : > { %v468_v20 = vpop.f32.mrf.mxu1 }
  0x9c   : > { %v469_v21 = vadd.f32 %v468_v20, %v439_v19 }
  0xa2   : > { %v505_v23 = vpop.f32.mrf.mxu2  ;;  %v441_v26 = vpop.f32.mrf.mxu0 }
  0xa3   : > { %v510_v24 = vadd.f32 %v505_v23, %v469_v21  ;;  %v470_v27 = vpop.f32.mrf.mxu1 }
  0xa4   : > { %v471_v29 = vadd.f32 %v470_v27, %v441_v26 }
  0xa5   : > { %v515_v25 = vadd.f32 %v1032_v22, %v510_v24 }
  0xa7   : > { %v517_v28 = vmax.f32 %v515_v25, 0.0 }
  0xa9   : > { %v522_v30 = vsel %vm521_vm1, %v517_v28, 0.0 }
  0xaa   : > { %v507_v31 = vpop.f32.mrf.mxu2  ;;  %523 = vadd.xlane.f32.xlu0 %v522_v30 }
  0xab   : > { %v511_v32 = vadd.f32 %v507_v31, %v471_v29 }
  0xad   : > { %v516_v33 = vadd.f32 %v1032_v22, %v511_v32 }
  0xaf   : > { %v518_v34 = vmax.f32 %v516_v33, 0.0 }
  0xb1   : > { %v525_v35 = vsel %vm521_vm1, %v518_v34, 0.0 }
  0xb2   : > { %526 = vadd.xlane.f32.xlu0 %v525_v35 }
 0x11d   : > { %v524_v43 = vpop.xlane.xlu0 %523 }
 0x11e   : > { %v535_v44 = vmul.f32 %v1175_v42, %v524_v43  ;;  %v1035_v43 = vld [vmem:[%s1271_s6] ss:$0 sm:$0xff] }
 0x120   : > { %v537_v45 = vsub.f32 %v517_v28, %v535_v44 }
 0x122   : > { %v539_v46 = vmul.f32 %v537_v45, %v537_v45 }
 0x124   : > { %v541_v47 = vsel %vm521_vm1, %v539_v46, 0.0 }
 0x125   : > { %542 = vadd.xlane.f32.xlu1 %v541_v47  ;;  %v527_v48 = vpop.xlane.xlu0 %526 }
 0x126   : > { %v536_v49 = vmul.f32 %v1175_v42, %v527_v48 }
 0x128   : > { %v1180_v50 = vsub.f32 %v518_v34, %v536_v49 }
 0x12a   : > { %v540_v51 = vmul.f32 %v1180_v50, %v1180_v50 }
 0x12c   : > { %v544_v52 = vsel %vm521_vm1, %v540_v51, 0.0 }
 0x12d   : > { %545 = vadd.xlane.f32.xlu1 %v544_v52 }
 0x198   : > { %v543_v56 = vpop.xlane.xlu1 %542 }
 0x199   : > { %v547_v57 = vmul.f32 %v543_v56, %v1175_v42 }
 0x19b   : > { %v549_v61 = vadd.f32 1e-05, %v547_v57 }
 0x19d   : > { %1042 = vrsqrt.f32 %v549_v61  ;;  %vm557_vm4 = vweird.f32 %v549_v61 }
 0x1a0   : > { %v546_v1 = vpop.xlane.xlu1 %545 }
 0x1a1   : > { %v548_v4 = vmul.f32 %v546_v1, %v1175_v42 }
 0x1a3   : > { %v1043_v6 = vpop.eup %1042  ;;  %v550_v7 = vadd.f32 1e-05, %v548_v4 }
 0x1a4   : > { %v552_v8 = vmul.f32 %v1043_v6, %v549_v61  ;;  %vm558_vm3 = vweird.f32 %v1043_v6 }
 0x1a5   : > { %1044 = vrsqrt.f32 %v550_v7  ;;  %vm559_vm5 = vmor %vm557_vm4, %vm558_vm3  ;;  %vm567_vm7 = vweird.f32 %v550_v7 }
 0x1a6   : > { %v553_v9 = vmul.f32 %v1043_v6, %v552_v8 }
 0x1a8   : > { %v554_v10 = vmul.f32 0.5, %v553_v9 }
 0x1aa   : > { %v555_v11 = vsub.f32 1.5, %v554_v10 }
 0x1ab   : > { %v1045_v12 = vpop.eup %1044 }
 0x1ac   : > { %v556_v13 = vmul.f32 %v1043_v6, %v555_v11  ;;  %v562_v14 = vmul.f32 %v1045_v12, %v550_v7  ;;  %vm568_vm6 = vweird.f32 %v1045_v12 }
 0x1ad   : > { %vm569_vm8 = vmor %vm567_vm7, %vm568_vm6 }
 0x1ae   : > { %v560_v16 = vsel %vm559_vm5, %v1043_v6, %v556_v13  ;;  %v563_v17 = vmul.f32 %v1045_v12, %v562_v14 }
 0x1af   : > { %v571_v19 = vmul.f32 %v560_v16, %v537_v45  ;;  %v1036_v16 = vld [vmem:[%s1272_s7] ss:$0 sm:$0xff] }
 0x1b0   : > { %v564_v20 = vmul.f32 0.5, %v563_v17 }
 0x1b1   : > { %v576_v21 = vmul.f32 %v1033_v15, %v571_v19  ;;  %v1037_v19 = vld [vmem:[%s1273_s8] ss:$0 sm:$0xff] }
 0x1b2   : > { %v565_v22 = vsub.f32 1.5, %v564_v20 }
 0x1b3   : > { %v581_v23 = vadd.f32 %v1034_v18, %v576_v21 }
 0x1b4   : > { %v566_v24 = vmul.f32 %v1045_v12, %v565_v22  ;;  %v1038_v22 = vld [vmem:[%s1274_s9] ss:$0 sm:$0xff] }
 0x1b5   : > { %588 = vst.msk [vmem:[#allocation3 + $0x8] sm:$0xff] %vm521_vm1, %v581_v23 }
 0x1b6   : > { %v570_v25 = vsel %vm569_vm8, %v1045_v12, %v566_v24 }
 0x1b7   : > { %v572_v26 = vmul.f32 %v570_v25, %v1180_v50 }
 0x1b9   : > { %v577_v27 = vmul.f32 %v1033_v15, %v572_v26 }
 0x1bb   : > { %v582_v28 = vadd.f32 %v1034_v18, %v577_v27 }
 0x1bc   : > { %v601_v29 = vld [vmem:[#allocation3 + $0x8] sm:$0xff] }
 0x1bd   : > { %589 = vst.msk [vmem:[#allocation3 + $0x10] sm:$0xff] %vm521_vm1, %v582_v28  ;;  %v590_v30 = vld [vmem:[#allocation3 + $0x7] sm:$0xff] }
 0x1c4   : > { %v602_v31 = vld [vmem:[#allocation3 + $0x10] sm:$0xff] }
 0x1c5   : > { %v591_v32 = vld [vmem:[#allocation3 + $0xf] sm:$0xff]  ;;  %v603_v34 = vpack.c.bf16 %v602_v31, %v601_v29 }
 0x1c6   : > { %v695_v33 = vld [vmem:[#allocation3 + $0x9] sm:$0xff]  ;;  %v592_v35 = vpack.c.bf16 %v591_v32, %v590_v30  ;;  %v696_v36 = vld [vmem:[#allocation3 + $0x11] sm:$0xff] }
 0x1c7   : > { %v697_v37 = vpack.c.bf16 %v696_v36, %v695_v33  ;;  %957 = vmatmul.msk.bf16.vlgmr.msra.gmra.mxu3 %vm521_vm1, %v603_v34  ;;  %v1039_v34 = vld [vmem:[#allocation4] ss:$0 sm:$0xff] }
 0x1c8   : > { %974 = vmatmul.msk.bf16.vlgmr.msrb.gmra.mxu0 %vm521_vm1, %v592_v35 }
 0x1c9   : > { %999 = vmatmul.msk.bf16.vlgmr.msrb.gmra.mxu1 %vm521_vm1, %v697_v37 }
 0x245   : > { %v690_v38 = vpop.f32.mrf.mxu0 }
 0x246   : > { %v743_v39 = vpop.f32.mrf.mxu1 }
 0x24a   : > { %v649_v40 = vpop.f32.mrf.mxu3 }
 0x24b   : > { %v691_v41 = vadd.f32 %v690_v38, %v649_v40 }
 0x24d   : > { %v748_v44 = vadd.f32 %v743_v39, %v691_v41  ;;  %v692_v47 = vpop.f32.mrf.mxu0 }
 0x24e   : > { %v745_v51 = vpop.f32.mrf.mxu1 }
 0x24f   : > { %v753_v45 = vadd.f32 %v1035_v43, %v748_v44 }
 0x251   : > { %v755_v46 = vmax.f32 %v753_v45, 0.0 }
 0x252   : > { %v651_v48 = vpop.f32.mrf.mxu3 }
 0x253   : > { %v693_v49 = vadd.f32 %v692_v47, %v651_v48  ;;  %v759_v50 = vsel %vm521_vm1, %v755_v46, 0.0 }
 0x254   : > { %760 = vadd.xlane.f32.xlu2 %v759_v50 }
 0x255   : > { %v749_v52 = vadd.f32 %v745_v51, %v693_v49 }
 0x257   : > { %v754_v53 = vadd.f32 %v1035_v43, %v749_v52 }
 0x259   : > { %v756_v54 = vmax.f32 %v754_v53, 0.0 }
 0x25b   : > { %v762_v55 = vsel %vm521_vm1, %v756_v54, 0.0 }
 0x25c   : > { %763 = vadd.xlane.f32.xlu2 %v762_v55 }
 0x2c7   : > { %v761_v56 = vpop.xlane.xlu2 %760 }
 0x2c8   : > { %v765_v57 = vmul.f32 %v761_v56, %v1175_v42 }
 0x2ca   : > { %v767_v58 = vsub.f32 %v755_v46, %v765_v57 }
 0x2cc   : > { %v769_v59 = vmul.f32 %v767_v58, %v767_v58 }
 0x2ce   : > { %v771_v60 = vsel %vm521_vm1, %v769_v59, 0.0 }
 0x2cf   : > { %772 = vadd.xlane.f32.xlu0 %v771_v60  ;;  %v764_v61 = vpop.xlane.xlu2 %763 }
 0x2d0   : > { %v766_v62 = vmul.f32 %v764_v61, %v1175_v42 }
 0x2d2   : > { %v768_v63 = vsub.f32 %v756_v54, %v766_v62 }
 0x2d4   : > { %v770_v0 = vmul.f32 %v768_v63, %v768_v63 }
 0x2d6   : > { %v774_v1 = vsel %vm521_vm1, %v770_v0, 0.0 }
 0x2d7   : > { %775 = vadd.xlane.f32.xlu1 %v774_v1 }
 0x342   : > { %v773_v2 = vpop.xlane.xlu0 %772 }
 0x343   : > { %v777_v3 = vmul.f32 %v773_v2, %v1175_v42 }
 0x345   : > { %v779_v4 = vadd.f32 1e-05, %v777_v3 }
 0x347   : > { %1046 = vrsqrt.f32 %v779_v4  ;;  %vm787_vm10 = vweird.f32 %v779_v4 }
 0x34a   : > { %v776_v5 = vpop.xlane.xlu1 %775 }
 0x34b   : > { %v778_v6 = vmul.f32 %v776_v5, %v1175_v42 }
 0x34d   : > { %v1047_v7 = vpop.eup %1046  ;;  %v780_v8 = vadd.f32 1e-05, %v778_v6 }
 0x34e   : > { %v782_v9 = vmul.f32 %v1047_v7, %v779_v4  ;;  %vm788_vm9 = vweird.f32 %v1047_v7 }
 0x34f   : > { %1048 = vrsqrt.f32 %v780_v8  ;;  %vm789_vm11 = vmor %vm787_vm10, %vm788_vm9  ;;  %vm797_vm13 = vweird.f32 %v780_v8 }
 0x350   : > { %v783_v10 = vmul.f32 %v1047_v7, %v782_v9 }
 0x352   : > { %v784_v11 = vmul.f32 0.5, %v783_v10 }
 0x354   : > { %v785_v12 = vsub.f32 1.5, %v784_v11 }
 0x355   : > { %v1049_v13 = vpop.eup %1048 }
 0x356   : > { %v786_v14 = vmul.f32 %v1047_v7, %v785_v12  ;;  %v792_v15 = vmul.f32 %v1049_v13, %v780_v8  ;;  %vm798_vm12 = vweird.f32 %v1049_v13 }
 0x357   : > { %vm799_vm14 = vmor %vm797_vm13, %vm798_vm12 }
 0x358   : > { %v790_v17 = vsel %vm789_vm11, %v1047_v7, %v786_v14  ;;  %v793_v18 = vmul.f32 %v1049_v13, %v792_v15 }
 0x359   : > { %v801_v42 = vmul.f32 %v790_v17, %v767_v58 }
 0x35a   : > { %v794_v20 = vmul.f32 0.5, %v793_v18 }
 0x35b   : > { %v806_v21 = vmul.f32 %v1036_v16, %v801_v42 }
 0x35c   : > { %v795_v23 = vsub.f32 1.5, %v794_v20 }
 0x35d   : > { %v811_v24 = vadd.f32 %v1037_v19, %v806_v21 }
 0x35e   : > { %v796_v25 = vmul.f32 %v1049_v13, %v795_v23 }
 0x35f   : > { %v817_v26 = vmul.f32 %v1038_v22, %v811_v24 }
 0x360   : > { %v800_v27 = vsel %vm799_vm14, %v1049_v13, %v796_v25 }
 0x361   : > { %v819_v28 = vsel %vm521_vm1, %v817_v26, 0.0  ;;  %v802_v29 = vmul.f32 %v800_v27, %v768_v63 }
 0x362   : > { %820 = vadd.xlane.f32.xlu2 %v819_v28 }
 0x363   : > { %v807_v30 = vmul.f32 %v1036_v16, %v802_v29 }
 0x365   : > { %v812_v31 = vadd.f32 %v1037_v19, %v807_v30 }
 0x367   : > { %v818_v32 = vmul.f32 %v1038_v22, %v812_v31 }
 0x369   : > { %v822_v33 = vsel %vm521_vm1, %v818_v32, 0.0 }
 0x36a   : > { %823 = vadd.xlane.f32.xlu0 %v822_v33 }
 0x3d5   : > { %v821_v35 = vpop.xlane.xlu2 %820 }
 0x3d6   : > { %v829_v36 = vadd.f32 %v1039_v34, %v821_v35 }
 0x3d8   : > { %832 = vst.msk [vmem:[%s388_s24] sm:$0xff] %vm831_vm15, %v829_v36 }
 0x3dd   : > { %v824_v37 = vpop.xlane.xlu0 %823 }
 0x3de   : > { %v830_v38 = vadd.f32 %v1039_v34, %v824_v37 }
 0x3e0   : > { %833 = vst.msk [vmem:[%s388_s24 + $0x8] sm:$0xff] %vm831_vm15, %v830_v38 }
 0x3e1 PF: > { %s23_s19 = sadd.s32 1, %s1056_s19  }
 0x3e2   : > { %p20_p4 = scmp.ge.s32.totalorder %s23_s19, 4  }
 0x3e4   :  { %22 = sbr.rel (!%p20_p4) target bundleno = 3 (0x3), region = 98 }

// kernel: run.18
= control target key start
LH: loop header
LB: loop body
LE: loop exit
PB: predicated region body
PF: predicated region fallthrough
CT: control target
= control target key end

     0   :  { %s1735_s0 = inlined_call_operand.vmem [shape: f32[2,16,32], index: 0, kind: input, shape index: {}]   ;;  %s1736_s1 = inlined_call_operand.vmem [shape: bf16[3,32,64], index: 1, kind: input, shape index: {}]   ;;  %s1737_s2 = inlined_call_operand.vmem [shape: f32[1,64], index: 2, kind: input, shape index: {}]   ;;  %s1738_s3 = inlined_call_operand.hbm [shape: f32[1,64], index: 3, kind: input, shape index: {}]   ;;  %s1739_s4 = inlined_call_operand.hbm [shape: f32[1,64], index: 4, kind: input, shape index: {}]   ;;  %s1740_s5 = inlined_call_operand.vmem [shape: bf16[3,64,64], index: 5, kind: input, shape index: {}]   ;;  %s1741_s6 = inlined_call_operand.hbm [shape: f32[1,64], index: 6, kind: input, shape index: {}]   ;;  %s1742_s7 = inlined_call_operand.hbm [shape: f32[1,64], index: 7, kind: input, shape index: {}]   ;;  %s1743_s8 = inlined_call_operand.hbm [shape: f32[1,64], index: 8, kind: input, shape index: {}]   ;;  %s1744_s9 = inlined_call_operand.hbm [shape: f32[1,64], index: 9, kind: input, shape index: {}]   ;;  %s1745_s10 = inlined_call_operand.<no memory space> [shape: f32[1,1], index: 10, kind: input, shape index: {}]   ;;  %s1746_s11 = inlined_call_operand.vmem [shape: f32[2,16,1], index: 11, kind: output, shape index: {}]  }
   0x1   :  { %v16_v0 = vstv %s1745_s10 }
   0x2   :  { %17 = vst [vmem:[#allocation4] sm:$0x1] %v16_v0 }
   0x3   :  { %18 = vsyncpa [#allocation6], 0 }
   0x4   :  { %19 = vsyncpa [#allocation8], 0 }
   0x5   :  { %20 = vsyncpa [#allocation11], 0 }
   0x6   :  { %21 = vsyncpa [#allocation14], 0  ;;  %s1546_s19 = smov 0  }
   0x7 LB: > { %s324_s22 = sshll.u32 %s1739_s4, 4  ;;  %s1555_s10 = sadd.s32 4294967295, %s1473_s19   ;;  %s1473_s19 = sphi %s1546_s19, %s27_s19   ;;  %s325_s22 = int_to_ptr.hbm [resolvable:$true] %s324_s22 }
   0x8   : > { %p1039_p0 = scmp.ge.s32.totalorder %s1473_s19, 1  ;;  %p294_p1 = scmp.lt.s32.totalorder %s1473_s19, 3 }
   0x9   : > { %p1225_p2 = scmp.eq.s32.totalorder %s1555_s10, 0  ;;  %s1475_s24 = smov [#allocation7]  }
   0xa   : > { %p1560_p3 = pnand %p1039_p0, %p294_p1  ;;  %s326_s25 = sshll.u32 %s1475_s24, 4  ;;  %s327_s25 = int_to_ptr.vmem [resolvable:$true] %s326_s25 }
   0xb   : > { %s351_s28 = sshll.u32 %s1742_s7, 4  ;;  %s312_s12 = sshll.u32 %s1738_s3, 4  ;;  %s352_s28 = int_to_ptr.hbm [resolvable:$true] %s351_s28  ;;  %s313_s12 = int_to_ptr.hbm [resolvable:$true] %s312_s12 }
   0xc   : > { %p1206_p4 = pneg %p1560_p3  ;;  %s1476_s14 = smov [#allocation10]  }
   0xd   : > { %s353_s15 = sshll.u32 %s1476_s14, 4  ;;  %s1477_s16 = smov [#allocation5]   ;;  %s354_s15 = int_to_ptr.vmem [resolvable:$true] %s353_s15 }
   0xe   : > { %p1574_p5 = pnand %p1225_p2, %p1206_p4  ;;  %s314_s17 = sshll.u32 %s1477_s16, 4  ;;  %s315_s17 = int_to_ptr.vmem [resolvable:$true] %s314_s17 }
   0xf   : > { %s339_s21 = sshll.u32 %s1741_s6, 4  ;;  %s363_s27 = sshll.u32 %s1743_s8, 4  ;;  %s340_s21 = int_to_ptr.hbm [resolvable:$true] %s339_s21  ;;  %s364_s27 = int_to_ptr.hbm [resolvable:$true] %s363_s27 }
  0x10   : > { %1212 = dma.hbm_to_vmem [thread:$0]  (!%p1574_p5), %s325_s22, 16, %s327_s25, [#allocation8]  }
  0x11   : > { %1218 = dma.hbm_to_vmem [thread:$0]  (!%p1574_p5), %s352_s28, 16, %s354_s15, [#allocation11]  }
  0x12   : > { %1209 = dma.hbm_to_vmem [thread:$0]  (!%p1574_p5), %s313_s12, 16, %s315_s17, [#allocation6]  }
  0x13   : > { %s1478_s29 = smov [#allocation9]   ;;  %s1479_s25 = smov [#allocation12]  }
  0x14   : > { %s341_s22 = sshll.u32 %s1478_s29, 4  ;;  %s365_s28 = sshll.u32 %s1479_s25, 4  ;;  %s342_s22 = int_to_ptr.vmem [resolvable:$true] %s341_s22  ;;  %s366_s28 = int_to_ptr.vmem [resolvable:$true] %s365_s28 }
  0x15   : > { %1215 = dma.hbm_to_vmem [thread:$0]  (!%p1574_p5), %s340_s21, 16, %s342_s22, [#allocation8]  }
  0x16   : > { %s375_s15 = sshll.u32 %s1744_s9, 4  ;;  %s1480_s12 = smov [#allocation13]   ;;  %s376_s15 = int_to_ptr.hbm [resolvable:$true] %s375_s15 }
  0x17   : > { %1221 = dma.hbm_to_vmem [thread:$0]  (!%p1574_p5), %s364_s27, 16, %s366_s28, [#allocation11]  }
  0x18   : > { %s377_s16 = sshll.u32 %s1480_s12, 4  ;;  %401 = sbr.rel (%p1560_p3) target bundleno = 1017 (0x3f9), region = 64  ;;  %s378_s16 = int_to_ptr.vmem [resolvable:$true] %s377_s16 }
  0x19   : > { %1224 = dma.hbm_to_vmem [thread:$0]  (!%p1574_p5), %s376_s15, 16, %s378_s16, [#allocation14]  }
  0x1d   : > { %1456 = dma.done.wait (%p1225_p2), [#allocation6], 16  }
  0x1e   : > { %1458 = vsyncadd (%p1225_p2), [#allocation6], 4294967280 }
  0x1f   : > { %1460 = dma.done.wait (%p1225_p2), [#allocation8], 32  }
  0x20   : > { %1462 = vsyncadd (%p1225_p2), [#allocation8], 4294967264 }
  0x21   : > { %1464 = dma.done.wait (%p1225_p2), [#allocation11], 32  }
  0x22   : > { %1466 = vsyncadd (%p1225_p2), [#allocation11], 4294967264 }
  0x23   : > { %1468 = dma.done.wait (%p1225_p2), [#allocation14], 16  }
  0x24   : > { %1470 = vsyncadd (%p1225_p2), [#allocation14], 4294967280  ;;  %p467_p6 = scmp.lt.s32.totalorder %s1555_s10, 1  ;;  %vm481_vm0 = vcmask 261120   ;;  %v1481_v1 = vmov 0.0   ;;  %v1167_v2 = vld [vmem:[%s1736_s1 + $0x18] sm:$0xff] }
  0x25   : > { %483 = vst.msk [vmem:[#allocation2 + $0x8] sm:$0xff] %vm481_vm0, %v1481_v1  ;;  %v1165_v3 = vld [vmem:[%s1736_s1 + $0x8] sm:$0xff]  ;;  %v1166_v5 = vld [vmem:[%s1736_s1 + $0x10] sm:$0xff]  ;;  %v1164_v6 = vld [vmem:[%s1736_s1] sm:$0xff]  ;;  %524 = vmatpush.bf16.msra.mxu0 %v1167_v2  ;;  %vm609_vm1 = vcmask 523264   ;;  %v1482_v36 = vmov 64.0  }
  0x26   : > { %s1750_s10 = smov (!%p467_p6, %s1555_s10), 1  ;;  %484 = vst.msk [vmem:[#allocation2 + $0x10] sm:$0xff] %vm481_vm0, %v1481_v1  ;;  %v1169_v4 = vld [vmem:[%s1736_s1 + $0x28] sm:$0xff]  ;;  %553 = vmatpush.bf16.msra.mxu1 %v1165_v3  ;;  %v1168_v9 = vld [vmem:[%s1736_s1 + $0x20] sm:$0xff]  ;;  %1261 = vrcp.f32 %v1482_v36  ;;  %v1177_v53 = vld [vmem:[%s1740_s5 + $0x38] sm:$0xff]  ;;  %vm919_vm15 = vcmask 7168  }
  0x27   : > { %482 = vst.msk [vmem:[#allocation2] sm:$0xff] %vm481_vm0, %v1481_v1  ;;  %s1162_s23 = sshll.u32 %s1750_s10, 4  ;;  %590 = vmatpush.bf16.msra.mxu2 %v1169_v4  ;;  %v1253_v22 = vld [vmem:[%s1737_s2] ss:$0 sm:$0xff]  ;;  %v1173_v54 = vld [vmem:[%s1740_s5 + $0x18] sm:$0xff]  ;;  %732 = vmatpush.bf16.msra.mxu3 %v1177_v53  ;;  %v1176_v58 = vld [vmem:[%s1740_s5 + $0x30] sm:$0xff] }
  0x28   : > { %485 = vst.msk [vmem:[#allocation2 + $0x18] sm:$0xff] %vm481_vm0, %v1481_v1  ;;  %s471_s18 = scalar_lea.vmem %s1735_s0, %s1162_s23  ;;  %v1181_v55 = vld [vmem:[%s1740_s5 + $0x58] sm:$0xff]  ;;  %v1172_v59 = vld [vmem:[%s1740_s5 + $0x10] sm:$0xff]  ;;  %v1175_v62 = vld [vmem:[%s1740_s5 + $0x28] sm:$0xff]  ;;  %s476_s22 = scalar_lea.vmem %s1746_s11, %s1162_s23 }
  0x29   : > { %v478_v7 = vld [vmem:[%s471_s18] sm:$0xff]  ;;  %v479_v8 = vld [vmem:[%s471_s18 + $0x8] sm:$0xff]  ;;  %525 = vmatpush.bf16.msra.mxu0 %v1166_v5  ;;  %672 = vst.msk [vmem:[#allocation3] sm:$0xff] %vm609_vm1, %v1481_v1  ;;  %v1180_v60 = vld [vmem:[%s1740_s5 + $0x50] sm:$0xff] }
  0x2a   : > { %486 = vst.msk [vmem:[#allocation2 + $0x8] sm:$0xff] %vm481_vm0, %v478_v7  ;;  %554 = vmatpush.bf16.msra.mxu1 %v1164_v6  ;;  %v1171_v63 = vld [vmem:[%s1740_s5 + $0x8] sm:$0xff]  ;;  %v1174_v2 = vld [vmem:[%s1740_s5 + $0x20] sm:$0xff] }
  0x2b   : > { %487 = vst.msk [vmem:[#allocation2 + $0x10] sm:$0xff] %vm481_vm0, %v479_v8  ;;  %591 = vmatpush.bf16.msra.mxu2 %v1168_v9  ;;  %733 = vmatpush.bf16.msra.mxu3 %v1176_v58  ;;  %v1179_v0 = vld [vmem:[%s1740_s5 + $0x48] sm:$0xff]  ;;  %v1170_v3 = vld [vmem:[%s1740_s5] sm:$0xff] }
  0x2c   : > { %673 = vst.msk [vmem:[#allocation3 + $0x8] sm:$0xff] %vm609_vm1, %v1481_v1  ;;  %v1262_v37 = vpop.eup %1261  ;;  %v1178_v5 = vld [vmem:[%s1740_s5 + $0x40] sm:$0xff] }
  0x2d   : > { %674 = vst.msk [vmem:[#allocation3 + $0x10] sm:$0xff] %vm609_vm1, %v1481_v1  ;;  %v617_v38 = vmul.f32 64.0, %v1262_v37  ;;  %vm621_vm2 = vweird.f32 %v1262_v37  ;;  %773 = vmatpush.bf16.msrb.mxu0 %v1173_v54 }
  0x2e   : > { %675 = vst.msk [vmem:[#allocation3 + $0x18] sm:$0xff] %vm609_vm1, %v1481_v1  ;;  %826 = vmatpush.bf16.msrb.mxu1 %v1181_v55 }
  0x2f   : > { %v618_v39 = vsub.f32 1.0, %v617_v38  ;;  %734 = vmatpush.bf16.msra.mxu3 %v1175_v62 }
  0x31   : > { %v495_v10 = vld [vmem:[#allocation2 + $0x8] sm:$0xff]  ;;  %v619_v40 = vmul.f32 %v1262_v37, %v618_v39  ;;  %774 = vmatpush.bf16.msrb.mxu0 %v1172_v59 }
  0x32   : > { %v488_v11 = vld [vmem:[#allocation2 + $0x7] sm:$0xff]  ;;  %v496_v12 = vld [vmem:[#allocation2 + $0x10] sm:$0xff]  ;;  %827 = vmatpush.bf16.msrb.mxu1 %v1180_v60 }
  0x33   : > { %v489_v13 = vld [vmem:[#allocation2 + $0xf] sm:$0xff]  ;;  %v497_v15 = vpack.c.bf16 %v496_v12, %v495_v10  ;;  %v620_v41 = vadd.f32 %v1262_v37, %v619_v40  ;;  %735 = vmatpush.bf16.msra.mxu3 %v1174_v2 }
  0x34   : > { %v561_v14 = vld [vmem:[#allocation2 + $0x9] sm:$0xff]  ;;  %v490_v16 = vpack.c.bf16 %v489_v13, %v488_v11  ;;  %v562_v17 = vld [vmem:[#allocation2 + $0x11] sm:$0xff] }
  0x35   : > { %v563_v18 = vpack.c.bf16 %v562_v17, %v561_v14  ;;  %1070 = vmatmul.msk.bf16.vlgmr.msra.gmra.mxu0 %vm481_vm0, %v497_v15  ;;  %v1663_v42 = vsel %vm621_vm2, %v1262_v37, %v620_v41  ;;  %v1254_v15 = vld [vmem:[#allocation5] ss:$0 sm:$0xff] }
  0x36   : > { %1079 = vmatmul.msk.bf16.vlgmr.msra.gmra.mxu1 %vm481_vm0, %v490_v16  ;;  %775 = vmatpush.bf16.msrb.mxu0 %v1171_v63 }
  0x37   : > { %1092 = vmatmul.msk.bf16.vlgmr.msra.gmra.mxu2 %vm481_vm0, %v563_v18  ;;  %828 = vmatpush.bf16.msrb.mxu1 %v1179_v0  ;;  %v1255_v18 = vld [vmem:[#allocation7] ss:$0 sm:$0xff] }
  0x3a   : > { %776 = vmatpush.bf16.msrb.mxu0 %v1170_v3 }
  0x3b   : > { %829 = vmatpush.bf16.msrb.mxu1 %v1178_v5 }
  0xb2   : > { %v527_v19 = vpop.f32.mrf.mxu0 }
  0xb3   : > { %v556_v20 = vpop.f32.mrf.mxu1 }
  0xb4   : > { %v557_v21 = vadd.f32 %v556_v20, %v527_v19 }
  0xba   : > { %v593_v23 = vpop.f32.mrf.mxu2  ;;  %v529_v26 = vpop.f32.mrf.mxu0 }
  0xbb   : > { %v598_v24 = vadd.f32 %v593_v23, %v557_v21  ;;  %v558_v27 = vpop.f32.mrf.mxu1 }
  0xbc   : > { %v559_v29 = vadd.f32 %v558_v27, %v529_v26 }
  0xbd   : > { %v603_v25 = vadd.f32 %v1253_v22, %v598_v24 }
  0xbf   : > { %v605_v28 = vmax.f32 %v603_v25, 0.0 }
  0xc1   : > { %v610_v30 = vsel %vm609_vm1, %v605_v28, 0.0 }
  0xc2   : > { %v595_v31 = vpop.f32.mrf.mxu2  ;;  %611 = vadd.xlane.f32.xlu0 %v610_v30 }
  0xc3   : > { %v599_v32 = vadd.f32 %v595_v31, %v559_v29 }
  0xc5   : > { %v604_v33 = vadd.f32 %v1253_v22, %v599_v32 }
  0xc7   : > { %v606_v34 = vmax.f32 %v604_v33, 0.0 }
  0xc9   : > { %v613_v35 = vsel %vm609_vm1, %v606_v34, 0.0 }
  0xca   : > { %614 = vadd.xlane.f32.xlu0 %v613_v35 }
 0x135   : > { %v612_v43 = vpop.xlane.xlu0 %611 }
 0x136   : > { %v623_v44 = vmul.f32 %v1663_v42, %v612_v43  ;;  %v1256_v43 = vld [vmem:[#allocation9] ss:$0 sm:$0xff] }
 0x138   : > { %v625_v45 = vsub.f32 %v605_v28, %v623_v44 }
 0x13a   : > { %v627_v46 = vmul.f32 %v625_v45, %v625_v45 }
 0x13c   : > { %v629_v47 = vsel %vm609_vm1, %v627_v46, 0.0 }
 0x13d   : > { %630 = vadd.xlane.f32.xlu1 %v629_v47  ;;  %v615_v48 = vpop.xlane.xlu0 %614 }
 0x13e   : > { %v624_v49 = vmul.f32 %v1663_v42, %v615_v48 }
 0x140   : > { %v1668_v50 = vsub.f32 %v606_v34, %v624_v49 }
 0x142   : > { %v628_v51 = vmul.f32 %v1668_v50, %v1668_v50 }
 0x144   : > { %v632_v52 = vsel %vm609_vm1, %v628_v51, 0.0 }
 0x145   : > { %633 = vadd.xlane.f32.xlu1 %v632_v52 }
 0x1b0   : > { %v631_v56 = vpop.xlane.xlu1 %630 }
 0x1b1   : > { %v635_v57 = vmul.f32 %v631_v56, %v1663_v42 }
 0x1b3   : > { %v637_v61 = vadd.f32 1e-05, %v635_v57 }
 0x1b5   : > { %1263 = vrsqrt.f32 %v637_v61  ;;  %vm645_vm4 = vweird.f32 %v637_v61 }
 0x1b8   : > { %v634_v1 = vpop.xlane.xlu1 %633 }
 0x1b9   : > { %v636_v4 = vmul.f32 %v634_v1, %v1663_v42 }
 0x1bb   : > { %v1264_v6 = vpop.eup %1263  ;;  %v638_v7 = vadd.f32 1e-05, %v636_v4 }
 0x1bc   : > { %v640_v8 = vmul.f32 %v1264_v6, %v637_v61  ;;  %vm646_vm3 = vweird.f32 %v1264_v6 }
 0x1bd   : > { %1265 = vrsqrt.f32 %v638_v7  ;;  %vm647_vm5 = vmor %vm645_vm4, %vm646_vm3  ;;  %vm655_vm7 = vweird.f32 %v638_v7 }
 0x1be   : > { %v641_v9 = vmul.f32 %v1264_v6, %v640_v8 }
 0x1c0   : > { %v642_v10 = vmul.f32 0.5, %v641_v9 }
 0x1c2   : > { %v643_v11 = vsub.f32 1.5, %v642_v10 }
 0x1c3   : > { %v1266_v12 = vpop.eup %1265 }
 0x1c4   : > { %v644_v13 = vmul.f32 %v1264_v6, %v643_v11  ;;  %v650_v14 = vmul.f32 %v1266_v12, %v638_v7  ;;  %vm656_vm6 = vweird.f32 %v1266_v12 }
 0x1c5   : > { %vm657_vm8 = vmor %vm655_vm7, %vm656_vm6 }
 0x1c6   : > { %v648_v16 = vsel %vm647_vm5, %v1264_v6, %v644_v13  ;;  %v651_v17 = vmul.f32 %v1266_v12, %v650_v14 }
 0x1c7   : > { %v659_v19 = vmul.f32 %v648_v16, %v625_v45  ;;  %v1257_v16 = vld [vmem:[#allocation10] ss:$0 sm:$0xff] }
 0x1c8   : > { %v652_v20 = vmul.f32 0.5, %v651_v17 }
 0x1c9   : > { %v664_v21 = vmul.f32 %v1254_v15, %v659_v19 }
 0x1ca   : > { %v653_v22 = vsub.f32 1.5, %v652_v20  ;;  %v1258_v20 = vld [vmem:[#allocation12] ss:$0 sm:$0xff] }
 0x1cb   : > { %v669_v23 = vadd.f32 %v1255_v18, %v664_v21 }
 0x1cc   : > { %v654_v24 = vmul.f32 %v1266_v12, %v653_v22  ;;  %v1259_v22 = vld [vmem:[#allocation13] ss:$0 sm:$0xff] }
 0x1cd   : > { %676 = vst.msk [vmem:[#allocation3 + $0x8] sm:$0xff] %vm609_vm1, %v669_v23 }
 0x1ce   : > { %v658_v25 = vsel %vm657_vm8, %v1266_v12, %v654_v24 }
 0x1cf   : > { %v660_v26 = vmul.f32 %v658_v25, %v1668_v50 }
 0x1d1   : > { %v665_v27 = vmul.f32 %v1254_v15, %v660_v26 }
 0x1d3   : > { %v670_v28 = vadd.f32 %v1255_v18, %v665_v27 }
 0x1d4   : > { %v689_v29 = vld [vmem:[#allocation3 + $0x8] sm:$0xff] }
 0x1d5   : > { %677 = vst.msk [vmem:[#allocation3 + $0x10] sm:$0xff] %vm609_vm1, %v670_v28  ;;  %v678_v30 = vld [vmem:[#allocation3 + $0x7] sm:$0xff] }
 0x1dc   : > { %v690_v31 = vld [vmem:[#allocation3 + $0x10] sm:$0xff] }
 0x1dd   : > { %v679_v32 = vld [vmem:[#allocation3 + $0xf] sm:$0xff]  ;;  %v691_v34 = vpack.c.bf16 %v690_v31, %v689_v29 }
 0x1de   : > { %v783_v33 = vld [vmem:[#allocation3 + $0x9] sm:$0xff]  ;;  %v680_v35 = vpack.c.bf16 %v679_v32, %v678_v30  ;;  %v784_v36 = vld [vmem:[#allocation3 + $0x11] sm:$0xff] }
 0x1df   : > { %v785_v37 = vpack.c.bf16 %v784_v36, %v783_v33  ;;  %1117 = vmatmul.msk.bf16.vlgmr.msra.gmra.mxu3 %vm609_vm1, %v691_v34  ;;  %v1260_v34 = vld [vmem:[#allocation4] ss:$0 sm:$0xff] }
 0x1e0   : > { %1134 = vmatmul.msk.bf16.vlgmr.msrb.gmra.mxu0 %vm609_vm1, %v680_v35 }
 0x1e1   : > { %1159 = vmatmul.msk.bf16.vlgmr.msrb.gmra.mxu1 %vm609_vm1, %v785_v37 }
 0x25d   : > { %v778_v38 = vpop.f32.mrf.mxu0 }
 0x25e   : > { %v831_v39 = vpop.f32.mrf.mxu1 }
 0x262   : > { %v737_v40 = vpop.f32.mrf.mxu3 }
 0x263   : > { %v779_v41 = vadd.f32 %v778_v38, %v737_v40 }
 0x265   : > { %v836_v44 = vadd.f32 %v831_v39, %v779_v41  ;;  %v780_v47 = vpop.f32.mrf.mxu0 }
 0x266   : > { %v833_v51 = vpop.f32.mrf.mxu1 }
 0x267   : > { %v841_v45 = vadd.f32 %v1256_v43, %v836_v44 }
 0x269   : > { %v843_v46 = vmax.f32 %v841_v45, 0.0 }
 0x26a   : > { %v739_v48 = vpop.f32.mrf.mxu3 }
 0x26b   : > { %v781_v49 = vadd.f32 %v780_v47, %v739_v48  ;;  %v847_v50 = vsel %vm609_vm1, %v843_v46, 0.0 }
 0x26c   : > { %848 = vadd.xlane.f32.xlu2 %v847_v50 }
 0x26d   : > { %v837_v52 = vadd.f32 %v833_v51, %v781_v49 }
 0x26f   : > { %v842_v53 = vadd.f32 %v1256_v43, %v837_v52 }
 0x271   : > { %v844_v54 = vmax.f32 %v842_v53, 0.0 }
 0x273   : > { %v850_v55 = vsel %vm609_vm1, %v844_v54, 0.0 }
 0x274   : > { %851 = vadd.xlane.f32.xlu2 %v850_v55 }
 0x2df   : > { %v849_v56 = vpop.xlane.xlu2 %848 }
 0x2e0   : > { %v853_v57 = vmul.f32 %v849_v56, %v1663_v42 }
 0x2e2   : > { %v855_v58 = vsub.f32 %v843_v46, %v853_v57 }
 0x2e4   : > { %v857_v59 = vmul.f32 %v855_v58, %v855_v58 }
 0x2e6   : > { %v859_v60 = vsel %vm609_vm1, %v857_v59, 0.0 }
 0x2e7   : > { %860 = vadd.xlane.f32.xlu0 %v859_v60  ;;  %v852_v61 = vpop.xlane.xlu2 %851 }
 0x2e8   : > { %v854_v62 = vmul.f32 %v852_v61, %v1663_v42 }
 0x2ea   : > { %v856_v63 = vsub.f32 %v844_v54, %v854_v62 }
 0x2ec   : > { %v858_v0 = vmul.f32 %v856_v63, %v856_v63 }
 0x2ee   : > { %v862_v1 = vsel %vm609_vm1, %v858_v0, 0.0 }
 0x2ef   : > { %863 = vadd.xlane.f32.xlu1 %v862_v1 }
 0x35a   : > { %v861_v2 = vpop.xlane.xlu0 %860 }
 0x35b   : > { %v865_v3 = vmul.f32 %v861_v2, %v1663_v42 }
 0x35d   : > { %v867_v4 = vadd.f32 1e-05, %v865_v3 }
 0x35f   : > { %1267 = vrsqrt.f32 %v867_v4  ;;  %vm875_vm10 = vweird.f32 %v867_v4 }
 0x362   : > { %v864_v5 = vpop.xlane.xlu1 %863 }
 0x363   : > { %v866_v6 = vmul.f32 %v864_v5, %v1663_v42 }
 0x365   : > { %v1268_v7 = vpop.eup %1267  ;;  %v868_v8 = vadd.f32 1e-05, %v866_v6 }
 0x366   : > { %v870_v9 = vmul.f32 %v1268_v7, %v867_v4  ;;  %vm876_vm9 = vweird.f32 %v1268_v7 }
 0x367   : > { %1269 = vrsqrt.f32 %v868_v8  ;;  %vm877_vm11 = vmor %vm875_vm10, %vm876_vm9  ;;  %vm885_vm13 = vweird.f32 %v868_v8 }
 0x368   : > { %v871_v10 = vmul.f32 %v1268_v7, %v870_v9 }
 0x36a   : > { %v872_v11 = vmul.f32 0.5, %v871_v10 }
 0x36c   : > { %v873_v12 = vsub.f32 1.5, %v872_v11 }
 0x36d   : > { %v1270_v13 = vpop.eup %1269 }
 0x36e   : > { %v874_v14 = vmul.f32 %v1268_v7, %v873_v12  ;;  %v880_v15 = vmul.f32 %v1270_v13, %v868_v8  ;;  %vm886_vm12 = vweird.f32 %v1270_v13 }
 0x36f   : > { %vm887_vm14 = vmor %vm885_vm13, %vm886_vm12 }
 0x370   : > { %v878_v17 = vsel %vm877_vm11, %v1268_v7, %v874_v14  ;;  %v881_v18 = vmul.f32 %v1270_v13, %v880_v15 }
 0x371   : > { %v889_v19 = vmul.f32 %v878_v17, %v855_v58 }
 0x372   : > { %v882_v21 = vmul.f32 0.5, %v881_v18 }
 0x373   : > { %v894_v42 = vmul.f32 %v1257_v16, %v889_v19 }
 0x374   : > { %v883_v23 = vsub.f32 1.5, %v882_v21 }
 0x375   : > { %v899_v24 = vadd.f32 %v1258_v20, %v894_v42 }
 0x376   : > { %v884_v25 = vmul.f32 %v1270_v13, %v883_v23 }
 0x377   : > { %v905_v26 = vmul.f32 %v1259_v22, %v899_v24 }
 0x378   : > { %v888_v27 = vsel %vm887_vm14, %v1270_v13, %v884_v25 }
 0x379   : > { %v907_v28 = vsel %vm609_vm1, %v905_v26, 0.0  ;;  %v890_v29 = vmul.f32 %v888_v27, %v856_v63 }
 0x37a   : > { %908 = vadd.xlane.f32.xlu2 %v907_v28 }
 0x37b   : > { %v895_v30 = vmul.f32 %v1257_v16, %v890_v29 }
 0x37d   : > { %v900_v31 = vadd.f32 %v1258_v20, %v895_v30 }
 0x37f   : > { %v906_v32 = vmul.f32 %v1259_v22, %v900_v31 }
 0x381   : > { %v910_v33 = vsel %vm609_vm1, %v906_v32, 0.0 }
 0x382   : > { %911 = vadd.xlane.f32.xlu0 %v910_v33 }
 0x3ed   : > { %v909_v35 = vpop.xlane.xlu2 %908 }
 0x3ee   : > { %v917_v36 = vadd.f32 %v1260_v34, %v909_v35 }
 0x3f0   : > { %920 = vst.msk [vmem:[%s476_s22] sm:$0xff] %vm919_vm15, %v917_v36 }
 0x3f5   : > { %v912_v37 = vpop.xlane.xlu0 %911 }
 0x3f6   : > { %v918_v38 = vadd.f32 %v1260_v34, %v912_v37 }
 0x3f8   : > { %921 = vst.msk [vmem:[%s476_s22 + $0x8] sm:$0xff] %vm919_vm15, %v918_v38 }
 0x3f9 PF: > { %s27_s19 = sadd.s32 1, %s1473_s19  }
 0x3fa   : > { %p24_p7 = scmp.ge.s32.totalorder %s27_s19, 4  }
 0x3fc   :  { %26 = sbr.rel (!%p24_p7) target bundleno = 7 (0x7), region = 123 }
 0x401   :  { %943 = vsyncpa [#allocation6], 1 }
 0x402   :  { %945 = vsyncpa [#allocation6 + $0x1], 1 }
 0x403   :  { %946 = vsyncpa [#allocation8], 1 }
 0x404   :  { %947 = vsyncpa [#allocation11], 1 }
 0x405   :  { %948 = vsyncpa [#allocation14], 1 }

// kernel: run.16
= control target key start
LH: loop header
LB: loop body
LE: loop exit
PB: predicated region body
PF: predicated region fallthrough
CT: control target
= control target key end

     0   :  { %s1547_s0 = inlined_call_operand.vmem [shape: f32[2,8,32], index: 0, kind: input, shape index: {}]   ;;  %s1548_s1 = inlined_call_operand.vmem [shape: bf16[3,32,64], index: 1, kind: input, shape index: {}]   ;;  %s1549_s2 = inlined_call_operand.vmem [shape: f32[1,64], index: 2, kind: input, shape index: {}]   ;;  %s1550_s3 = inlined_call_operand.vmem [shape: f32[1,64], index: 3, kind: input, shape index: {}]   ;;  %s1551_s4 = inlined_call_operand.hbm [shape: f32[1,64], index: 4, kind: input, shape index: {}]   ;;  %s1552_s5 = inlined_call_operand.vmem [shape: bf16[3,64,64], index: 5, kind: input, shape index: {}]   ;;  %s1553_s6 = inlined_call_operand.hbm [shape: f32[1,64], index: 6, kind: input, shape index: {}]   ;;  %s1554_s7 = inlined_call_operand.hbm [shape: f32[1,64], index: 7, kind: input, shape index: {}]   ;;  %s1555_s8 = inlined_call_operand.hbm [shape: f32[1,64], index: 8, kind: input, shape index: {}]   ;;  %s1556_s9 = inlined_call_operand.hbm [shape: f32[1,64], index: 9, kind: input, shape index: {}]   ;;  %s1557_s10 = inlined_call_operand.<no memory space> [shape: f32[1,1], index: 10, kind: input, shape index: {}]   ;;  %s1558_s11 = inlined_call_operand.vmem [shape: f32[2,8,1], index: 11, kind: output, shape index: {}]  }
   0x1   :  { %v16_v0 = vstv %s1557_s10 }
   0x2   :  { %17 = vst [vmem:[#allocation4] sm:$0x1] %v16_v0 }
   0x3   :  { %18 = vsyncpa [#allocation6], 0 }
   0x4   :  { %19 = vsyncpa [#allocation8], 0 }
   0x5   :  { %20 = vsyncpa [#allocation11], 0  ;;  %s1382_s19 = smov 0  }
   0x6 LB: > { %s329_s22 = sshll.u32 %s1553_s6, 4  ;;  %s1391_s10 = sadd.s32 4294967295, %s1310_s19   ;;  %s1310_s19 = sphi %s1382_s19, %s26_s19   ;;  %s330_s22 = int_to_ptr.hbm [resolvable:$true] %s329_s22 }
   0x7   : > { %p930_p0 = scmp.ge.s32.totalorder %s1310_s19, 1  ;;  %p293_p1 = scmp.lt.s32.totalorder %s1310_s19, 3 }
   0x8   : > { %p1103_p2 = scmp.eq.s32.totalorder %s1391_s10, 0  ;;  %s1312_s24 = smov [#allocation7]  }
   0x9   : > { %p1396_p3 = pnand %p930_p0, %p293_p1  ;;  %s331_s25 = sshll.u32 %s1312_s24, 4  ;;  %s332_s25 = int_to_ptr.vmem [resolvable:$true] %s331_s25 }
   0xa   : > { %s353_s28 = sshll.u32 %s1555_s8, 4  ;;  %s314_s12 = sshll.u32 %s1551_s4, 4  ;;  %s354_s28 = int_to_ptr.hbm [resolvable:$true] %s353_s28  ;;  %s315_s12 = int_to_ptr.hbm [resolvable:$true] %s314_s12 }
   0xb   : > { %p1087_p4 = pneg %p1396_p3  ;;  %s1313_s14 = smov [#allocation10]  }
   0xc   : > { %s355_s15 = sshll.u32 %s1313_s14, 4  ;;  %s1314_s16 = smov [#allocation5]   ;;  %s356_s15 = int_to_ptr.vmem [resolvable:$true] %s355_s15 }
   0xd   : > { %p1410_p5 = pnand %p1103_p2, %p1087_p4  ;;  %s316_s17 = sshll.u32 %s1314_s16, 4  ;;  %s317_s17 = int_to_ptr.vmem [resolvable:$true] %s316_s17 }
   0xe   : > { %s341_s21 = sshll.u32 %s1554_s7, 4  ;;  %s365_s27 = sshll.u32 %s1556_s9, 4  ;;  %s342_s21 = int_to_ptr.hbm [resolvable:$true] %s341_s21  ;;  %s366_s27 = int_to_ptr.hbm [resolvable:$true] %s365_s27 }
   0xf   : > { %1093 = dma.hbm_to_vmem [thread:$0]  (!%p1410_p5), %s330_s22, 16, %s332_s25, [#allocation8]  }
  0x10   : > { %1099 = dma.hbm_to_vmem [thread:$0]  (!%p1410_p5), %s354_s28, 16, %s356_s15, [#allocation11]  }
  0x11   : > { %1090 = dma.hbm_to_vmem [thread:$0]  (!%p1410_p5), %s315_s12, 16, %s317_s17, [#allocation6]  }
  0x12   : > { %s1315_s29 = smov [#allocation9]   ;;  %s1316_s22 = smov [#allocation12]  }
  0x13   : > { %s343_s30 = sshll.u32 %s1315_s29, 4  ;;  %s367_s25 = sshll.u32 %s1316_s22, 4  ;;  %s344_s30 = int_to_ptr.vmem [resolvable:$true] %s343_s30  ;;  %s368_s25 = int_to_ptr.vmem [resolvable:$true] %s367_s25 }
  0x14   : > { %1096 = dma.hbm_to_vmem [thread:$0]  (!%p1410_p5), %s342_s21, 16, %s344_s30, [#allocation8]  }
  0x15   : > { %1102 = dma.hbm_to_vmem [thread:$0]  (!%p1410_p5), %s366_s27, 16, %s368_s25, [#allocation11]  }
  0x16   : > { %390 = sbr.rel (%p1396_p3) target bundleno = 996 (0x3e4), region = 64 }
  0x1b   : > { %1297 = dma.done.wait (%p1103_p2), [#allocation6], 16  }
  0x1c   : > { %1299 = vsyncadd (%p1103_p2), [#allocation6], 4294967280 }
  0x1d   : > { %1301 = dma.done.wait (%p1103_p2), [#allocation8], 32  }
  0x1e   : > { %1303 = vsyncadd (%p1103_p2), [#allocation8], 4294967264 }
  0x1f   : > { %1305 = dma.done.wait (%p1103_p2), [#allocation11], 32  }
  0x20   : > { %1307 = vsyncadd (%p1103_p2), [#allocation11], 4294967264  ;;  %p449_p6 = scmp.lt.s32.totalorder %s1391_s10, 1  ;;  %vm460_vm0 = vcmask 261120   ;;  %v1317_v1 = vmov 0.0   ;;  %v1052_v2 = vld [vmem:[%s1548_s1 + $0x18] sm:$0xff] }
  0x21   : > { %461 = vst.msk [vmem:[#allocation2] sm:$0xff] %vm460_vm0, %v1317_v1  ;;  %v1050_v3 = vld [vmem:[%s1548_s1 + $0x8] sm:$0xff]  ;;  %v1051_v5 = vld [vmem:[%s1548_s1 + $0x10] sm:$0xff]  ;;  %v1049_v6 = vld [vmem:[%s1548_s1] sm:$0xff]  ;;  %499 = vmatpush.bf16.msra.mxu0 %v1052_v2  ;;  %vm577_vm1 = vcmask 523264   ;;  %v1318_v27 = vmov 64.0  }
  0x22   : > { %s1562_s10 = smov (!%p449_p6, %s1391_s10), 1  ;;  %462 = vst.msk [vmem:[#allocation2 + $0x8] sm:$0xff] %vm460_vm0, %v1317_v1  ;;  %v1054_v4 = vld [vmem:[%s1548_s1 + $0x28] sm:$0xff]  ;;  %527 = vmatpush.bf16.msra.mxu1 %v1050_v3  ;;  %v1053_v8 = vld [vmem:[%s1548_s1 + $0x20] sm:$0xff]  ;;  %1136 = vrcp.f32 %v1318_v27  ;;  %v1062_v39 = vld [vmem:[%s1552_s5 + $0x38] sm:$0xff]  ;;  %vm823_vm9 = vcmask 7168  }
  0x23   : > { %463 = vst.msk [vmem:[#allocation2 + $0x10] sm:$0xff] %vm460_vm0, %v1317_v1  ;;  %s943_s23 = sshll.u32 %s1562_s10, 3  ;;  %562 = vmatpush.bf16.msra.mxu2 %v1054_v4  ;;  %v1128_v18 = vld [vmem:[%s1549_s2] ss:$0 sm:$0xff]  ;;  %v1058_v40 = vld [vmem:[%s1552_s5 + $0x18] sm:$0xff]  ;;  %672 = vmatpush.bf16.msra.mxu3 %v1062_v39  ;;  %v1061_v42 = vld [vmem:[%s1552_s5 + $0x30] sm:$0xff] }
  0x24   : > { %s452_s13 = scalar_lea.vmem %s1547_s0, %s943_s23  ;;  %616 = vst.msk [vmem:[#allocation3] sm:$0xff] %vm577_vm1, %v1317_v1  ;;  %v1066_v41 = vld [vmem:[%s1552_s5 + $0x58] sm:$0xff]  ;;  %v1057_v43 = vld [vmem:[%s1552_s5 + $0x10] sm:$0xff]  ;;  %v1060_v45 = vld [vmem:[%s1552_s5 + $0x28] sm:$0xff]  ;;  %s456_s26 = scalar_lea.vmem %s1558_s11, %s943_s23 }
  0x25   : > { %v458_v7 = vld [vmem:[%s452_s13] sm:$0xff]  ;;  %500 = vmatpush.bf16.msra.mxu0 %v1051_v5  ;;  %617 = vst.msk [vmem:[#allocation3 + $0x8] sm:$0xff] %vm577_vm1, %v1317_v1  ;;  %v1065_v44 = vld [vmem:[%s1552_s5 + $0x50] sm:$0xff]  ;;  %v1056_v46 = vld [vmem:[%s1552_s5 + $0x8] sm:$0xff] }
  0x26   : > { %464 = vst.msk [vmem:[#allocation2 + $0x8] sm:$0xff] %vm460_vm0, %v458_v7  ;;  %528 = vmatpush.bf16.msra.mxu1 %v1049_v6  ;;  %v1064_v47 = vld [vmem:[%s1552_s5 + $0x48] sm:$0xff]  ;;  %v1059_v49 = vld [vmem:[%s1552_s5 + $0x20] sm:$0xff]  ;;  %v1130_v62 = vld [vmem:[#allocation5] ss:$0 sm:$0xff] }
  0x27   : > { %563 = vmatpush.bf16.msra.mxu2 %v1053_v8  ;;  %618 = vst.msk [vmem:[#allocation3 + $0x10] sm:$0xff] %vm577_vm1, %v1317_v1  ;;  %673 = vmatpush.bf16.msra.mxu3 %v1061_v42  ;;  %v1055_v50 = vld [vmem:[%s1552_s5] sm:$0xff] }
  0x28   : > { %v1137_v28 = vpop.eup %1136  ;;  %v1063_v52 = vld [vmem:[%s1552_s5 + $0x40] sm:$0xff] }
  0x29   : > { %v582_v29 = vmul.f32 64.0, %v1137_v28  ;;  %vm586_vm2 = vweird.f32 %v1137_v28  ;;  %712 = vmatpush.bf16.msrb.mxu0 %v1058_v40  ;;  %v1129_v60 = vld [vmem:[%s1550_s3] ss:$0 sm:$0xff]  ;;  %v1134_v40 = vld [vmem:[#allocation12] ss:$0 sm:$0xff] }
  0x2a   : > { %763 = vmatpush.bf16.msrb.mxu1 %v1066_v41 }
  0x2b   : > { %v583_v30 = vsub.f32 1.0, %v582_v29  ;;  %674 = vmatpush.bf16.msra.mxu3 %v1060_v45 }
  0x2d   : > { %v471_v9 = vld [vmem:[#allocation2 + $0x8] sm:$0xff]  ;;  %v584_v31 = vmul.f32 %v1137_v28, %v583_v30  ;;  %713 = vmatpush.bf16.msrb.mxu0 %v1057_v43  ;;  %v1135_v43 = vld [vmem:[#allocation4] ss:$0 sm:$0xff] }
  0x2e   : > { %v465_v10 = vld [vmem:[#allocation2 + $0x7] sm:$0xff]  ;;  %v472_v12 = vpack.c.bf16 %v471_v9, %v471_v9  ;;  %764 = vmatpush.bf16.msrb.mxu1 %v1065_v44 }
  0x2f   : > { %v534_v11 = vld [vmem:[#allocation2 + $0x9] sm:$0xff]  ;;  %v466_v13 = vpack.c.bf16 %v465_v10, %v465_v10  ;;  %v585_v32 = vadd.f32 %v1137_v28, %v584_v31  ;;  %675 = vmatpush.bf16.msra.mxu3 %v1059_v49 }
  0x30   : > { %v535_v14 = vpack.c.bf16 %v534_v11, %v534_v11  ;;  %957 = vmatmul.msk.bf16.vlgmr.msra.gmra.mxu0 %vm460_vm0, %v472_v12  ;;  %v1131_v12 = vld [vmem:[#allocation7] ss:$0 sm:$0xff] }
  0x31   : > { %966 = vmatmul.msk.bf16.vlgmr.msra.gmra.mxu1 %vm460_vm0, %v466_v13  ;;  %v1486_v33 = vsel %vm586_vm2, %v1137_v28, %v585_v32  ;;  %714 = vmatpush.bf16.msrb.mxu0 %v1056_v46 }
  0x32   : > { %979 = vmatmul.msk.bf16.vlgmr.msra.gmra.mxu2 %vm460_vm0, %v535_v14  ;;  %765 = vmatpush.bf16.msrb.mxu1 %v1064_v47 }
  0x35   : > { %715 = vmatpush.bf16.msrb.mxu0 %v1055_v50 }
  0x36   : > { %766 = vmatpush.bf16.msrb.mxu1 %v1063_v52 }
  0xad   : > { %v502_v15 = vpop.f32.mrf.mxu0 }
  0xae   : > { %v530_v16 = vpop.f32.mrf.mxu1 }
  0xaf   : > { %v531_v17 = vadd.f32 %v530_v16, %v502_v15 }
  0xb5   : > { %v565_v19 = vpop.f32.mrf.mxu2  ;;  %v504_v21 = vpop.f32.mrf.mxu0 }
  0xb6   : > { %v569_v20 = vadd.f32 %v565_v19, %v531_v17  ;;  %v532_v22 = vpop.f32.mrf.mxu1 }
  0xb8   : > { %v573_v23 = vadd.f32 %v1128_v18, %v569_v20 }
  0xba   : > { %v574_v24 = vmax.f32 %v573_v23, 0.0 }
  0xbc   : > { %v578_v25 = vsel %vm577_vm1, %v574_v24, 0.0 }
  0xbd   : > { %v567_v26 = vpop.f32.mrf.mxu2  ;;  %579 = vadd.xlane.f32.xlu0 %v578_v25 }
 0x130   : > { %v580_v34 = vpop.xlane.xlu0 %579 }
 0x131   : > { %v588_v35 = vmul.f32 %v1486_v33, %v580_v34 }
 0x133   : > { %v589_v36 = vsub.f32 %v574_v24, %v588_v35  ;;  %v1132_v35 = vld [vmem:[#allocation9] ss:$0 sm:$0xff] }
 0x135   : > { %v590_v37 = vmul.f32 %v589_v36, %v589_v36 }
 0x137   : > { %v591_v38 = vsel %vm577_vm1, %v590_v37, 0.0 }
 0x138   : > { %592 = vadd.xlane.f32.xlu0 %v591_v38  ;;  %v1133_v38 = vld [vmem:[#allocation10] ss:$0 sm:$0xff] }
 0x1ab   : > { %v593_v48 = vpop.xlane.xlu0 %592 }
 0x1ac   : > { %v594_v51 = vmul.f32 %v593_v48, %v1486_v33 }
 0x1ae   : > { %v595_v53 = vadd.f32 1e-05, %v594_v51 }
 0x1b0   : > { %1138 = vrsqrt.f32 %v595_v53  ;;  %vm602_vm4 = vweird.f32 %v595_v53 }
 0x1b6   : > { %v1139_v54 = vpop.eup %1138 }
 0x1b7   : > { %v597_v55 = vmul.f32 %v1139_v54, %v595_v53  ;;  %vm603_vm3 = vweird.f32 %v1139_v54 }
 0x1b8   : > { %vm604_vm5 = vmor %vm602_vm4, %vm603_vm3 }
 0x1b9   : > { %v598_v56 = vmul.f32 %v1139_v54, %v597_v55 }
 0x1bb   : > { %v599_v57 = vmul.f32 0.5, %v598_v56 }
 0x1bd   : > { %v600_v58 = vsub.f32 1.5, %v599_v57 }
 0x1bf   : > { %v601_v59 = vmul.f32 %v1139_v54, %v600_v58 }
 0x1c1   : > { %v605_v61 = vsel %vm604_vm5, %v1139_v54, %v601_v59 }
 0x1c2   : > { %v606_v63 = vmul.f32 %v605_v61, %v589_v36 }
 0x1c4   : > { %v610_v0 = vmul.f32 %v1129_v60, %v606_v63 }
 0x1c6   : > { %v614_v1 = vadd.f32 %v1130_v62, %v610_v0 }
 0x1c8   : > { %619 = vst.msk [vmem:[#allocation3 + $0x8] sm:$0xff] %vm577_vm1, %v614_v1 }
 0x1cf   : > { %v630_v2 = vld [vmem:[#allocation3 + $0x8] sm:$0xff] }
 0x1d0   : > { %v620_v3 = vld [vmem:[#allocation3 + $0x7] sm:$0xff]  ;;  %v631_v5 = vpack.c.bf16 %v630_v2, %v630_v2 }
 0x1d1   : > { %v721_v4 = vld [vmem:[#allocation3 + $0x9] sm:$0xff]  ;;  %v621_v6 = vpack.c.bf16 %v620_v3, %v620_v3 }
 0x1d2   : > { %v722_v7 = vpack.c.bf16 %v721_v4, %v721_v4  ;;  %1004 = vmatmul.msk.bf16.vlgmr.msra.gmra.mxu3 %vm577_vm1, %v631_v5 }
 0x1d3   : > { %1021 = vmatmul.msk.bf16.vlgmr.msrb.gmra.mxu0 %vm577_vm1, %v621_v6 }
 0x1d4   : > { %1046 = vmatmul.msk.bf16.vlgmr.msrb.gmra.mxu1 %vm577_vm1, %v722_v7 }
 0x250   : > { %v717_v8 = vpop.f32.mrf.mxu0 }
 0x251   : > { %v768_v9 = vpop.f32.mrf.mxu1 }
 0x255   : > { %v677_v10 = vpop.f32.mrf.mxu3 }
 0x256   : > { %v718_v11 = vadd.f32 %v717_v8, %v677_v10 }
 0x258   : > { %v719_v13 = vpop.f32.mrf.mxu0  ;;  %v772_v14 = vadd.f32 %v768_v9, %v718_v11 }
 0x259   : > { %v770_v15 = vpop.f32.mrf.mxu1 }
 0x25a   : > { %v776_v16 = vadd.f32 %v1131_v12, %v772_v14 }
 0x25c   : > { %v777_v17 = vmax.f32 %v776_v16, 0.0 }
 0x25d   : > { %v679_v18 = vpop.f32.mrf.mxu3 }
 0x25e   : > { %v780_v19 = vsel %vm577_vm1, %v777_v17, 0.0 }
 0x25f   : > { %781 = vadd.xlane.f32.xlu1 %v780_v19 }
 0x2d2   : > { %v782_v20 = vpop.xlane.xlu1 %781 }
 0x2d3   : > { %v783_v21 = vmul.f32 %v782_v20, %v1486_v33 }
 0x2d5   : > { %v784_v22 = vsub.f32 %v777_v17, %v783_v21 }
 0x2d7   : > { %v785_v23 = vmul.f32 %v784_v22, %v784_v22 }
 0x2d9   : > { %v786_v24 = vsel %vm577_vm1, %v785_v23, 0.0 }
 0x2da   : > { %787 = vadd.xlane.f32.xlu1 %v786_v24 }
 0x34d   : > { %v788_v25 = vpop.xlane.xlu1 %787 }
 0x34e   : > { %v789_v26 = vmul.f32 %v788_v25, %v1486_v33 }
 0x350   : > { %v790_v27 = vadd.f32 1e-05, %v789_v26 }
 0x352   : > { %1140 = vrsqrt.f32 %v790_v27  ;;  %vm797_vm7 = vweird.f32 %v790_v27 }
 0x358   : > { %v1141_v28 = vpop.eup %1140 }
 0x359   : > { %v792_v29 = vmul.f32 %v1141_v28, %v790_v27  ;;  %vm798_vm6 = vweird.f32 %v1141_v28 }
 0x35a   : > { %vm799_vm8 = vmor %vm797_vm7, %vm798_vm6 }
 0x35b   : > { %v793_v30 = vmul.f32 %v1141_v28, %v792_v29 }
 0x35d   : > { %v794_v31 = vmul.f32 0.5, %v793_v30 }
 0x35f   : > { %v795_v32 = vsub.f32 1.5, %v794_v31 }
 0x361   : > { %v796_v34 = vmul.f32 %v1141_v28, %v795_v32 }
 0x363   : > { %v800_v36 = vsel %vm799_vm8, %v1141_v28, %v796_v34 }
 0x364   : > { %v801_v37 = vmul.f32 %v800_v36, %v784_v22 }
 0x366   : > { %v805_v39 = vmul.f32 %v1132_v35, %v801_v37 }
 0x368   : > { %v809_v41 = vadd.f32 %v1133_v38, %v805_v39 }
 0x36a   : > { %v814_v33 = vmul.f32 %v1134_v40, %v809_v41 }
 0x36c   : > { %v815_v42 = vsel %vm577_vm1, %v814_v33, 0.0 }
 0x36d   : > { %816 = vadd.xlane.f32.xlu2 %v815_v42 }
 0x3e0   : > { %v817_v44 = vpop.xlane.xlu2 %816 }
 0x3e1   : > { %v822_v45 = vadd.f32 %v1135_v43, %v817_v44 }
 0x3e3   : > { %824 = vst.msk [vmem:[%s456_s26] sm:$0xff] %vm823_vm9, %v822_v45 }
 0x3e4 PF: > { %s26_s19 = sadd.s32 1, %s1310_s19  }
 0x3e5   : > { %p23_p7 = scmp.ge.s32.totalorder %s26_s19, 4  }
 0x3e7   :  { %25 = sbr.rel (!%p23_p7) target bundleno = 6 (0x6), region = 119 }
 0x3ec   :  { %844 = vsyncpa [#allocation6], 1 }
 0x3ed   :  { %846 = vsyncpa [#allocation6 + $0x1], 1 }
 0x3ee   :  { %847 = vsyncpa [#allocation8], 1 }
 0x3ef   :  { %848 = vsyncpa [#allocation11], 1 }

</bundles_post_ra>
